<compile_context>
chip_gen: v7x
topology: tpu7x:2x2x1
jax: 0.10.0
libtpu: 0.0.40
codegen_flags: <defaults>
</compile_context>

<pallas_src>
import functools

import jax
import jax.numpy as jnp
import numpy as np
from jax import lax
from jax.experimental import pallas as pl
from jax.experimental.pallas import tpu as pltpu

_ROW_TILE = 512          # multiple of 8   -> legal sublane sub-block
_COL_TILE = 512          # multiple of 128 -> legal lane sub-block
_K_TILE = 1024           # K-reduction tile (bf16: 512x1024 + 1024x512 ~ 2 MiB/buf)
_LN_EPS = 1e-5
_VMEM_LIMIT = 64 * 1024 * 1024   # explicit scoped-VMEM budget (<= physical on v7x)


# ------------------------------ Pallas kernels ------------------------------


def _matmul_bias_kernel(x_ref, w_ref, b_ref, o_ref, acc_ref, *, activation):
    # (tm, tk) @ (tk, tn) bf16 on the MXU, f32 accumulation over the K grid axis,
    # bias (+ optional QuickGELU) epilogue in f32.
    k = pl.program_id(2)

    @pl.when(k == 0)
    def _():
        acc_ref[...] = jnp.zeros_like(acc_ref)

    acc_ref[...] += jnp.dot(x_ref[...].astype(jnp.bfloat16), w_ref[...],
                            preferred_element_type=jnp.float32)

    @pl.when(k == pl.num_programs(2) - 1)
    def _():
        y = acc_ref[...] + b_ref[...]
        if activation == "quick_gelu":
            y = y * jax.nn.sigmoid(1.702 * y)
        o_ref[...] = y.astype(o_ref.dtype)


def _matmul_bias_res_kernel(x_ref, w_ref, b_ref, r_ref, o_ref, acc_ref):
    # matmul + bias + residual add fully fused (c_proj epilogue), K-tiled.
    k = pl.program_id(2)

    @pl.when(k == 0)
    def _():
        acc_ref[...] = jnp.zeros_like(acc_ref)

    acc_ref[...] += jnp.dot(x_ref[...].astype(jnp.bfloat16), w_ref[...],
                            preferred_element_type=jnp.float32)

    @pl.when(k == pl.num_programs(2) - 1)
    def _():
        o_ref[...] = (acc_ref[...] + b_ref[...]
                      + r_ref[...].astype(jnp.float32)).astype(o_ref.dtype)


def _ln_matmul_kernel(x_ref, g_ref, b_ref, w_ref, bias_ref, o_ref, xn_ref,
                      *, activation, eps):
    # Fused LayerNorm(x) @ W + bias (+ optional QuickGELU).  LN math in f32; the
    # normalized row tile is cached (bf16) in VMEM scratch under j == 0 and reused
    # for every output-column tile (column axis is innermost / "arbitrary").
    j = pl.program_id(1)

    @pl.when(j == 0)
    def _():
        x = x_ref[...].astype(jnp.float32)
        mu = jnp.mean(x, axis=-1, keepdims=True)
        var = jnp.mean(jnp.square(x - mu), axis=-1, keepdims=True)
        xn = (x - mu) * lax.rsqrt(var + eps)
        xn_ref[...] = (xn * g_ref[...] + b_ref[...]).astype(xn_ref.dtype)

    y = jnp.dot(xn_ref[...], w_ref[...],
                preferred_element_type=jnp.float32) + bias_ref[...]
    if activation == "quick_gelu":
        y = y * jax.nn.sigmoid(1.702 * y)
    o_ref[...] = y.astype(o_ref.dtype)


def _add_pos_ln_kernel(x_ref, pos_ref, g_ref, b_ref, o_ref, *, eps):
    # tokens + positional embedding, then ln_pre, fused (one HBM pass), f32.
    x = x_ref[0].astype(jnp.float32) + pos_ref[...].astype(jnp.float32)
    mu = jnp.mean(x, axis=-1, keepdims=True)
    var = jnp.mean(jnp.square(x - mu), axis=-1, keepdims=True)
    xn = (x - mu) * lax.rsqrt(var + eps)
    o_ref[0] = (xn * g_ref[...] + b_ref[...]).astype(o_ref.dtype)


def _attn_proj_kernel(qkv_ref, wout_ref, bout_ref, res_ref, o_ref,
                      *, num_heads, d_model):
    # One batch element per grid step.  All heads computed in VMEM from the fused
    # bf16 QKV slab (S, 3D).  Per head: softmax(q k^T / sqrt(dh)) v, then the
    # head's slice of the output projection is accumulated immediately into a
    # single f32 accumulator (no concatenate, no HBM attention-output tensor);
    # out_proj bias and the residual add are fused into the same epilogue.
    x = qkv_ref[0]                                  # (S, 3D) bf16
    dh = d_model // num_heads
    scale = 1.0 / (dh ** 0.5)
    acc = res_ref[0].astype(jnp.float32) + bout_ref[...]   # (S, D) f32
    for h in range(num_heads):                      # static unroll over heads
        q = x[:, h * dh:(h + 1) * dh]
        k = x[:, d_model + h * dh: d_model + (h + 1) * dh]
        v = x[:, 2 * d_model + h * dh: 2 * d_model + (h + 1) * dh]
        # scores = q @ k^T (contract on head dim), bf16 operands, f32 accumulate.
        s = lax.dot_general(q, k, (((1,), (1,)), ((), ())),
                            preferred_element_type=jnp.float32) * scale
        s = s - jnp.max(s, axis=-1, keepdims=True)
        p = jnp.exp(s)
        p = p * pl.reciprocal(jnp.sum(p, axis=-1, keepdims=True), approx=True)
        o_h = jnp.dot(p.astype(jnp.bfloat16), v,
                      preferred_element_type=jnp.float32)          # (S, dh)
        acc = acc + jnp.dot(o_h.astype(jnp.bfloat16),
                            wout_ref[h * dh:(h + 1) * dh, :],
                            preferred_element_type=jnp.float32)    # (S, D)
    o_ref[0] = acc.astype(o_ref.dtype)


# ------------------------------ thin wrappers --------------------------------


def _tiles(dim, cap):
    return dim if dim <= cap else cap


def _pick_tk(K):
    # Choose a K tile that divides K exactly (partial K blocks would accumulate
    # garbage from the padded region).  Falls back to resident-K if needed.
    if K <= _K_TILE:
        return K
    for cand in (_K_TILE, 512, 256, 128):
        if K % cand == 0:
            return cand
    return K


def fused_matmul_bias(x, w, bias=None, *, residual=None, activation=None,
                      out_dtype=jnp.float32):
    """out = [gelu]( x @ w + bias [+ residual] ), bf16 MXU / f32 accumulate."""
    M, K = x.shape
    K2, N = w.shape
    assert K == K2
    w = w.astype(jnp.bfloat16)                       # bf16 weight DMA
    if bias is None:
        bias = jnp.zeros((N,), jnp.float32)
    bias = bias.astype(jnp.float32).reshape(1, N)

    tm, tn, tk = _tiles(M, _ROW_TILE), _tiles(N, _COL_TILE), _pick_tk(K)
    grid = (pl.cdiv(M, tm), pl.cdiv(N, tn), pl.cdiv(K, tk))

    in_specs = [
        pl.BlockSpec((tm, tk), lambda i, j, k: (i, k)),
        pl.BlockSpec((tk, tn), lambda i, j, k: (k, j)),
        pl.BlockSpec((1, tn), lambda i, j, k: (0, j)),
    ]
    args = [x, w, bias]
    if residual is None:
        kernel = functools.partial(_matmul_bias_kernel, activation=activation)
    else:
        assert activation is None
        kernel = _matmul_bias_res_kernel
        in_specs.append(pl.BlockSpec((tm, tn), lambda i, j, k: (i, j)))
        args.append(residual)

    return pl.pallas_call(
        kernel,
        grid=grid,
        in_specs=in_specs,
        out_specs=pl.BlockSpec((tm, tn), lambda i, j, k: (i, j)),
        out_shape=jax.ShapeDtypeStruct((M, N), out_dtype),
        scratch_shapes=[pltpu.VMEM((tm, tn), jnp.float32)],
        compiler_params=pltpu.CompilerParams(
            dimension_semantics=("parallel", "parallel", "arbitrary"),
            vmem_limit_bytes=_VMEM_LIMIT),
    )(*args)


def fused_ln_matmul(x, gamma, beta, w, bias=None, *, activation=None,
                    out_dtype=jnp.float32, eps=_LN_EPS):
    """out = [gelu]( LayerNorm(x) @ w + bias ); LN cached across column tiles."""
    M, K = x.shape
    K2, N = w.shape
    assert K == K2
    w = w.astype(jnp.bfloat16)
    if bias is None:
        bias = jnp.zeros((N,), jnp.float32)
    bias = bias.astype(jnp.float32).reshape(1, N)

    tm, tn = _tiles(M, _ROW_TILE), _tiles(N, _COL_TILE)
    grid = (pl.cdiv(M, tm), pl.cdiv(N, tn))
    # K == d_model here (<= ~1.7k for CLIP ViTs) so resident-K tiles stay small.

    kernel = functools.partial(_ln_matmul_kernel, activation=activation, eps=eps)
    return pl.pallas_call(
        kernel,
        grid=grid,
        in_specs=[
            pl.BlockSpec((tm, K), lambda i, j: (i, 0)),
            pl.BlockSpec((1, K), lambda i, j: (0, 0)),
            pl.BlockSpec((1, K), lambda i, j: (0, 0)),
            pl.BlockSpec((K, tn), lambda i, j: (0, j)),
            pl.BlockSpec((1, tn), lambda i, j: (0, j)),
        ],
        out_specs=pl.BlockSpec((tm, tn), lambda i, j: (i, j)),
        out_shape=jax.ShapeDtypeStruct((M, N), out_dtype),
        scratch_shapes=[pltpu.VMEM((tm, K), jnp.bfloat16)],
        compiler_params=pltpu.CompilerParams(
            # column axis must stay "arbitrary": the cached LN tile written at
            # j == 0 is reused by the remaining column tiles of the same row tile.
            dimension_semantics=("parallel", "arbitrary"),
            vmem_limit_bytes=_VMEM_LIMIT),
    )(x, gamma.astype(jnp.float32).reshape(1, K),
      beta.astype(jnp.float32).reshape(1, K), w, bias)


def add_pos_layernorm(tokens, pos, gamma, beta, *, eps=_LN_EPS):
    """LayerNorm(tokens + pos_embedding), one grid step per batch element."""
    B, S, D = tokens.shape
    kernel = functools.partial(_add_pos_ln_kernel, eps=eps)
    return pl.pallas_call(
        kernel,
        grid=(B,),
        in_specs=[
            pl.BlockSpec((1, S, D), lambda b: (b, 0, 0)),
            pl.BlockSpec((S, D), lambda b: (0, 0)),
            pl.BlockSpec((1, D), lambda b: (0, 0)),
            pl.BlockSpec((1, D), lambda b: (0, 0)),
        ],
        out_specs=pl.BlockSpec((1, S, D), lambda b: (b, 0, 0)),
        out_shape=jax.ShapeDtypeStruct((B, S, D), jnp.float32),
        compiler_params=pltpu.CompilerParams(
            dimension_semantics=("parallel",), vmem_limit_bytes=_VMEM_LIMIT),
    )(tokens, pos, gamma.reshape(1, D), beta.reshape(1, D))


def fused_attention_proj(qkv, h, w_out, b_out, B, S, D, num_heads):
    """h_new = h + out_proj(MHA(qkv slab)) fused into one kernel; (B*S, D) f32."""
    qkv3 = qkv.reshape(B, S, 3 * D)
    res3 = h.reshape(B, S, D)
    kernel = functools.partial(_attn_proj_kernel, num_heads=num_heads, d_model=D)
    out = pl.pallas_call(
        kernel,
        grid=(B,),
        in_specs=[
            pl.BlockSpec((1, S, 3 * D), lambda b: (b, 0, 0)),
            pl.BlockSpec((D, D), lambda b: (0, 0)),
            pl.BlockSpec((1, D), lambda b: (0, 0)),
            pl.BlockSpec((1, S, D), lambda b: (b, 0, 0)),
        ],
        out_specs=pl.BlockSpec((1, S, D), lambda b: (b, 0, 0)),
        out_shape=jax.ShapeDtypeStruct((B, S, D), jnp.float32),
        compiler_params=pltpu.CompilerParams(
            dimension_semantics=("parallel",), vmem_limit_bytes=_VMEM_LIMIT),
    )(qkv3, w_out.astype(jnp.bfloat16),
      b_out.astype(jnp.float32).reshape(1, D), res3)
    return out.reshape(B * S, D)


# ------------------------------ ViT forward ----------------------------------


def vit_forward(x, params, *, patch_size, heads):
    """CLIP VisionTransformer forward (inference), NCHW image in, (B, out_dim) out."""
    B, Cin, H, W = x.shape
    D = params["class_embedding"].shape[0]
    P = patch_size
    Hp, Wp = H // P, W // P
    n_patch = Hp * Wp
    S = n_patch + 1

    # conv1 (stride == kernel): non-overlapping patch extraction + one fused matmul.
    # TODO(synk): fold the patch gather into the patch-matmul BlockSpec index_map
    #             (or pre-lay out NHWC) to skip this XLA HBM transpose.
    xp = x.reshape(B, Cin, Hp, P, Wp, P).transpose(0, 2, 4, 1, 3, 5)
    xp = xp.reshape(B * n_patch, Cin * P * P)
    w_patch = params["conv1_w"].reshape(D, Cin * P * P).T            # (Cin*P*P, D)
    tok = fused_matmul_bias(xp, w_patch).reshape(B, n_patch, D)

    # class token concat (tiny glue), then fused (+pos, ln_pre).
    cls = jnp.broadcast_to(params["class_embedding"].reshape(1, 1, D), (B, 1, D))
    tokens = jnp.concatenate([cls, tok], axis=1)                     # (B, S, D)
    h = add_pos_layernorm(tokens, params["pos_embedding"], *params["ln_pre"])
    h = h.reshape(B * S, D)                                          # f32 residual

    for blk in params["blocks"]:
        # x = x + out_proj(attn(ln_1(x)))      (QKV slab emitted bf16)
        qkv = fused_ln_matmul(h, *blk["ln_1"], blk["w_qkv"], blk["b_qkv"],
                              out_dtype=jnp.bfloat16)
        h = fused_attention_proj(qkv, h, blk["w_out"], blk["b_out"], B, S, D, heads)
        # x = x + c_proj(quick_gelu(c_fc(ln_2(x))))   (4D-wide "up" emitted bf16)
        up = fused_ln_matmul(h, *blk["ln_2"], blk["w_fc"], blk["b_fc"],
                             activation="quick_gelu", out_dtype=jnp.bfloat16)
        h = fused_matmul_bias(up, blk["w_proj"], blk["b_proj"], residual=h)

    # ln_post on the class token, fused with the output projection.
    cls_tok = h.reshape(B, S, D)[:, 0, :]                            # (B, D)
    return fused_ln_matmul(cls_tok, *params["ln_post"], params["proj"], None)


# ------------------------------ pure-JAX reference ---------------------------


def vit_reference(x, params, *, patch_size, heads):
    HI = lax.Precision.HIGHEST
    B = x.shape[0]
    D = params["class_embedding"].shape[0]
    dh = D // heads

    def ln(t, g, b):
        mu = jnp.mean(t, axis=-1, keepdims=True)
        var = jnp.mean(jnp.square(t - mu), axis=-1, keepdims=True)
        return (t - mu) / jnp.sqrt(var + _LN_EPS) * g + b

    feat = lax.conv_general_dilated(
        x, params["conv1_w"], (patch_size, patch_size), "VALID",
        dimension_numbers=("NCHW", "OIHW", "NCHW"), precision=HI)
    tokens = feat.reshape(B, D, -1).transpose(0, 2, 1)               # (B, n_patch, D)
    cls = jnp.broadcast_to(params["class_embedding"].reshape(1, 1, D), (B, 1, D))
    h = jnp.concatenate([cls, tokens], axis=1) + params["pos_embedding"][None]
    h = ln(h, *params["ln_pre"])

    for blk in params["blocks"]:
        y = ln(h, *blk["ln_1"])
        qkv = jnp.matmul(y, blk["w_qkv"], precision=HI) + blk["b_qkv"]
        q, k, v = jnp.split(qkv, 3, axis=-1)
        sh = lambda t: t.reshape(B, -1, heads, dh).transpose(0, 2, 1, 3)
        qh, kh, vh = sh(q), sh(k), sh(v)
        s = jnp.einsum("bhqd,bhkd->bhqk", qh, kh, precision=HI) / (dh ** 0.5)
        p = jax.nn.softmax(s, axis=-1)
        o = jnp.einsum("bhqk,bhkd->bhqd", p, vh, precision=HI)
        o = o.transpose(0, 2, 1, 3).reshape(B, -1, D)
        h = h + jnp.matmul(o, blk["w_out"], precision=HI) + blk["b_out"]
        y = ln(h, *blk["ln_2"])
        m = jnp.matmul(y, blk["w_fc"], precision=HI) + blk["b_fc"]
        m = m * jax.nn.sigmoid(1.702 * m)
        h = h + jnp.matmul(m, blk["w_proj"], precision=HI) + blk["b_proj"]

    cls_out = ln(h[:, 0, :], *params["ln_post"])
    return jnp.matmul(cls_out, params["proj"], precision=HI)


# ---------------------------------- main --------------------------------------


def make_params(key, *, in_ch, width, layers, heads, patch_size, input_resolution,
                output_dim):
    n_tok = (input_resolution // patch_size) ** 2 + 1
    keys = iter(jax.random.split(key, 8 + 12 * layers))

    def nrm(shape, scale):
        return jax.random.normal(next(keys), shape, jnp.float32) * scale

    def ln_p(dim):
        g = 1.0 + 0.1 * jax.random.normal(next(keys), (dim,), jnp.float32)
        b = 0.1 * jax.random.normal(next(keys), (dim,), jnp.float32)
        return (g, b)

    blocks = []
    for _ in range(layers):
        blocks.append({
            "ln_1": ln_p(width),
            "w_qkv": nrm((width, 3 * width), 0.08),      # (in, out) layout
            "b_qkv": nrm((3 * width,), 0.02),
            "w_out": nrm((width, width), 0.08),
            "b_out": nrm((width,), 0.02),
            "ln_2": ln_p(width),
            "w_fc": nrm((width, 4 * width), 0.08),
            "b_fc": nrm((4 * width,), 0.02),
            "w_proj": nrm((4 * width, width), 0.08),
            "b_proj": nrm((width,), 0.02),
        })
    return {
        "conv1_w": nrm((width, in_ch, patch_size, patch_size), 0.05),
        "class_embedding": nrm((width,), width ** -0.5),
        "pos_embedding": nrm((n_tok, width), width ** -0.5),
        "ln_pre": ln_p(width),
        "blocks": blocks,
        "ln_post": ln_p(width),
        "proj": nrm((width, output_dim), width ** -0.5),
    }


if __name__ == "__main__":
    B, in_ch = 2, 3
    input_resolution, patch_size = 16, 8
    width, layers, heads, output_dim = 32, 2, 4, 16

    root = jax.random.PRNGKey(0)
    k_params, k_x = jax.random.split(root)
    params = make_params(
        k_params, in_ch=in_ch, width=width, layers=layers, heads=heads,
        patch_size=patch_size, input_resolution=input_resolution,
        output_dim=output_dim)
    x = jax.random.normal(k_x, (B, in_ch, input_resolution, input_resolution),
                          jnp.float32)

    fwd = jax.jit(functools.partial(vit_forward, patch_size=patch_size, heads=heads))
    out = jax.block_until_ready(fwd(x, params))
    assert out.shape == (B, output_dim), out.shape

    # bf16 MXU operands / bf16 intermediates => expected numerics drift vs. the
    # f32 HIGHEST-precision reference; tolerance relaxed accordingly.
    ref = vit_reference(x, params, patch_size=patch_size, heads=heads)
    np.testing.assert_allclose(np.asarray(out), np.asarray(ref), rtol=3e-2, atol=3e-2)

    print("KERNEL_OK")
</pallas_src>

<mosaic_0001>
module attributes {stable_mosaic.version = 11 : i64} {
  func.func @_add_pos_ln_kernel(%arg0: i32, %arg1: memref<1x5x32xf32, #tpu.memory_space<vmem>>, %arg2: memref<5x32xf32, #tpu.memory_space<vmem>>, %arg3: memref<1x32xf32, #tpu.memory_space<vmem>>, %arg4: memref<1x32xf32, #tpu.memory_space<vmem>>, %arg5: memref<1x5x32xf32, #tpu.memory_space<vmem>>) attributes {dimension_semantics = [#tpu.dimension_semantics<parallel>], iteration_bounds = array<i64: 2>, scalar_prefetch = 0 : i64, scratch_operands = 0 : i64, tpu.core_type = #tpu.core_type<tc>, window_params = [{transform_indices = @transform_0, window_bounds = array<i64: 1, 5, 32>}, {pipeline_mode = #tpu.pipeline_mode<synchronous>, transform_indices = @transform_1, window_bounds = array<i64: 5, 32>}, {pipeline_mode = #tpu.pipeline_mode<synchronous>, transform_indices = @transform_2, window_bounds = array<i64: 1, 32>}, {pipeline_mode = #tpu.pipeline_mode<synchronous>, transform_indices = @transform_3, window_bounds = array<i64: 1, 32>}, {transform_indices = @transform_4, window_bounds = array<i64: 1, 5, 32>}]} {
    %c0 = arith.constant 0 : index
    %c0_0 = arith.constant 0 : index
    %c0_1 = arith.constant 0 : index
    %0 = vector.load %arg1[%c0, %c0_0, %c0_1] : memref<1x5x32xf32, #tpu.memory_space<vmem>>, vector<1x5x32xf32>
    %1 = vector.shape_cast %0 : vector<1x5x32xf32> to vector<5x32xf32>
    %c0_2 = arith.constant 0 : index
    %c0_3 = arith.constant 0 : index
    %2 = vector.load %arg2[%c0_2, %c0_3] : memref<5x32xf32, #tpu.memory_space<vmem>>, vector<5x32xf32>
    %3 = arith.addf %1, %2 : vector<5x32xf32>
    %cst = arith.constant dense<0.000000e+00> : vector<5xf32>
    %4 = vector.multi_reduction <add>, %3, %cst [1] : vector<5x32xf32> to vector<5xf32>
    %5 = vector.shape_cast %4 : vector<5xf32> to vector<5x1xf32>
    %cst_4 = arith.constant 3.200000e+01 : f32
    %6 = vector.broadcast %cst_4 : f32 to vector<5x1xf32>
    %7 = arith.divf %5, %6 : vector<5x1xf32>
    %8 = vector.broadcast %7 : vector<5x1xf32> to vector<5x32xf32>
    %9 = arith.subf %3, %8 : vector<5x32xf32>
    %10 = arith.mulf %9, %9 : vector<5x32xf32>
    %cst_5 = arith.constant dense<0.000000e+00> : vector<5xf32>
    %11 = vector.multi_reduction <add>, %10, %cst_5 [1] : vector<5x32xf32> to vector<5xf32>
    %12 = vector.shape_cast %11 : vector<5xf32> to vector<5x1xf32>
    %cst_6 = arith.constant 3.200000e+01 : f32
    %13 = vector.broadcast %cst_6 : f32 to vector<5x1xf32>
    %14 = arith.divf %12, %13 : vector<5x1xf32>
    %15 = vector.broadcast %7 : vector<5x1xf32> to vector<5x32xf32>
    %16 = arith.subf %3, %15 : vector<5x32xf32>
    %cst_7 = arith.constant 9.99999974E-6 : f32
    %17 = vector.broadcast %cst_7 : f32 to vector<5x1xf32>
    %18 = arith.addf %14, %17 : vector<5x1xf32>
    %19 = math.rsqrt %18 : vector<5x1xf32>
    %20 = vector.broadcast %19 : vector<5x1xf32> to vector<5x32xf32>
    %21 = arith.mulf %16, %20 : vector<5x32xf32>
    %c0_8 = arith.constant 0 : index
    %c0_9 = arith.constant 0 : index
    %22 = vector.load %arg3[%c0_8, %c0_9] : memref<1x32xf32, #tpu.memory_space<vmem>>, vector<1x32xf32>
    %23 = vector.broadcast %22 : vector<1x32xf32> to vector<5x32xf32>
    %24 = arith.mulf %21, %23 : vector<5x32xf32>
    %c0_10 = arith.constant 0 : index
    %c0_11 = arith.constant 0 : index
    %25 = vector.load %arg4[%c0_10, %c0_11] : memref<1x32xf32, #tpu.memory_space<vmem>>, vector<1x32xf32>
    %26 = vector.broadcast %25 : vector<1x32xf32> to vector<5x32xf32>
    %27 = arith.addf %24, %26 : vector<5x32xf32>
    %c0_12 = arith.constant 0 : index
    %c0_13 = arith.constant 0 : index
    %c0_14 = arith.constant 0 : index
    %28 = vector.load %arg5[%c0_12, %c0_13, %c0_14] : memref<1x5x32xf32, #tpu.memory_space<vmem>>, vector<1x5x32xf32>
    %29 = vector.shape_cast %28 : vector<1x5x32xf32> to vector<5x32xf32>
    %30 = vector.shape_cast %27 : vector<5x32xf32> to vector<1x5x32xf32>
    tpu.vector_store %arg5[%c0_12, %c0_13, %c0_14], %30 {strides = array<i32>} : memref<1x5x32xf32, #tpu.memory_space<vmem>>, vector<1x5x32xf32>,
    return
  }
  func.func @transform_0(%arg0: i32) -> (i32, i32, i32) {
    %c0_i32 = arith.constant 0 : i32
    %c0_i32_0 = arith.constant 0 : i32
    %c0_i32_1 = arith.constant 0 : i32
    return %arg0, %c0_i32, %c0_i32_0 : i32, i32, i32
  }
  func.func @transform_1(%arg0: i32) -> (i32, i32) {
    %c0_i32 = arith.constant 0 : i32
    %c0_i32_0 = arith.constant 0 : i32
    %c0_i32_1 = arith.constant 0 : i32
    return %c0_i32, %c0_i32_0 : i32, i32
  }
  func.func @transform_2(%arg0: i32) -> (i32, i32) {
    %c0_i32 = arith.constant 0 : i32
    %c0_i32_0 = arith.constant 0 : i32
    %c0_i32_1 = arith.constant 0 : i32
    return %c0_i32, %c0_i32_0 : i32, i32
  }
  func.func @transform_3(%arg0: i32) -> (i32, i32) {
    %c0_i32 = arith.constant 0 : i32
    %c0_i32_0 = arith.constant 0 : i32
    %c0_i32_1 = arith.constant 0 : i32
    return %c0_i32, %c0_i32_0 : i32, i32
  }
  func.func @transform_4(%arg0: i32) -> (i32, i32, i32) {
    %c0_i32 = arith.constant 0 : i32
    %c0_i32_0 = arith.constant 0 : i32
    %c0_i32_1 = arith.constant 0 : i32
    return %arg0, %c0_i32, %c0_i32_0 : i32, i32, i32
  }
}

module attributes {stable_mosaic.version = 11 : i64} {
  func.func @_ln_matmul_kernel(%arg0: i32, %arg1: i32, %arg2: memref<10x32xf32, #tpu.memory_space<vmem>>, %arg3: memref<1x32xf32, #tpu.memory_space<vmem>>, %arg4: memref<1x32xf32, #tpu.memory_space<vmem>>, %arg5: memref<32x96xbf16, #tpu.memory_space<vmem>>, %arg6: memref<1x96xf32, #tpu.memory_space<vmem>>, %arg7: memref<10x96xbf16, #tpu.memory_space<vmem>>, %arg8: memref<10x32xbf16, #tpu.memory_space<vmem>>) attributes {dimension_semantics = [#tpu.dimension_semantics<parallel>, #tpu.dimension_semantics<arbitrary>], iteration_bounds = array<i64: 1, 1>, scalar_prefetch = 0 : i64, scratch_operands = 1 : i64, tpu.core_type = #tpu.core_type<tc>, window_params = [{transform_indices = @transform_0, window_bounds = array<i64: 10, 32>}, {pipeline_mode = #tpu.pipeline_mode<synchronous>, transform_indices = @transform_1, window_bounds = array<i64: 1, 32>}, {pipeline_mode = #tpu.pipeline_mode<synchronous>, transform_indices = @transform_2, window_bounds = array<i64: 1, 32>}, {transform_indices = @transform_3, window_bounds = array<i64: 32, 96>}, {transform_indices = @transform_4, window_bounds = array<i64: 1, 96>}, {transform_indices = @transform_5, window_bounds = array<i64: 10, 96>}]} {
    %c0_i32 = arith.constant 0 : i32
    %0 = arith.cmpi eq, %arg1, %c0_i32 : i32
    %1 = arith.extui %0 : i1 to i32
    %c0_i32_0 = arith.constant 0 : i32
    %2 = arith.cmpi ne, %1, %c0_i32_0 : i32
    scf.if %2 {
      %c0_8 = arith.constant 0 : index
      %c0_9 = arith.constant 0 : index
      %11 = vector.load %arg2[%c0_8, %c0_9] : memref<10x32xf32, #tpu.memory_space<vmem>>, vector<10x32xf32>
      %cst_10 = arith.constant dense<0.000000e+00> : vector<10xf32>
      %12 = vector.multi_reduction <add>, %11, %cst_10 [1] : vector<10x32xf32> to vector<10xf32>
      %13 = vector.shape_cast %12 : vector<10xf32> to vector<10x1xf32>
      %cst_11 = arith.constant 3.200000e+01 : f32
      %14 = vector.broadcast %cst_11 : f32 to vector<10x1xf32>
      %15 = arith.divf %13, %14 : vector<10x1xf32>
      %16 = vector.broadcast %15 : vector<10x1xf32> to vector<10x32xf32>
      %17 = arith.subf %11, %16 : vector<10x32xf32>
      %18 = arith.mulf %17, %17 : vector<10x32xf32>
      %cst_12 = arith.constant dense<0.000000e+00> : vector<10xf32>
      %19 = vector.multi_reduction <add>, %18, %cst_12 [1] : vector<10x32xf32> to vector<10xf32>
      %20 = vector.shape_cast %19 : vector<10xf32> to vector<10x1xf32>
      %cst_13 = arith.constant 3.200000e+01 : f32
      %21 = vector.broadcast %cst_13 : f32 to vector<10x1xf32>
      %22 = arith.divf %20, %21 : vector<10x1xf32>
      %23 = vector.broadcast %15 : vector<10x1xf32> to vector<10x32xf32>
      %24 = arith.subf %11, %23 : vector<10x32xf32>
      %cst_14 = arith.constant 9.99999974E-6 : f32
      %25 = vector.broadcast %cst_14 : f32 to vector<10x1xf32>
      %26 = arith.addf %22, %25 : vector<10x1xf32>
      %27 = math.rsqrt %26 : vector<10x1xf32>
      %28 = vector.broadcast %27 : vector<10x1xf32> to vector<10x32xf32>
      %29 = arith.mulf %24, %28 : vector<10x32xf32>
      %c0_15 = arith.constant 0 : index
      %c0_16 = arith.constant 0 : index
      %30 = vector.load %arg3[%c0_15, %c0_16] : memref<1x32xf32, #tpu.memory_space<vmem>>, vector<1x32xf32>
      %31 = vector.broadcast %30 : vector<1x32xf32> to vector<10x32xf32>
      %32 = arith.mulf %29, %31 : vector<10x32xf32>
      %c0_17 = arith.constant 0 : index
      %c0_18 = arith.constant 0 : index
      %33 = vector.load %arg4[%c0_17, %c0_18] : memref<1x32xf32, #tpu.memory_space<vmem>>, vector<1x32xf32>
      %34 = vector.broadcast %33 : vector<1x32xf32> to vector<10x32xf32>
      %35 = arith.addf %32, %34 : vector<10x32xf32>
      %36 = arith.truncf %35 : vector<10x32xf32> to vector<10x32xbf16>
      %c0_19 = arith.constant 0 : index
      %c0_20 = arith.constant 0 : index
      %37 = vector.load %arg8[%c0_19, %c0_20] : memref<10x32xbf16, #tpu.memory_space<vmem>>, vector<10x32xbf16>
      tpu.vector_store %arg8[%c0_19, %c0_20], %36 {strides = array<i32>} : memref<10x32xbf16, #tpu.memory_space<vmem>>, vector<10x32xbf16>,
    } else {
    }
    %c0 = arith.constant 0 : index
    %c0_1 = arith.constant 0 : index
    %3 = vector.load %arg8[%c0, %c0_1] : memref<10x32xbf16, #tpu.memory_space<vmem>>, vector<10x32xbf16>
    %c0_2 = arith.constant 0 : index
    %c0_3 = arith.constant 0 : index
    %4 = vector.load %arg5[%c0_2, %c0_3] : memref<32x96xbf16, #tpu.memory_space<vmem>>, vector<32x96xbf16>
    %cst = arith.constant dense<0.000000e+00> : vector<10x96xf32>
    %5 = tpu.matmul %3, %4, %cst {dimension_numbers = #tpu.dot_dimension_numbers<[1], [0], [0], [1], [0, 0, 1, 1], [], []>} : vector<10x32xbf16>, vector<32x96xbf16>, vector<10x96xf32> -> vector<10x96xf32>
    %c0_4 = arith.constant 0 : index
    %c0_5 = arith.constant 0 : index
    %6 = vector.load %arg6[%c0_4, %c0_5] : memref<1x96xf32, #tpu.memory_space<vmem>>, vector<1x96xf32>
    %7 = vector.broadcast %6 : vector<1x96xf32> to vector<10x96xf32>
    %8 = arith.addf %5, %7 : vector<10x96xf32>
    %9 = arith.truncf %8 : vector<10x96xf32> to vector<10x96xbf16>
    %c0_6 = arith.constant 0 : index
    %c0_7 = arith.constant 0 : index
    %10 = vector.load %arg7[%c0_6, %c0_7] : memref<10x96xbf16, #tpu.memory_space<vmem>>, vector<10x96xbf16>
    tpu.vector_store %arg7[%c0_6, %c0_7], %9 {strides = array<i32>} : memref<10x96xbf16, #tpu.memory_space<vmem>>, vector<10x96xbf16>,
    return
  }
  func.func @transform_0(%arg0: i32, %arg1: i32) -> (i32, i32) {
    %c0_i32 = arith.constant 0 : i32
    %c0_i32_0 = arith.constant 0 : i32
    return %arg0, %c0_i32 : i32, i32
  }
  func.func @transform_1(%arg0: i32, %arg1: i32) -> (i32, i32) {
    %c0_i32 = arith.constant 0 : i32
    %c0_i32_0 = arith.constant 0 : i32
    %c0_i32_1 = arith.constant 0 : i32
    return %c0_i32, %c0_i32_0 : i32, i32
  }
  func.func @transform_2(%arg0: i32, %arg1: i32) -> (i32, i32) {
    %c0_i32 = arith.constant 0 : i32
    %c0_i32_0 = arith.constant 0 : i32
    %c0_i32_1 = arith.constant 0 : i32
    return %c0_i32, %c0_i32_0 : i32, i32
  }
  func.func @transform_3(%arg0: i32, %arg1: i32) -> (i32, i32) {
    %c0_i32 = arith.constant 0 : i32
    %c0_i32_0 = arith.constant 0 : i32
    return %c0_i32, %arg1 : i32, i32
  }
  func.func @transform_4(%arg0: i32, %arg1: i32) -> (i32, i32) {
    %c0_i32 = arith.constant 0 : i32
    %c0_i32_0 = arith.constant 0 : i32
    return %c0_i32, %arg1 : i32, i32
  }
  func.func @transform_5(%arg0: i32, %arg1: i32) -> (i32, i32) {
    %c0_i32 = arith.constant 0 : i32
    return %arg0, %arg1 : i32, i32
  }
}

module attributes {stable_mosaic.version = 11 : i64} {
  func.func @_matmul_bias_kernel(%arg0: i32, %arg1: i32, %arg2: i32, %arg3: memref<8x192xf32, #tpu.memory_space<vmem>>, %arg4: memref<192x32xbf16, #tpu.memory_space<vmem>>, %arg5: memref<1x32xf32, #tpu.memory_space<vmem>>, %arg6: memref<8x32xf32, #tpu.memory_space<vmem>>, %arg7: memref<8x32xf32, #tpu.memory_space<vmem>>) attributes {dimension_semantics = [#tpu.dimension_semantics<parallel>, #tpu.dimension_semantics<parallel>, #tpu.dimension_semantics<arbitrary>], iteration_bounds = array<i64: 1, 1, 1>, scalar_prefetch = 0 : i64, scratch_operands = 1 : i64, tpu.core_type = #tpu.core_type<tc>, window_params = [{transform_indices = @transform_0, window_bounds = array<i64: 8, 192>}, {transform_indices = @transform_1, window_bounds = array<i64: 192, 32>}, {transform_indices = @transform_2, window_bounds = array<i64: 1, 32>}, {transform_indices = @transform_3, window_bounds = array<i64: 8, 32>}]} {
    %c0_i32 = arith.constant 0 : i32
    %0 = arith.cmpi eq, %arg2, %c0_i32 : i32
    %1 = arith.extui %0 : i1 to i32
    %c0_i32_0 = arith.constant 0 : i32
    %2 = arith.cmpi ne, %1, %c0_i32_0 : i32
    scf.if %2 {
      %cst_10 = arith.constant 0.000000e+00 : f32
      %13 = vector.broadcast %cst_10 : f32 to vector<8x32xf32>
      %c0_11 = arith.constant 0 : index
      %c0_12 = arith.constant 0 : index
      %14 = vector.load %arg7[%c0_11, %c0_12] : memref<8x32xf32, #tpu.memory_space<vmem>>, vector<8x32xf32>
      tpu.vector_store %arg7[%c0_11, %c0_12], %13 {strides = array<i32>} : memref<8x32xf32, #tpu.memory_space<vmem>>, vector<8x32xf32>,
    } else {
    }
    %c0 = arith.constant 0 : index
    %c0_1 = arith.constant 0 : index
    %3 = vector.load %arg7[%c0, %c0_1] : memref<8x32xf32, #tpu.memory_space<vmem>>, vector<8x32xf32>
    %c0_2 = arith.constant 0 : index
    %c0_3 = arith.constant 0 : index
    %4 = vector.load %arg3[%c0_2, %c0_3] : memref<8x192xf32, #tpu.memory_space<vmem>>, vector<8x192xf32>
    %5 = arith.truncf %4 : vector<8x192xf32> to vector<8x192xbf16>
    %c0_4 = arith.constant 0 : index
    %c0_5 = arith.constant 0 : index
    %6 = vector.load %arg4[%c0_4, %c0_5] : memref<192x32xbf16, #tpu.memory_space<vmem>>, vector<192x32xbf16>
    %cst = arith.constant dense<0.000000e+00> : vector<8x32xf32>
    %7 = tpu.matmul %5, %6, %cst {dimension_numbers = #tpu.dot_dimension_numbers<[1], [0], [0], [1], [0, 0, 1, 1], [], []>} : vector<8x192xbf16>, vector<192x32xbf16>, vector<8x32xf32> -> vector<8x32xf32>
    %8 = arith.addf %3, %7 : vector<8x32xf32>
    %c0_6 = arith.constant 0 : index
    %c0_7 = arith.constant 0 : index
    %9 = vector.load %arg7[%c0_6, %c0_7] : memref<8x32xf32, #tpu.memory_space<vmem>>, vector<8x32xf32>
    tpu.vector_store %arg7[%c0_6, %c0_7], %8 {strides = array<i32>} : memref<8x32xf32, #tpu.memory_space<vmem>>, vector<8x32xf32>,
    %c0_i32_8 = arith.constant 0 : i32
    %10 = arith.cmpi eq, %arg2, %c0_i32_8 : i32
    %11 = arith.extui %10 : i1 to i32
    %c0_i32_9 = arith.constant 0 : i32
    %12 = arith.cmpi ne, %11, %c0_i32_9 : i32
    scf.if %12 {
      %c0_10 = arith.constant 0 : index
      %c0_11 = arith.constant 0 : index
      %13 = vector.load %arg7[%c0_10, %c0_11] : memref<8x32xf32, #tpu.memory_space<vmem>>, vector<8x32xf32>
      %c0_12 = arith.constant 0 : index
      %c0_13 = arith.constant 0 : index
      %14 = vector.load %arg5[%c0_12, %c0_13] : memref<1x32xf32, #tpu.memory_space<vmem>>, vector<1x32xf32>
      %15 = vector.broadcast %14 : vector<1x32xf32> to vector<8x32xf32>
      %16 = arith.addf %13, %15 : vector<8x32xf32>
      %c0_14 = arith.constant 0 : index
      %c0_15 = arith.constant 0 : index
      %17 = vector.load %arg6[%c0_14, %c0_15] : memref<8x32xf32, #tpu.memory_space<vmem>>, vector<8x32xf32>
      tpu.vector_store %arg6[%c0_14, %c0_15], %16 {strides = array<i32>} : memref<8x32xf32, #tpu.memory_space<vmem>>, vector<8x32xf32>,
    } else {
    }
    return
  }
  func.func @transform_0(%arg0: i32, %arg1: i32, %arg2: i32) -> (i32, i32) {
    %c0_i32 = arith.constant 0 : i32
    return %arg0, %arg2 : i32, i32
  }
  func.func @transform_1(%arg0: i32, %arg1: i32, %arg2: i32) -> (i32, i32) {
    %c0_i32 = arith.constant 0 : i32
    return %arg2, %arg1 : i32, i32
  }
  func.func @transform_2(%arg0: i32, %arg1: i32, %arg2: i32) -> (i32, i32) {
    %c0_i32 = arith.constant 0 : i32
    %c0_i32_0 = arith.constant 0 : i32
    return %c0_i32, %arg1 : i32, i32
  }
  func.func @transform_3(%arg0: i32, %arg1: i32, %arg2: i32) -> (i32, i32) {
    %c0_i32 = arith.constant 0 : i32
    return %arg0, %arg1 : i32, i32
  }
}

module attributes {stable_mosaic.version = 11 : i64} {
  func.func @_attn_proj_kernel(%arg0: i32, %arg1: memref<1x5x96xbf16, #tpu.memory_space<vmem>>, %arg2: memref<32x32xbf16, #tpu.memory_space<vmem>>, %arg3: memref<1x32xf32, #tpu.memory_space<vmem>>, %arg4: memref<1x5x32xf32, #tpu.memory_space<vmem>>, %arg5: memref<1x5x32xf32, #tpu.memory_space<vmem>>) attributes {dimension_semantics = [#tpu.dimension_semantics<parallel>], iteration_bounds = array<i64: 2>, scalar_prefetch = 0 : i64, scratch_operands = 0 : i64, tpu.core_type = #tpu.core_type<tc>, window_params = [{transform_indices = @transform_0, window_bounds = array<i64: 1, 5, 96>}, {pipeline_mode = #tpu.pipeline_mode<synchronous>, transform_indices = @transform_1, window_bounds = array<i64: 32, 32>}, {pipeline_mode = #tpu.pipeline_mode<synchronous>, transform_indices = @transform_2, window_bounds = array<i64: 1, 32>}, {transform_indices = @transform_3, window_bounds = array<i64: 1, 5, 32>}, {transform_indices = @transform_4, window_bounds = array<i64: 1, 5, 32>}]} {
    %c0 = arith.constant 0 : index
    %c0_0 = arith.constant 0 : index
    %c0_1 = arith.constant 0 : index
    %0 = vector.load %arg1[%c0, %c0_0, %c0_1] : memref<1x5x96xbf16, #tpu.memory_space<vmem>>, vector<1x5x96xbf16>
    %1 = vector.shape_cast %0 : vector<1x5x96xbf16> to vector<5x96xbf16>
    %c0_2 = arith.constant 0 : index
    %c0_3 = arith.constant 0 : index
    %c0_4 = arith.constant 0 : index
    %2 = vector.load %arg4[%c0_2, %c0_3, %c0_4] : memref<1x5x32xf32, #tpu.memory_space<vmem>>, vector<1x5x32xf32>
    %3 = vector.shape_cast %2 : vector<1x5x32xf32> to vector<5x32xf32>
    %c0_5 = arith.constant 0 : index
    %c0_6 = arith.constant 0 : index
    %4 = vector.load %arg3[%c0_5, %c0_6] : memref<1x32xf32, #tpu.memory_space<vmem>>, vector<1x32xf32>
    %5 = vector.broadcast %4 : vector<1x32xf32> to vector<5x32xf32>
    %6 = arith.addf %3, %5 : vector<5x32xf32>
    %7 = vector.extract_strided_slice %1 {offsets = [0, 0], sizes = [5, 8], strides = [1, 1]} : vector<5x96xbf16> to vector<5x8xbf16>
    %8 = vector.extract_strided_slice %1 {offsets = [0, 32], sizes = [5, 8], strides = [1, 1]} : vector<5x96xbf16> to vector<5x8xbf16>
    %9 = vector.extract_strided_slice %1 {offsets = [0, 64], sizes = [5, 8], strides = [1, 1]} : vector<5x96xbf16> to vector<5x8xbf16>
    %cst = arith.constant dense<0.000000e+00> : vector<5x5xf32>
    %10 = tpu.matmul %7, %8, %cst {dimension_numbers = #tpu.dot_dimension_numbers<[1], [1], [0], [0], [0, 0, 1, 0], [], []>} : vector<5x8xbf16>, vector<5x8xbf16>, vector<5x5xf32> -> vector<5x5xf32>
    %cst_7 = arith.constant 0.353553385 : f32
    %11 = vector.broadcast %cst_7 : f32 to vector<5x5xf32>
    %12 = arith.mulf %10, %11 : vector<5x5xf32>
    %cst_8 = arith.constant dense<0xFF800000> : vector<5xf32>
    %13 = vector.multi_reduction <maximumf>, %12, %cst_8 [1] : vector<5x5xf32> to vector<5xf32>
    %14 = vector.shape_cast %13 : vector<5xf32> to vector<5x1xf32>
    %15 = vector.broadcast %14 : vector<5x1xf32> to vector<5x5xf32>
    %16 = arith.subf %12, %15 : vector<5x5xf32>
    %17 = math.exp %16 : vector<5x5xf32>
    %cst_9 = arith.constant dense<0.000000e+00> : vector<5xf32>
    %18 = vector.multi_reduction <add>, %17, %cst_9 [1] : vector<5x5xf32> to vector<5xf32>
    %19 = vector.shape_cast %18 : vector<5xf32> to vector<5x1xf32>
    %20 = tpu.reciprocal %19 {approx = true} : vector<5x1xf32> -> vector<5x1xf32>
    %21 = vector.broadcast %20 : vector<5x1xf32> to vector<5x5xf32>
    %22 = arith.mulf %17, %21 : vector<5x5xf32>
    %23 = arith.truncf %22 : vector<5x5xf32> to vector<5x5xbf16>
    %cst_10 = arith.constant dense<0.000000e+00> : vector<5x8xf32>
    %24 = tpu.matmul %23, %9, %cst_10 {dimension_numbers = #tpu.dot_dimension_numbers<[1], [0], [0], [1], [0, 0, 1, 1], [], []>} : vector<5x5xbf16>, vector<5x8xbf16>, vector<5x8xf32> -> vector<5x8xf32>
    %25 = arith.truncf %24 : vector<5x8xf32> to vector<5x8xbf16>
    %c0_11 = arith.constant 0 : index
    %c0_12 = arith.constant 0 : index
    %26 = vector.load %arg2[%c0_11, %c0_12] : memref<32x32xbf16, #tpu.memory_space<vmem>>, vector<8x32xbf16>
    %cst_13 = arith.constant dense<0.000000e+00> : vector<5x32xf32>
    %27 = tpu.matmul %25, %26, %cst_13 {dimension_numbers = #tpu.dot_dimension_numbers<[1], [0], [0], [1], [0, 0, 1, 1], [], []>} : vector<5x8xbf16>, vector<8x32xbf16>, vector<5x32xf32> -> vector<5x32xf32>
    %28 = arith.addf %6, %27 : vector<5x32xf32>
    %29 = vector.extract_strided_slice %1 {offsets = [0, 8], sizes = [5, 8], strides = [1, 1]} : vector<5x96xbf16> to vector<5x8xbf16>
    %30 = vector.extract_strided_slice %1 {offsets = [0, 40], sizes = [5, 8], strides = [1, 1]} : vector<5x96xbf16> to vector<5x8xbf16>
    %31 = vector.extract_strided_slice %1 {offsets = [0, 72], sizes = [5, 8], strides = [1, 1]} : vector<5x96xbf16> to vector<5x8xbf16>
    %cst_14 = arith.constant dense<0.000000e+00> : vector<5x5xf32>
    %32 = tpu.matmul %29, %30, %cst_14 {dimension_numbers = #tpu.dot_dimension_numbers<[1], [1], [0], [0], [0, 0, 1, 0], [], []>} : vector<5x8xbf16>, vector<5x8xbf16>, vector<5x5xf32> -> vector<5x5xf32>
    %cst_15 = arith.constant 0.353553385 : f32
    %33 = vector.broadcast %cst_15 : f32 to vector<5x5xf32>
    %34 = arith.mulf %32, %33 : vector<5x5xf32>
    %cst_16 = arith.constant dense<0xFF800000> : vector<5xf32>
    %35 = vector.multi_reduction <maximumf>, %34, %cst_16 [1] : vector<5x5xf32> to vector<5xf32>
    %36 = vector.shape_cast %35 : vector<5xf32> to vector<5x1xf32>
    %37 = vector.broadcast %36 : vector<5x1xf32> to vector<5x5xf32>
    %38 = arith.subf %34, %37 : vector<5x5xf32>
    %39 = math.exp %38 : vector<5x5xf32>
    %cst_17 = arith.constant dense<0.000000e+00> : vector<5xf32>
    %40 = vector.multi_reduction <add>, %39, %cst_17 [1] : vector<5x5xf32> to vector<5xf32>
    %41 = vector.shape_cast %40 : vector<5xf32> to vector<5x1xf32>
    %42 = tpu.reciprocal %41 {approx = true} : vector<5x1xf32> -> vector<5x1xf32>
    %43 = vector.broadcast %42 : vector<5x1xf32> to vector<5x5xf32>
    %44 = arith.mulf %39, %43 : vector<5x5xf32>
    %45 = arith.truncf %44 : vector<5x5xf32> to vector<5x5xbf16>
    %cst_18 = arith.constant dense<0.000000e+00> : vector<5x8xf32>
    %46 = tpu.matmul %45, %31, %cst_18 {dimension_numbers = #tpu.dot_dimension_numbers<[1], [0], [0], [1], [0, 0, 1, 1], [], []>} : vector<5x5xbf16>, vector<5x8xbf16>, vector<5x8xf32> -> vector<5x8xf32>
    %47 = arith.truncf %46 : vector<5x8xf32> to vector<5x8xbf16>
    %c8 = arith.constant 8 : index
    %c0_19 = arith.constant 0 : index
    %48 = vector.load %arg2[%c8, %c0_19] : memref<32x32xbf16, #tpu.memory_space<vmem>>, vector<8x32xbf16>
    %cst_20 = arith.constant dense<0.000000e+00> : vector<5x32xf32>
    %49 = tpu.matmul %47, %48, %cst_20 {dimension_numbers = #tpu.dot_dimension_numbers<[1], [0], [0], [1], [0, 0, 1, 1], [], []>} : vector<5x8xbf16>, vector<8x32xbf16>, vector<5x32xf32> -> vector<5x32xf32>
    %50 = arith.addf %28, %49 : vector<5x32xf32>
    %51 = vector.extract_strided_slice %1 {offsets = [0, 16], sizes = [5, 8], strides = [1, 1]} : vector<5x96xbf16> to vector<5x8xbf16>
    %52 = vector.extract_strided_slice %1 {offsets = [0, 48], sizes = [5, 8], strides = [1, 1]} : vector<5x96xbf16> to vector<5x8xbf16>
    %53 = vector.extract_strided_slice %1 {offsets = [0, 80], sizes = [5, 8], strides = [1, 1]} : vector<5x96xbf16> to vector<5x8xbf16>
    %cst_21 = arith.constant dense<0.000000e+00> : vector<5x5xf32>
    %54 = tpu.matmul %51, %52, %cst_21 {dimension_numbers = #tpu.dot_dimension_numbers<[1], [1], [0], [0], [0, 0, 1, 0], [], []>} : vector<5x8xbf16>, vector<5x8xbf16>, vector<5x5xf32> -> vector<5x5xf32>
    %cst_22 = arith.constant 0.353553385 : f32
    %55 = vector.broadcast %cst_22 : f32 to vector<5x5xf32>
    %56 = arith.mulf %54, %55 : vector<5x5xf32>
    %cst_23 = arith.constant dense<0xFF800000> : vector<5xf32>
    %57 = vector.multi_reduction <maximumf>, %56, %cst_23 [1] : vector<5x5xf32> to vector<5xf32>
    %58 = vector.shape_cast %57 : vector<5xf32> to vector<5x1xf32>
    %59 = vector.broadcast %58 : vector<5x1xf32> to vector<5x5xf32>
    %60 = arith.subf %56, %59 : vector<5x5xf32>
    %61 = math.exp %60 : vector<5x5xf32>
    %cst_24 = arith.constant dense<0.000000e+00> : vector<5xf32>
    %62 = vector.multi_reduction <add>, %61, %cst_24 [1] : vector<5x5xf32> to vector<5xf32>
    %63 = vector.shape_cast %62 : vector<5xf32> to vector<5x1xf32>
    %64 = tpu.reciprocal %63 {approx = true} : vector<5x1xf32> -> vector<5x1xf32>
    %65 = vector.broadcast %64 : vector<5x1xf32> to vector<5x5xf32>
    %66 = arith.mulf %61, %65 : vector<5x5xf32>
    %67 = arith.truncf %66 : vector<5x5xf32> to vector<5x5xbf16>
    %cst_25 = arith.constant dense<0.000000e+00> : vector<5x8xf32>
    %68 = tpu.matmul %67, %53, %cst_25 {dimension_numbers = #tpu.dot_dimension_numbers<[1], [0], [0], [1], [0, 0, 1, 1], [], []>} : vector<5x5xbf16>, vector<5x8xbf16>, vector<5x8xf32> -> vector<5x8xf32>
    %69 = arith.truncf %68 : vector<5x8xf32> to vector<5x8xbf16>
    %c16 = arith.constant 16 : index
    %c0_26 = arith.constant 0 : index
    %70 = vector.load %arg2[%c16, %c0_26] : memref<32x32xbf16, #tpu.memory_space<vmem>>, vector<8x32xbf16>
    %cst_27 = arith.constant dense<0.000000e+00> : vector<5x32xf32>
    %71 = tpu.matmul %69, %70, %cst_27 {dimension_numbers = #tpu.dot_dimension_numbers<[1], [0], [0], [1], [0, 0, 1, 1], [], []>} : vector<5x8xbf16>, vector<8x32xbf16>, vector<5x32xf32> -> vector<5x32xf32>
    %72 = arith.addf %50, %71 : vector<5x32xf32>
    %73 = vector.extract_strided_slice %1 {offsets = [0, 24], sizes = [5, 8], strides = [1, 1]} : vector<5x96xbf16> to vector<5x8xbf16>
    %74 = vector.extract_strided_slice %1 {offsets = [0, 56], sizes = [5, 8], strides = [1, 1]} : vector<5x96xbf16> to vector<5x8xbf16>
    %75 = vector.extract_strided_slice %1 {offsets = [0, 88], sizes = [5, 8], strides = [1, 1]} : vector<5x96xbf16> to vector<5x8xbf16>
    %cst_28 = arith.constant dense<0.000000e+00> : vector<5x5xf32>
    %76 = tpu.matmul %73, %74, %cst_28 {dimension_numbers = #tpu.dot_dimension_numbers<[1], [1], [0], [0], [0, 0, 1, 0], [], []>} : vector<5x8xbf16>, vector<5x8xbf16>, vector<5x5xf32> -> vector<5x5xf32>
    %cst_29 = arith.constant 0.353553385 : f32
    %77 = vector.broadcast %cst_29 : f32 to vector<5x5xf32>
    %78 = arith.mulf %76, %77 : vector<5x5xf32>
    %cst_30 = arith.constant dense<0xFF800000> : vector<5xf32>
    %79 = vector.multi_reduction <maximumf>, %78, %cst_30 [1] : vector<5x5xf32> to vector<5xf32>
    %80 = vector.shape_cast %79 : vector<5xf32> to vector<5x1xf32>
    %81 = vector.broadcast %80 : vector<5x1xf32> to vector<5x5xf32>
    %82 = arith.subf %78, %81 : vector<5x5xf32>
    %83 = math.exp %82 : vector<5x5xf32>
    %cst_31 = arith.constant dense<0.000000e+00> : vector<5xf32>
    %84 = vector.multi_reduction <add>, %83, %cst_31 [1] : vector<5x5xf32> to vector<5xf32>
    %85 = vector.shape_cast %84 : vector<5xf32> to vector<5x1xf32>
    %86 = tpu.reciprocal %85 {approx = true} : vector<5x1xf32> -> vector<5x1xf32>
    %87 = vector.broadcast %86 : vector<5x1xf32> to vector<5x5xf32>
    %88 = arith.mulf %83, %87 : vector<5x5xf32>
    %89 = arith.truncf %88 : vector<5x5xf32> to vector<5x5xbf16>
    %cst_32 = arith.constant dense<0.000000e+00> : vector<5x8xf32>
    %90 = tpu.matmul %89, %75, %cst_32 {dimension_numbers = #tpu.dot_dimension_numbers<[1], [0], [0], [1], [0, 0, 1, 1], [], []>} : vector<5x5xbf16>, vector<5x8xbf16>, vector<5x8xf32> -> vector<5x8xf32>
    %91 = arith.truncf %90 : vector<5x8xf32> to vector<5x8xbf16>
    %c24 = arith.constant 24 : index
    %c0_33 = arith.constant 0 : index
    %92 = vector.load %arg2[%c24, %c0_33] : memref<32x32xbf16, #tpu.memory_space<vmem>>, vector<8x32xbf16>
    %cst_34 = arith.constant dense<0.000000e+00> : vector<5x32xf32>
    %93 = tpu.matmul %91, %92, %cst_34 {dimension_numbers = #tpu.dot_dimension_numbers<[1], [0], [0], [1], [0, 0, 1, 1], [], []>} : vector<5x8xbf16>, vector<8x32xbf16>, vector<5x32xf32> -> vector<5x32xf32>
    %94 = arith.addf %72, %93 : vector<5x32xf32>
    %c0_35 = arith.constant 0 : index
    %c0_36 = arith.constant 0 : index
    %c0_37 = arith.constant 0 : index
    %95 = vector.load %arg5[%c0_35, %c0_36, %c0_37] : memref<1x5x32xf32, #tpu.memory_space<vmem>>, vector<1x5x32xf32>
    %96 = vector.shape_cast %95 : vector<1x5x32xf32> to vector<5x32xf32>
    %97 = vector.shape_cast %94 : vector<5x32xf32> to vector<1x5x32xf32>
    tpu.vector_store %arg5[%c0_35, %c0_36, %c0_37], %97 {strides = array<i32>} : memref<1x5x32xf32, #tpu.memory_space<vmem>>, vector<1x5x32xf32>,
    return
  }
  func.func @transform_0(%arg0: i32) -> (i32, i32, i32) {
    %c0_i32 = arith.constant 0 : i32
    %c0_i32_0 = arith.constant 0 : i32
    %c0_i32_1 = arith.constant 0 : i32
    return %arg0, %c0_i32, %c0_i32_0 : i32, i32, i32
  }
  func.func @transform_1(%arg0: i32) -> (i32, i32) {
    %c0_i32 = arith.constant 0 : i32
    %c0_i32_0 = arith.constant 0 : i32
    %c0_i32_1 = arith.constant 0 : i32
    return %c0_i32, %c0_i32_0 : i32, i32
  }
  func.func @transform_2(%arg0: i32) -> (i32, i32) {
    %c0_i32 = arith.constant 0 : i32
    %c0_i32_0 = arith.constant 0 : i32
    %c0_i32_1 = arith.constant 0 : i32
    return %c0_i32, %c0_i32_0 : i32, i32
  }
  func.func @transform_3(%arg0: i32) -> (i32, i32, i32) {
    %c0_i32 = arith.constant 0 : i32
    %c0_i32_0 = arith.constant 0 : i32
    %c0_i32_1 = arith.constant 0 : i32
    return %arg0, %c0_i32, %c0_i32_0 : i32, i32, i32
  }
  func.func @transform_4(%arg0: i32) -> (i32, i32, i32) {
    %c0_i32 = arith.constant 0 : i32
    %c0_i32_0 = arith.constant 0 : i32
    %c0_i32_1 = arith.constant 0 : i32
    return %arg0, %c0_i32, %c0_i32_0 : i32, i32, i32
  }
}

module attributes {stable_mosaic.version = 11 : i64} {
  func.func @_ln_matmul_kernel(%arg0: i32, %arg1: i32, %arg2: memref<10x32xf32, #tpu.memory_space<vmem>>, %arg3: memref<1x32xf32, #tpu.memory_space<vmem>>, %arg4: memref<1x32xf32, #tpu.memory_space<vmem>>, %arg5: memref<32x128xbf16, #tpu.memory_space<vmem>>, %arg6: memref<1x128xf32, #tpu.memory_space<vmem>>, %arg7: memref<10x128xbf16, #tpu.memory_space<vmem>>, %arg8: memref<10x32xbf16, #tpu.memory_space<vmem>>) attributes {dimension_semantics = [#tpu.dimension_semantics<parallel>, #tpu.dimension_semantics<arbitrary>], iteration_bounds = array<i64: 1, 1>, scalar_prefetch = 0 : i64, scratch_operands = 1 : i64, tpu.core_type = #tpu.core_type<tc>, window_params = [{transform_indices = @transform_0, window_bounds = array<i64: 10, 32>}, {pipeline_mode = #tpu.pipeline_mode<synchronous>, transform_indices = @transform_1, window_bounds = array<i64: 1, 32>}, {pipeline_mode = #tpu.pipeline_mode<synchronous>, transform_indices = @transform_2, window_bounds = array<i64: 1, 32>}, {transform_indices = @transform_3, window_bounds = array<i64: 32, 128>}, {transform_indices = @transform_4, window_bounds = array<i64: 1, 128>}, {transform_indices = @transform_5, window_bounds = array<i64: 10, 128>}]} {
    %c0_i32 = arith.constant 0 : i32
    %0 = arith.cmpi eq, %arg1, %c0_i32 : i32
    %1 = arith.extui %0 : i1 to i32
    %c0_i32_0 = arith.constant 0 : i32
    %2 = arith.cmpi ne, %1, %c0_i32_0 : i32
    scf.if %2 {
      %c0_10 = arith.constant 0 : index
      %c0_11 = arith.constant 0 : index
      %19 = vector.load %arg2[%c0_10, %c0_11] : memref<10x32xf32, #tpu.memory_space<vmem>>, vector<10x32xf32>
      %cst_12 = arith.constant dense<0.000000e+00> : vector<10xf32>
      %20 = vector.multi_reduction <add>, %19, %cst_12 [1] : vector<10x32xf32> to vector<10xf32>
      %21 = vector.shape_cast %20 : vector<10xf32> to vector<10x1xf32>
      %cst_13 = arith.constant 3.200000e+01 : f32
      %22 = vector.broadcast %cst_13 : f32 to vector<10x1xf32>
      %23 = arith.divf %21, %22 : vector<10x1xf32>
      %24 = vector.broadcast %23 : vector<10x1xf32> to vector<10x32xf32>
      %25 = arith.subf %19, %24 : vector<10x32xf32>
      %26 = arith.mulf %25, %25 : vector<10x32xf32>
      %cst_14 = arith.constant dense<0.000000e+00> : vector<10xf32>
      %27 = vector.multi_reduction <add>, %26, %cst_14 [1] : vector<10x32xf32> to vector<10xf32>
      %28 = vector.shape_cast %27 : vector<10xf32> to vector<10x1xf32>
      %cst_15 = arith.constant 3.200000e+01 : f32
      %29 = vector.broadcast %cst_15 : f32 to vector<10x1xf32>
      %30 = arith.divf %28, %29 : vector<10x1xf32>
      %31 = vector.broadcast %23 : vector<10x1xf32> to vector<10x32xf32>
      %32 = arith.subf %19, %31 : vector<10x32xf32>
      %cst_16 = arith.constant 9.99999974E-6 : f32
      %33 = vector.broadcast %cst_16 : f32 to vector<10x1xf32>
      %34 = arith.addf %30, %33 : vector<10x1xf32>
      %35 = math.rsqrt %34 : vector<10x1xf32>
      %36 = vector.broadcast %35 : vector<10x1xf32> to vector<10x32xf32>
      %37 = arith.mulf %32, %36 : vector<10x32xf32>
      %c0_17 = arith.constant 0 : index
      %c0_18 = arith.constant 0 : index
      %38 = vector.load %arg3[%c0_17, %c0_18] : memref<1x32xf32, #tpu.memory_space<vmem>>, vector<1x32xf32>
      %39 = vector.broadcast %38 : vector<1x32xf32> to vector<10x32xf32>
      %40 = arith.mulf %37, %39 : vector<10x32xf32>
      %c0_19 = arith.constant 0 : index
      %c0_20 = arith.constant 0 : index
      %41 = vector.load %arg4[%c0_19, %c0_20] : memref<1x32xf32, #tpu.memory_space<vmem>>, vector<1x32xf32>
      %42 = vector.broadcast %41 : vector<1x32xf32> to vector<10x32xf32>
      %43 = arith.addf %40, %42 : vector<10x32xf32>
      %44 = arith.truncf %43 : vector<10x32xf32> to vector<10x32xbf16>
      %c0_21 = arith.constant 0 : index
      %c0_22 = arith.constant 0 : index
      %45 = vector.load %arg8[%c0_21, %c0_22] : memref<10x32xbf16, #tpu.memory_space<vmem>>, vector<10x32xbf16>
      tpu.vector_store %arg8[%c0_21, %c0_22], %44 {strides = array<i32>} : memref<10x32xbf16, #tpu.memory_space<vmem>>, vector<10x32xbf16>,
    } else {
    }
    %c0 = arith.constant 0 : index
    %c0_1 = arith.constant 0 : index
    %3 = vector.load %arg8[%c0, %c0_1] : memref<10x32xbf16, #tpu.memory_space<vmem>>, vector<10x32xbf16>
    %c0_2 = arith.constant 0 : index
    %c0_3 = arith.constant 0 : index
    %4 = vector.load %arg5[%c0_2, %c0_3] : memref<32x128xbf16, #tpu.memory_space<vmem>>, vector<32x128xbf16>
    %cst = arith.constant dense<0.000000e+00> : vector<10x128xf32>
    %5 = tpu.matmul %3, %4, %cst {dimension_numbers = #tpu.dot_dimension_numbers<[1], [0], [0], [1], [0, 0, 1, 1], [], []>} : vector<10x32xbf16>, vector<32x128xbf16>, vector<10x128xf32> -> vector<10x128xf32>
    %c0_4 = arith.constant 0 : index
    %c0_5 = arith.constant 0 : index
    %6 = vector.load %arg6[%c0_4, %c0_5] : memref<1x128xf32, #tpu.memory_space<vmem>>, vector<1x128xf32>
    %7 = vector.broadcast %6 : vector<1x128xf32> to vector<10x128xf32>
    %8 = arith.addf %5, %7 : vector<10x128xf32>
    %cst_6 = arith.constant 1.702000e+00 : f32
    %9 = vector.broadcast %cst_6 : f32 to vector<10x128xf32>
    %10 = arith.mulf %9, %8 : vector<10x128xf32>
    %11 = arith.negf %10 : vector<10x128xf32>
    %12 = math.exp %11 : vector<10x128xf32>
    %cst_7 = arith.constant 1.000000e+00 : f32
    %13 = vector.broadcast %cst_7 : f32 to vector<10x128xf32>
    %14 = arith.addf %13, %12 : vector<10x128xf32>
    %15 = arith.divf %13, %14 : vector<10x128xf32>
    %16 = arith.mulf %8, %15 : vector<10x128xf32>
    %17 = arith.truncf %16 : vector<10x128xf32> to vector<10x128xbf16>
    %c0_8 = arith.constant 0 : index
    %c0_9 = arith.constant 0 : index
    %18 = vector.load %arg7[%c0_8, %c0_9] : memref<10x128xbf16, #tpu.memory_space<vmem>>, vector<10x128xbf16>
    tpu.vector_store %arg7[%c0_8, %c0_9], %17 {strides = array<i32>} : memref<10x128xbf16, #tpu.memory_space<vmem>>, vector<10x128xbf16>,
    return
  }
  func.func @transform_0(%arg0: i32, %arg1: i32) -> (i32, i32) {
    %c0_i32 = arith.constant 0 : i32
    %c0_i32_0 = arith.constant 0 : i32
    return %arg0, %c0_i32 : i32, i32
  }
  func.func @transform_1(%arg0: i32, %arg1: i32) -> (i32, i32) {
    %c0_i32 = arith.constant 0 : i32
    %c0_i32_0 = arith.constant 0 : i32
    %c0_i32_1 = arith.constant 0 : i32
    return %c0_i32, %c0_i32_0 : i32, i32
  }
  func.func @transform_2(%arg0: i32, %arg1: i32) -> (i32, i32) {
    %c0_i32 = arith.constant 0 : i32
    %c0_i32_0 = arith.constant 0 : i32
    %c0_i32_1 = arith.constant 0 : i32
    return %c0_i32, %c0_i32_0 : i32, i32
  }
  func.func @transform_3(%arg0: i32, %arg1: i32) -> (i32, i32) {
    %c0_i32 = arith.constant 0 : i32
    %c0_i32_0 = arith.constant 0 : i32
    return %c0_i32, %arg1 : i32, i32
  }
  func.func @transform_4(%arg0: i32, %arg1: i32) -> (i32, i32) {
    %c0_i32 = arith.constant 0 : i32
    %c0_i32_0 = arith.constant 0 : i32
    return %c0_i32, %arg1 : i32, i32
  }
  func.func @transform_5(%arg0: i32, %arg1: i32) -> (i32, i32) {
    %c0_i32 = arith.constant 0 : i32
    return %arg0, %arg1 : i32, i32
  }
}

module attributes {stable_mosaic.version = 11 : i64} {
  func.func @_matmul_bias_res_kernel(%arg0: i32, %arg1: i32, %arg2: i32, %arg3: memref<10x128xbf16, #tpu.memory_space<vmem>>, %arg4: memref<128x32xbf16, #tpu.memory_space<vmem>>, %arg5: memref<1x32xf32, #tpu.memory_space<vmem>>, %arg6: memref<10x32xf32, #tpu.memory_space<vmem>>, %arg7: memref<10x32xf32, #tpu.memory_space<vmem>>, %arg8: memref<10x32xf32, #tpu.memory_space<vmem>>) attributes {dimension_semantics = [#tpu.dimension_semantics<parallel>, #tpu.dimension_semantics<parallel>, #tpu.dimension_semantics<arbitrary>], iteration_bounds = array<i64: 1, 1, 1>, scalar_prefetch = 0 : i64, scratch_operands = 1 : i64, tpu.core_type = #tpu.core_type<tc>, window_params = [{transform_indices = @transform_0, window_bounds = array<i64: 10, 128>}, {transform_indices = @transform_1, window_bounds = array<i64: 128, 32>}, {transform_indices = @transform_2, window_bounds = array<i64: 1, 32>}, {transform_indices = @transform_3, window_bounds = array<i64: 10, 32>}, {transform_indices = @transform_4, window_bounds = array<i64: 10, 32>}]} {
    %c0_i32 = arith.constant 0 : i32
    %0 = arith.cmpi eq, %arg2, %c0_i32 : i32
    %1 = arith.extui %0 : i1 to i32
    %c0_i32_0 = arith.constant 0 : i32
    %2 = arith.cmpi ne, %1, %c0_i32_0 : i32
    scf.if %2 {
      %cst_10 = arith.constant 0.000000e+00 : f32
      %12 = vector.broadcast %cst_10 : f32 to vector<10x32xf32>
      %c0_11 = arith.constant 0 : index
      %c0_12 = arith.constant 0 : index
      %13 = vector.load %arg8[%c0_11, %c0_12] : memref<10x32xf32, #tpu.memory_space<vmem>>, vector<10x32xf32>
      tpu.vector_store %arg8[%c0_11, %c0_12], %12 {strides = array<i32>} : memref<10x32xf32, #tpu.memory_space<vmem>>, vector<10x32xf32>,
    } else {
    }
    %c0 = arith.constant 0 : index
    %c0_1 = arith.constant 0 : index
    %3 = vector.load %arg8[%c0, %c0_1] : memref<10x32xf32, #tpu.memory_space<vmem>>, vector<10x32xf32>
    %c0_2 = arith.constant 0 : index
    %c0_3 = arith.constant 0 : index
    %4 = vector.load %arg3[%c0_2, %c0_3] : memref<10x128xbf16, #tpu.memory_space<vmem>>, vector<10x128xbf16>
    %c0_4 = arith.constant 0 : index
    %c0_5 = arith.constant 0 : index
    %5 = vector.load %arg4[%c0_4, %c0_5] : memref<128x32xbf16, #tpu.memory_space<vmem>>, vector<128x32xbf16>
    %cst = arith.constant dense<0.000000e+00> : vector<10x32xf32>
    %6 = tpu.matmul %4, %5, %cst {dimension_numbers = #tpu.dot_dimension_numbers<[1], [0], [0], [1], [0, 0, 1, 1], [], []>} : vector<10x128xbf16>, vector<128x32xbf16>, vector<10x32xf32> -> vector<10x32xf32>
    %7 = arith.addf %3, %6 : vector<10x32xf32>
    %c0_6 = arith.constant 0 : index
    %c0_7 = arith.constant 0 : index
    %8 = vector.load %arg8[%c0_6, %c0_7] : memref<10x32xf32, #tpu.memory_space<vmem>>, vector<10x32xf32>
    tpu.vector_store %arg8[%c0_6, %c0_7], %7 {strides = array<i32>} : memref<10x32xf32, #tpu.memory_space<vmem>>, vector<10x32xf32>,
    %c0_i32_8 = arith.constant 0 : i32
    %9 = arith.cmpi eq, %arg2, %c0_i32_8 : i32
    %10 = arith.extui %9 : i1 to i32
    %c0_i32_9 = arith.constant 0 : i32
    %11 = arith.cmpi ne, %10, %c0_i32_9 : i32
    scf.if %11 {
      %c0_10 = arith.constant 0 : index
      %c0_11 = arith.constant 0 : index
      %12 = vector.load %arg8[%c0_10, %c0_11] : memref<10x32xf32, #tpu.memory_space<vmem>>, vector<10x32xf32>
      %c0_12 = arith.constant 0 : index
      %c0_13 = arith.constant 0 : index
      %13 = vector.load %arg5[%c0_12, %c0_13] : memref<1x32xf32, #tpu.memory_space<vmem>>, vector<1x32xf32>
      %14 = vector.broadcast %13 : vector<1x32xf32> to vector<10x32xf32>
      %15 = arith.addf %12, %14 : vector<10x32xf32>
      %c0_14 = arith.constant 0 : index
      %c0_15 = arith.constant 0 : index
      %16 = vector.load %arg6[%c0_14, %c0_15] : memref<10x32xf32, #tpu.memory_space<vmem>>, vector<10x32xf32>
      %17 = arith.addf %15, %16 : vector<10x32xf32>
      %c0_16 = arith.constant 0 : index
      %c0_17 = arith.constant 0 : index
      %18 = vector.load %arg7[%c0_16, %c0_17] : memref<10x32xf32, #tpu.memory_space<vmem>>, vector<10x32xf32>
      tpu.vector_store %arg7[%c0_16, %c0_17], %17 {strides = array<i32>} : memref<10x32xf32, #tpu.memory_space<vmem>>, vector<10x32xf32>,
    } else {
    }
    return
  }
  func.func @transform_0(%arg0: i32, %arg1: i32, %arg2: i32) -> (i32, i32) {
    %c0_i32 = arith.constant 0 : i32
    return %arg0, %arg2 : i32, i32
  }
  func.func @transform_1(%arg0: i32, %arg1: i32, %arg2: i32) -> (i32, i32) {
    %c0_i32 = arith.constant 0 : i32
    return %arg2, %arg1 : i32, i32
  }
  func.func @transform_2(%arg0: i32, %arg1: i32, %arg2: i32) -> (i32, i32) {
    %c0_i32 = arith.constant 0 : i32
    %c0_i32_0 = arith.constant 0 : i32
    return %c0_i32, %arg1 : i32, i32
  }
  func.func @transform_3(%arg0: i32, %arg1: i32, %arg2: i32) -> (i32, i32) {
    %c0_i32 = arith.constant 0 : i32
    return %arg0, %arg1 : i32, i32
  }
  func.func @transform_4(%arg0: i32, %arg1: i32, %arg2: i32) -> (i32, i32) {
    %c0_i32 = arith.constant 0 : i32
    return %arg0, %arg1 : i32, i32
  }
}

module attributes {stable_mosaic.version = 11 : i64} {
  func.func @_ln_matmul_kernel(%arg0: i32, %arg1: i32, %arg2: memref<2x32xf32, #tpu.memory_space<vmem>>, %arg3: memref<1x32xf32, #tpu.memory_space<vmem>>, %arg4: memref<1x32xf32, #tpu.memory_space<vmem>>, %arg5: memref<32x16xbf16, #tpu.memory_space<vmem>>, %arg6: memref<1x16xf32, #tpu.memory_space<vmem>>, %arg7: memref<2x16xf32, #tpu.memory_space<vmem>>, %arg8: memref<2x32xbf16, #tpu.memory_space<vmem>>) attributes {dimension_semantics = [#tpu.dimension_semantics<parallel>, #tpu.dimension_semantics<arbitrary>], iteration_bounds = array<i64: 1, 1>, scalar_prefetch = 0 : i64, scratch_operands = 1 : i64, tpu.core_type = #tpu.core_type<tc>, window_params = [{transform_indices = @transform_0, window_bounds = array<i64: 2, 32>}, {pipeline_mode = #tpu.pipeline_mode<synchronous>, transform_indices = @transform_1, window_bounds = array<i64: 1, 32>}, {pipeline_mode = #tpu.pipeline_mode<synchronous>, transform_indices = @transform_2, window_bounds = array<i64: 1, 32>}, {transform_indices = @transform_3, window_bounds = array<i64: 32, 16>}, {transform_indices = @transform_4, window_bounds = array<i64: 1, 16>}, {transform_indices = @transform_5, window_bounds = array<i64: 2, 16>}]} {
    %c0_i32 = arith.constant 0 : i32
    %0 = arith.cmpi eq, %arg1, %c0_i32 : i32
    %1 = arith.extui %0 : i1 to i32
    %c0_i32_0 = arith.constant 0 : i32
    %2 = arith.cmpi ne, %1, %c0_i32_0 : i32
    scf.if %2 {
      %c0_8 = arith.constant 0 : index
      %c0_9 = arith.constant 0 : index
      %10 = vector.load %arg2[%c0_8, %c0_9] : memref<2x32xf32, #tpu.memory_space<vmem>>, vector<2x32xf32>
      %cst_10 = arith.constant dense<0.000000e+00> : vector<2xf32>
      %11 = vector.multi_reduction <add>, %10, %cst_10 [1] : vector<2x32xf32> to vector<2xf32>
      %12 = vector.shape_cast %11 : vector<2xf32> to vector<2x1xf32>
      %cst_11 = arith.constant 3.200000e+01 : f32
      %13 = vector.broadcast %cst_11 : f32 to vector<2x1xf32>
      %14 = arith.divf %12, %13 : vector<2x1xf32>
      %15 = vector.broadcast %14 : vector<2x1xf32> to vector<2x32xf32>
      %16 = arith.subf %10, %15 : vector<2x32xf32>
      %17 = arith.mulf %16, %16 : vector<2x32xf32>
      %cst_12 = arith.constant dense<0.000000e+00> : vector<2xf32>
      %18 = vector.multi_reduction <add>, %17, %cst_12 [1] : vector<2x32xf32> to vector<2xf32>
      %19 = vector.shape_cast %18 : vector<2xf32> to vector<2x1xf32>
      %cst_13 = arith.constant 3.200000e+01 : f32
      %20 = vector.broadcast %cst_13 : f32 to vector<2x1xf32>
      %21 = arith.divf %19, %20 : vector<2x1xf32>
      %22 = vector.broadcast %14 : vector<2x1xf32> to vector<2x32xf32>
      %23 = arith.subf %10, %22 : vector<2x32xf32>
      %cst_14 = arith.constant 9.99999974E-6 : f32
      %24 = vector.broadcast %cst_14 : f32 to vector<2x1xf32>
      %25 = arith.addf %21, %24 : vector<2x1xf32>
      %26 = math.rsqrt %25 : vector<2x1xf32>
      %27 = vector.broadcast %26 : vector<2x1xf32> to vector<2x32xf32>
      %28 = arith.mulf %23, %27 : vector<2x32xf32>
      %c0_15 = arith.constant 0 : index
      %c0_16 = arith.constant 0 : index
      %29 = vector.load %arg3[%c0_15, %c0_16] : memref<1x32xf32, #tpu.memory_space<vmem>>, vector<1x32xf32>
      %30 = vector.broadcast %29 : vector<1x32xf32> to vector<2x32xf32>
      %31 = arith.mulf %28, %30 : vector<2x32xf32>
      %c0_17 = arith.constant 0 : index
      %c0_18 = arith.constant 0 : index
      %32 = vector.load %arg4[%c0_17, %c0_18] : memref<1x32xf32, #tpu.memory_space<vmem>>, vector<1x32xf32>
      %33 = vector.broadcast %32 : vector<1x32xf32> to vector<2x32xf32>
      %34 = arith.addf %31, %33 : vector<2x32xf32>
      %35 = arith.truncf %34 : vector<2x32xf32> to vector<2x32xbf16>
      %c0_19 = arith.constant 0 : index
      %c0_20 = arith.constant 0 : index
      %36 = vector.load %arg8[%c0_19, %c0_20] : memref<2x32xbf16, #tpu.memory_space<vmem>>, vector<2x32xbf16>
      tpu.vector_store %arg8[%c0_19, %c0_20], %35 {strides = array<i32>} : memref<2x32xbf16, #tpu.memory_space<vmem>>, vector<2x32xbf16>,
    } else {
    }
    %c0 = arith.constant 0 : index
    %c0_1 = arith.constant 0 : index
    %3 = vector.load %arg8[%c0, %c0_1] : memref<2x32xbf16, #tpu.memory_space<vmem>>, vector<2x32xbf16>
    %c0_2 = arith.constant 0 : index
    %c0_3 = arith.constant 0 : index
    %4 = vector.load %arg5[%c0_2, %c0_3] : memref<32x16xbf16, #tpu.memory_space<vmem>>, vector<32x16xbf16>
    %cst = arith.constant dense<0.000000e+00> : vector<2x16xf32>
    %5 = tpu.matmul %3, %4, %cst {dimension_numbers = #tpu.dot_dimension_numbers<[1], [0], [0], [1], [0, 0, 1, 1], [], []>} : vector<2x32xbf16>, vector<32x16xbf16>, vector<2x16xf32> -> vector<2x16xf32>
    %c0_4 = arith.constant 0 : index
    %c0_5 = arith.constant 0 : index
    %6 = vector.load %arg6[%c0_4, %c0_5] : memref<1x16xf32, #tpu.memory_space<vmem>>, vector<1x16xf32>
    %7 = vector.broadcast %6 : vector<1x16xf32> to vector<2x16xf32>
    %8 = arith.addf %5, %7 : vector<2x16xf32>
    %c0_6 = arith.constant 0 : index
    %c0_7 = arith.constant 0 : index
    %9 = vector.load %arg7[%c0_6, %c0_7] : memref<2x16xf32, #tpu.memory_space<vmem>>, vector<2x16xf32>
    tpu.vector_store %arg7[%c0_6, %c0_7], %8 {strides = array<i32>} : memref<2x16xf32, #tpu.memory_space<vmem>>, vector<2x16xf32>,
    return
  }
  func.func @transform_0(%arg0: i32, %arg1: i32) -> (i32, i32) {
    %c0_i32 = arith.constant 0 : i32
    %c0_i32_0 = arith.constant 0 : i32
    return %arg0, %c0_i32 : i32, i32
  }
  func.func @transform_1(%arg0: i32, %arg1: i32) -> (i32, i32) {
    %c0_i32 = arith.constant 0 : i32
    %c0_i32_0 = arith.constant 0 : i32
    %c0_i32_1 = arith.constant 0 : i32
    return %c0_i32, %c0_i32_0 : i32, i32
  }
  func.func @transform_2(%arg0: i32, %arg1: i32) -> (i32, i32) {
    %c0_i32 = arith.constant 0 : i32
    %c0_i32_0 = arith.constant 0 : i32
    %c0_i32_1 = arith.constant 0 : i32
    return %c0_i32, %c0_i32_0 : i32, i32
  }
  func.func @transform_3(%arg0: i32, %arg1: i32) -> (i32, i32) {
    %c0_i32 = arith.constant 0 : i32
    %c0_i32_0 = arith.constant 0 : i32
    return %c0_i32, %arg1 : i32, i32
  }
  func.func @transform_4(%arg0: i32, %arg1: i32) -> (i32, i32) {
    %c0_i32 = arith.constant 0 : i32
    %c0_i32_0 = arith.constant 0 : i32
    return %c0_i32, %arg1 : i32, i32
  }
  func.func @transform_5(%arg0: i32, %arg1: i32) -> (i32, i32) {
    %c0_i32 = arith.constant 0 : i32
    return %arg0, %arg1 : i32, i32
  }
}

</mosaic_0001>

<bundles_post_ra>
// kernel: vit_forward.12
= control target key start
LH: loop header
LB: loop body
LE: loop exit
PB: predicated region body
PF: predicated region fallthrough
CT: control target
= control target key end

     0   :  { %9 = vsyncpa [#allocation3], 0  ;;  %s978_s0 = inlined_call_operand.hbm [shape: f32[2,5,32], index: 0, kind: input, shape index: {}]   ;;  %s979_s1 = inlined_call_operand.hbm [shape: f32[5,32], index: 1, kind: input, shape index: {}]   ;;  %s980_s2 = inlined_call_operand.hbm [shape: f32[1,32], index: 2, kind: input, shape index: {}]   ;;  %s981_s3 = inlined_call_operand.hbm [shape: f32[1,32], index: 3, kind: input, shape index: {}]   ;;  %s982_s4 = inlined_call_operand.hbm [shape: f32[2,5,32], index: 4, kind: output, shape index: {}]  }
   0x1   :  { %11 = vsyncpa [#allocation3 + $0x1], 0 }
   0x2   :  { %12 = vsyncpa [#allocation6], 0 }
   0x3   :  { %13 = vsyncpa [#allocation9], 0 }
   0x4   :  { %14 = vsyncpa [#allocation4], 0 }
   0x5   :  { %16 = vsyncpa [#allocation4 + $0x1], 0  ;;  %s718_s15 = smov 0   ;;  %s720_s16 = smov 0  }
   0x6   :  { %s722_s17 = smov 0   ;;  %s724_s18 = smov 0  }
   0x7 LB: > { %s739_s19 = sadd.s32 4294967295, %s686_s18   ;;  %s399_s20 = sadd.s32 4294967294, %s686_s18   ;;  %s686_s18 = sphi %s724_s18, %s1005_s18   ;;  %s682_s17 = sphi %s722_s17, %s1004_s17   ;;  %s678_s16 = sphi %s720_s16, %s1003_s16   ;;  %s674_s15 = sphi %s718_s15, %s1002_s15  }
   0x8   : > { %p42_p0 = scmp.ne.s32.totalorder %s678_s16, %s674_s15  ;;  %p983_p1 = scmp.eq.s32.totalorder %s739_s19, 0 }
   0x9   : > { %p135_p3 = scmp.eq.s32.totalorder %s399_s20, 1  ;;  %p400_p5 = scmp.ge.s32.totalorder %s686_s18, 1 }
   0xa   : > { %p748_p4 = por %p983_p1, %p42_p0  ;;  %p142_p7 = scmp.lt.s32.totalorder %s686_s18, 3 }
   0xb   : > { %p753_p6 = por %p135_p3, %p42_p0  ;;  %s688_s24 = smov [#allocation5]  }
   0xc   : > { %s986_s21 = scalar_select %p748_p4, 1, 0 }
   0xd   : > { %s987_s22 = scalar_select %p753_p6, 1, 0 }
   0xe   : > { %p758_p8 = pnand %p400_p5, %p142_p7  ;;  %s155_s25 = sshll.u32 %s688_s24, 4  ;;  %s156_s25 = int_to_ptr.vmem [resolvable:$true] %s155_s25 }
   0xf   : > { %s689_s26 = smov [#allocation7]   ;;  %s690_s29 = smov [#allocation8]  }
  0x10   : > { %s988_s23 = scalar_select %p758_p8, 1, 0 }
  0x11   : > { %p435_p10 = pneg %p758_p8  ;;  %s166_s27 = sshll.u32 %s689_s26, 4  ;;  %s771_s27 = int_to_ptr.vmem [resolvable:$true] %s166_s27 }
  0x12   : > { %s177_s30 = sshll.u32 %s690_s29, 4  ;;  %s498_s7 = scalar_lea.hbm %s979_s1, 128  ;;  %s773_s30 = int_to_ptr.vmem [resolvable:$true] %s177_s30 }
  0x13   : > { %p767_p11 = pnand %p435_p10, %p983_p1  ;;  %p499_p12 = scmp.ne.s32.totalorder %s979_s1, %s498_s7 }
  0x14   : > { %p505_p5 = scmp.lt.u32.totalorder %s498_s7, %s979_s1 }
  0x15   : > { %p783_p13 = pneg %p767_p11 }
  0x17   : > { %p501_p0 = pnand %p783_p13, %p499_p12 }
  0x19   : > { %p502_p3 = pneg %p501_p0 }
  0x1b   : > { %p507_p7 = pnand %p505_p5, %p502_p3 }
  0x1d   : > { %510 = shalt.err (!%p507_p7)
}
  0x1e   : > { %s511_s13 = scalar_lea.vmem %s156_s25, 128  ;;  %p519_p2 = scmp.lt.s32.totalorder %s156_s25, %s156_s25 }
  0x1f   : > { %p512_p10 = scmp.ne.s32.totalorder %s156_s25, %s511_s13  ;;  %p520_p6 = scmp.lt.s32.totalorder %s511_s13, %s511_s13 }
  0x21   : > { %p514_p9 = pnand %p512_p10, %p783_p13  ;;  %p521_p4 = por %p520_p6, %p519_p2 }
  0x23   : > { %p515_p1 = pneg %p514_p9 }
  0x25   : > { %p522_p8 = pnand %p521_p4, %p515_p1 }
  0x27   : > { %525 = shalt.err (!%p522_p8)
}
  0x28   : > { %438 = dma.hbm_to_vmem [thread:$0]  (!%p767_p11), %s979_s1, 128, %s156_s25, [#allocation6]  }
  0x29   : > { %s526_s29 = scalar_lea.hbm %s980_s2, 16 }
  0x2a   : > { %p527_p9 = scmp.ne.s32.totalorder %s980_s2, %s526_s29  ;;  %p533_p1 = scmp.lt.u32.totalorder %s526_s29, %s980_s2 }
  0x2c   : > { %p529_p12 = pnand %p527_p9, %p783_p13 }
  0x2e   : > { %p530_p2 = pneg %p529_p12 }
  0x30   : > { %p535_p4 = pnand %p533_p1, %p530_p2 }
  0x32   : > { %538 = shalt.err (!%p535_p4)
}
  0x33   : > { %s539_s25 = scalar_lea.vmem %s771_s27, 16  ;;  %s546_s9 = scalar_lea.vmem %s771_s27, 32 }
  0x34   : > { %p540_p6 = scmp.ne.s32.totalorder %s771_s27, %s539_s25  ;;  %p547_p3 = scmp.lt.s32.totalorder %s771_s27, %s771_s27 }
  0x35   : > { %p548_p5 = scmp.lt.s32.totalorder %s546_s9, %s539_s25 }
  0x36   : > { %p542_p8 = pnand %p540_p6, %p783_p13 }
  0x37   : > { %p549_p7 = por %p548_p5, %p547_p3 }
  0x38   : > { %p543_p0 = pneg %p542_p8 }
  0x3a   : > { %p550_p10 = pnand %p549_p7, %p543_p0 }
  0x3c   : > { %553 = shalt.err (!%p550_p10)
}
  0x3d   : > { %441 = dma.hbm_to_vmem [thread:$0]  (!%p767_p11), %s980_s2, 16, %s771_s27, [#allocation6]  }
  0x3e   : > { %s554_s20 = scalar_lea.hbm %s981_s3, 16 }
  0x3f   : > { %p555_p9 = scmp.ne.s32.totalorder %s981_s3, %s554_s20  ;;  %p561_p1 = scmp.lt.u32.totalorder %s554_s20, %s981_s3 }
  0x41   : > { %p557_p12 = pnand %p555_p9, %p783_p13 }
  0x43   : > { %p558_p2 = pneg %p557_p12 }
  0x45   : > { %p563_p4 = pnand %p561_p1, %p558_p2 }
  0x47   : > { %566 = shalt.err (!%p563_p4)
}
  0x48   : > { %s567_s27 = scalar_lea.vmem %s773_s30, 16  ;;  %s574_s6 = scalar_lea.vmem %s773_s30, 32 }
  0x49   : > { %p568_p6 = scmp.ne.s32.totalorder %s773_s30, %s567_s27  ;;  %p575_p3 = scmp.lt.s32.totalorder %s773_s30, %s773_s30 }
  0x4a   : > { %p576_p5 = scmp.lt.s32.totalorder %s574_s6, %s567_s27 }
  0x4b   : > { %p570_p8 = pnand %p568_p6, %p783_p13 }
  0x4c   : > { %p577_p7 = por %p576_p5, %p575_p3 }
  0x4d   : > { %p571_p0 = pneg %p570_p8 }
  0x4f   : > { %p578_p10 = pnand %p577_p7, %p571_p0 }
  0x51   : > { %581 = shalt.err (!%p578_p10)
}
  0x52   : > { %444 = dma.hbm_to_vmem [thread:$0]  (!%p767_p11), %s981_s3, 16, %s773_s30, [#allocation9]  }
  0x53   : > { %s848_s10 = sadd.s32 1, %s686_s18   ;;  %s29_s25 = sadd.s32 1, %s682_s17 }
  0x54   : > { %s26_s28 = ssub.s32 %s686_s18, %s848_s10  ;;  %p36_p9 = scmp.ne.s32.totalorder %s682_s17, %s678_s16 }
  0x55   : > { %p27_p13 = scmp.eq.s32.totalorder %s26_s28, 0  ;;  %p37_p12 = scmp.eq.s32.totalorder %s686_s18, 0 }
  0x56   : > { %p456_p2 = scmp.lt.s32.totalorder %s686_s18, 2  ;;  %p991_p4 = scmp.eq.s32.totalorder %s739_s19, 1 }
  0x57   : > { %s858_s9 = scalar_select %p27_p13, %s682_s17, %s29_s25  }
  0x58   : > { %p38_p1 = por %p37_p12, %p36_p9  ;;  %p862_p6 = por %p991_p4, %p36_p9 }
  0x59   : > { %s188_s12 = sand.u32 1, %s682_s17   ;;  %s406_s13 = sshll.u32 %s686_s18, 7 }
  0x5a   : > { %s405_s30 = sshll.u32 %s188_s12, 3  ;;  %s871_s24 = scalar_lea.hbm %s978_s0, %s406_s13 }
  0x5b   : > { %s192_s26 = scalar_lea.vmem [#allocation2], %s405_s30  ;;  %p873_p11 = pnand %p456_p2, %p38_p1 }
  0x5c   : > { %s199_s29 = sshll.u32 %s192_s26, 4  ;;  %s189_s27 = scalar_lea.sflag [#allocation3], %s188_s12  ;;  %s877_s29 = int_to_ptr.vmem [resolvable:$true] %s199_s29 }
  0x5d   : > { %s582_s6 = scalar_lea.hbm %s871_s24, 128  ;;  %p584_p0 = pneg %p873_p11 }
  0x5e   : > { %p583_p8 = scmp.ne.s32.totalorder %s871_s24, %s582_s6  ;;  %s587_s28 = scalar_lea.hbm %s978_s0, 256 }
  0x5f   : > { %p588_p7 = scmp.lt.u32.totalorder %s871_s24, %s978_s0  ;;  %p589_p10 = scmp.lt.u32.totalorder %s587_s28, %s582_s6 }
  0x60   : > { %p585_p3 = pnand %p584_p0, %p583_p8  ;;  %p591_p9 = scmp.lt.u32.totalorder %s582_s6, %s871_s24 }
  0x61   : > { %p590_p13 = por %p589_p10, %p588_p7 }
  0x62   : > { %p586_p5 = pneg %p585_p3 }
  0x63   : > { %p592_p12 = por %p591_p9, %p590_p13 }
  0x65   : > { %p593_p2 = pnand %p592_p12, %p586_p5 }
  0x67   : > { %596 = shalt.err (!%p593_p2)
}
  0x68   : > { %s597_s12 = scalar_lea.vmem %s877_s29, 128  ;;  %s691_s30 = smov [#allocation2]  }
  0x69   : > { %p598_p1 = scmp.ne.s32.totalorder %s877_s29, %s597_s12  ;;  %s602_s14 = sshll.u32 %s691_s30, 4  ;;  %s603_s14 = int_to_ptr.vmem [resolvable:$false] %s602_s14 }
  0x6a   : > { %s604_s20 = scalar_lea.vmem %s603_s14, 256  ;;  %p605_p3 = scmp.lt.s32.totalorder %s877_s29, %s603_s14 }
  0x6b   : > { %p600_p4 = pnand %p598_p1, %p584_p0  ;;  %p606_p7 = scmp.lt.s32.totalorder %s604_s20, %s597_s12 }
  0x6d   : > { %p601_p8 = pneg %p600_p4  ;;  %p607_p10 = por %p606_p7, %p605_p3 }
  0x6f   : > { %p608_p13 = pnand %p607_p10, %p601_p8 }
  0x71   : > { %611 = shalt.err (!%p608_p13)
}
  0x72   : > { %448 = dma.hbm_to_vmem [thread:$0]  (!%p873_p11), %s871_s24, 128, %s877_s29, %s189_s27  }
  0x73   : > { %p994_p5 = scmp.ne.s32.totalorder %s988_s23, 0 }
  0x74   : > { %s907_s26 = sand.u32 (!%p994_p5), 1, %s678_s16   ;;  %p995_p0 = scmp.ne.s32.totalorder (!%p994_p5), %s986_s21, 0 }
  0x75   : > { %208 = sbr.rel (%p994_p5) target bundleno = 462 (0x1ce), region = 36  ;;  %s408_s6 = sshll.u32 (!%p994_p5), %s907_s26, 3 }
  0x76   : > { %s211_s7 = scalar_lea.sflag (!%p994_p5), [#allocation3], %s907_s26  ;;  %s214_s8 = scalar_lea.vmem (!%p994_p5), [#allocation2], %s408_s6 }
  0x7c   : > { %657 = dma.done.wait (%p995_p0), %s211_s7, 128  }
  0x7d   : > { %659 = vsyncadd (%p995_p0), %s211_s7, 4294967168  ;;  %p996_p11 = scmp.eq.s32.totalorder %s739_s19, 0 }
  0x7f   : > { %661 = dma.done.wait (%p996_p11), [#allocation6], 144   ;;  %p997_p9 = pmov %p996_p11 }
  0x81   : > { %663 = vsyncadd (%p997_p9), [#allocation6], 4294967152  ;;  %p998_p12 = pmov %p997_p9 }
  0x82   : > { %p999_p2 = pmov %p997_p9 }
  0x83   : > { %665 = dma.done.wait (%p998_p12), [#allocation9], 16  }
  0x84   : > { %667 = vsyncadd (%p999_p2), [#allocation9], 4294967280  ;;  %v251_v0 = vld [vmem:[%s214_s8] sm:$0x1f]  ;;  %v252_v1 = vld [vmem:[#allocation5] sm:$0x1f] }
  0x85   : > { %vm254_vm0 = vcmask 258048   ;;  %v253_v2 = vadd.f32 %v252_v1, %v251_v0  ;;  %v413_v13 = vld [vmem:[#allocation7] ss:$0 sm:$0xff]  ;;  %v414_v15 = vld [vmem:[#allocation8] ss:$0 sm:$0xff]  ;;  %s416_s21 = sshll.u32 %s739_s19, 7 }
  0x86   : > { %s250_s23 = scalar_lea.vmem [#allocation10], %s408_s6  ;;  %s933_s27 = scalar_lea.hbm %s982_s4, %s416_s21 }
  0x87   : > { %v255_v3 = vsel %vm254_vm0, %v253_v2, 0.0  ;;  %s300_s24 = sshll.u32 %s250_s23, 4  ;;  %s287_s28 = scalar_lea.sflag [#allocation4], %s907_s26  ;;  %s935_s24 = int_to_ptr.vmem [resolvable:$true] %s300_s24 }
  0x88   : > { %256 = vadd.xlane.f32.xlu0 %v255_v3  ;;  %s612_s25 = scalar_lea.vmem %s935_s24, 128  ;;  %s692_s19 = smov [#allocation10]  }
  0x89   : > { %p613_p1 = scmp.ne.s32.totalorder %s935_s24, %s612_s25  ;;  %s616_s13 = sshll.u32 %s692_s19, 4  ;;  %s617_s13 = int_to_ptr.vmem [resolvable:$false] %s616_s13 }
  0x8a   : > { %s618_s12 = scalar_lea.vmem %s617_s13, 256  ;;  %p619_p3 = scmp.lt.s32.totalorder %s935_s24, %s617_s13 }
  0x8b   : > { %p614_p4 = pnand %p613_p1, %p862_p6  ;;  %p620_p7 = scmp.lt.s32.totalorder %s618_s12, %s612_s25 }
  0x8d   : > { %p615_p8 = pneg %p614_p4  ;;  %p621_p10 = por %p620_p7, %p619_p3 }
  0x8f   : > { %p622_p13 = pnand %p621_p10, %p615_p8 }
 0x115   : > { %v257_v4 = vpop.xlane.xlu0 %256 }
 0x116   : > { %v259_v5 = vmul.f32 0.03125, %v257_v4 }
 0x118   : > { %v260_v6 = vsub.f32 %v253_v2, %v259_v5 }
 0x11a   : > { %v261_v7 = vmul.f32 %v260_v6, %v260_v6 }
 0x11c   : > { %v262_v8 = vsel %vm254_vm0, %v261_v7, 0.0 }
 0x11d   : > { %263 = vadd.xlane.f32.xlu0 %v262_v8 }
 0x1aa   : > { %v264_v9 = vpop.xlane.xlu0 %263 }
 0x1ab   : > { %v265_v10 = vmul.f32 0.03125, %v264_v9 }
 0x1ad   : > { %v266_v11 = vadd.f32 1e-05, %v265_v10 }
 0x1af   : > { %496 = vrsqrt.f32 %v266_v11 }
 0x1b9   : > { %v497_v12 = vpop.eup %496 }
 0x1ba   : > { %v268_v14 = vmul.f32 %v497_v12, %v260_v6 }
 0x1bc   : > { %v276_v16 = vmul.f32 %v413_v13, %v268_v14 }
 0x1be   : > { %v284_v17 = vadd.f32 %v414_v15, %v276_v16 }
 0x1c0   : > { %285 = vst.msk [vmem:[%s250_s23] sm:$0x1f] %vm254_vm0, %v284_v17 }
 0x1c1   : > { %625 = shalt.err (!%p622_p13)
}
 0x1c2   : > { %s626_s30 = scalar_lea.hbm %s933_s27, 128  ;;  %s630_s26 = scalar_lea.hbm %s982_s4, 256 }
 0x1c3   : > { %p627_p5 = scmp.ne.s32.totalorder %s933_s27, %s626_s30  ;;  %p631_p9 = scmp.lt.u32.totalorder %s933_s27, %s982_s4 }
 0x1c4   : > { %p632_p12 = scmp.lt.u32.totalorder %s630_s26, %s626_s30  ;;  %p634_p1 = scmp.lt.u32.totalorder %s626_s30, %s933_s27 }
 0x1c5   : > { %p628_p0 = pnand %p627_p5, %p862_p6 }
 0x1c6   : > { %p633_p2 = por %p632_p12, %p631_p9 }
 0x1c7   : > { %p629_p11 = pneg %p628_p0 }
 0x1c8   : > { %p635_p4 = por %p634_p1, %p633_p2 }
 0x1ca   : > { %p636_p8 = pnand %p635_p4, %p629_p11 }
 0x1cc   : > { %639 = shalt.err (!%p636_p8)
}
 0x1cd   : > { %433 = dma.vmem_to_hbm [thread:$0]  (%p862_p6), %s935_s24, 128, %s933_s27, %s287_s28  }
 0x1ce PF: > { %s312_s8 = sand.u32 1, %s674_s15   ;;  %p1000_p3 = scmp.ne.s32.totalorder %s987_s22, 0 }
 0x1cf   : > { %p1001_p7 = scmp.ge.s32.totalorder %s686_s18, 2  ;;  %s313_s21 = scalar_lea.sflag [#allocation4], %s312_s8 }
 0x1d1   : > { %p450_p10 = pnand %p1001_p7, %p1000_p3 }
 0x1d3   : > { %669 = dma.done.wait (!%p450_p10), %s313_s21, 128  }
 0x1d4   : > { %671 = vsyncadd (!%p450_p10), %s313_s21, 4294967168  ;;  %p19_p13 = scmp.ge.s32.totalorder %s848_s10, 4   ;;  %s1002_s15 = smov %s678_s16 }
 0x1d5   : > { %s1003_s16 = smov %s682_s17  ;;  %s1004_s17 = smov %s858_s9 }
 0x1d6   : > { %s1005_s18 = smov %s848_s10  ;;  %21 = sbr.rel (!%p19_p13) target bundleno = 7 (0x7), region = 93 }
 0x1dd   :  { %318 = vsyncpa [#allocation3], 1 }
 0x1de   :  { %320 = vsyncpa [#allocation3 + $0x1], 1 }
 0x1df   :  { %321 = vsyncpa [#allocation6], 1 }
 0x1e0   :  { %322 = vsyncpa [#allocation9], 1 }
 0x1e1   :  { %323 = vsyncpa [#allocation4], 1 }
 0x1e2   :  { %325 = vsyncpa [#allocation4 + $0x1], 1 }

// kernel: vit_forward.13
= control target key start
LH: loop header
LB: loop body
LE: loop exit
PB: predicated region body
PF: predicated region fallthrough
CT: control target
= control target key end

     0   :  { %10 = vsyncpa [#allocation4], 0  ;;  %s570_s0 = inlined_call_operand.hbm [shape: f32[10,32], index: 0, kind: input, shape index: {}]   ;;  %s571_s1 = inlined_call_operand.hbm [shape: f32[1,32], index: 1, kind: input, shape index: {}]   ;;  %s572_s2 = inlined_call_operand.hbm [shape: f32[1,32], index: 2, kind: input, shape index: {}]   ;;  %s573_s3 = inlined_call_operand.hbm [shape: bf16[32,96], index: 3, kind: input, shape index: {}]   ;;  %s574_s4 = inlined_call_operand.hbm [shape: f32[1,96], index: 4, kind: input, shape index: {}]   ;;  %s575_s5 = inlined_call_operand.hbm [shape: bf16[10,96], index: 5, kind: output, shape index: {}]  }
   0x1   :  { %11 = vsyncpa [#allocation7], 0 }
   0x2   :  { %12 = vsyncpa [#allocation10], 0 }
   0x3   :  { %13 = vsyncpa [#allocation5], 0  ;;  %s440_s18 = smov [#allocation6]   ;;  %s441_s20 = smov [#allocation9]  }
   0x4   :  { %s32_s19 = sshll.u32 %s440_s18, 4  ;;  %s51_s21 = sshll.u32 %s441_s20, 4  ;;  %s33_s19 = int_to_ptr.vmem [resolvable:$true] %s32_s19  ;;  %s482_s21 = int_to_ptr.vmem [resolvable:$true] %s51_s21 }
   0x5   :  { %s300_s24 = scalar_lea.hbm %s571_s1, 16 }
   0x6   :  { %p301_p0 = scmp.ne.s32.totalorder %s571_s1, %s300_s24  ;;  %p304_p1 = scmp.lt.u32.totalorder %s300_s24, %s571_s1 }
   0x8   :  { %p306_p2 = pnand %p304_p1, %p301_p0 }
   0xa   :  { %309 = shalt.err (!%p306_p2)
}
   0xb   :  { %s310_s29 = scalar_lea.vmem %s33_s19, 16  ;;  %s314_s30 = scalar_lea.vmem %s33_s19, 32 }
   0xc   :  { %p311_p3 = scmp.ne.s32.totalorder %s33_s19, %s310_s29  ;;  %p315_p4 = scmp.lt.s32.totalorder %s33_s19, %s33_s19 }
   0xd   :  { %p316_p5 = scmp.lt.s32.totalorder %s314_s30, %s310_s29 }
   0xf   :  { %p317_p6 = por %p316_p5, %p315_p4 }
  0x11   :  { %p318_p7 = pnand %p317_p6, %p311_p3 }
  0x13   :  { %321 = shalt.err (!%p318_p7)
}
  0x14   :  { %35 = dma.hbm_to_vmem [thread:$0]  %s571_s1, 16, %s33_s19, [#allocation7]  }
  0x15   :  { %s322_s10 = scalar_lea.hbm %s573_s3, 256 }
  0x16   :  { %p323_p8 = scmp.ne.s32.totalorder %s573_s3, %s322_s10  ;;  %p326_p9 = scmp.lt.u32.totalorder %s322_s10, %s573_s3 }
  0x18   :  { %p328_p10 = pnand %p326_p9, %p323_p8 }
  0x1a   :  { %331 = shalt.err (!%p328_p10)
}
  0x1b   :  { %s332_s15 = scalar_lea.vmem %s482_s21, 256  ;;  %p337_p12 = scmp.lt.s32.totalorder %s482_s21, %s482_s21 }
  0x1c   :  { %p333_p11 = scmp.ne.s32.totalorder %s482_s21, %s332_s15  ;;  %p338_p13 = scmp.lt.s32.totalorder %s332_s15, %s332_s15 }
  0x1e   :  { %p339_p0 = por %p338_p13, %p337_p12 }
  0x20   :  { %p340_p1 = pnand %p339_p0, %p333_p11 }
  0x22   :  { %343 = shalt.err (!%p340_p1)
}
  0x23   :  { %s442_s1 = smov 64   ;;  %s443_s16 = smov 4  }
  0x24   :  { %57 = dma.hbm_to_vmem [thread:$0]  %s573_s3, 256, %s482_s21, [#allocation10], %s442_s1, %s442_s1, %s443_s16  }
  0x25   :  { %s444_s19 = smov [#allocation3]   ;;  %s344_s24 = scalar_lea.hbm %s570_s0, 256 }
  0x26   :  { %s19_s20 = sshll.u32 %s444_s19, 4  ;;  %p345_p2 = scmp.ne.s32.totalorder %s570_s0, %s344_s24  ;;  %s20_s20 = int_to_ptr.vmem [resolvable:$true] %s19_s20 }
  0x27   :  { %p348_p3 = scmp.lt.u32.totalorder %s344_s24, %s570_s0 }
  0x29   :  { %p350_p4 = pnand %p348_p3, %p345_p2 }
  0x2b   :  { %353 = shalt.err (!%p350_p4)
}
  0x2c   :  { %s354_s29 = scalar_lea.vmem %s20_s20, 256  ;;  %p359_p6 = scmp.lt.s32.totalorder %s20_s20, %s20_s20 }
  0x2d   :  { %p355_p5 = scmp.ne.s32.totalorder %s20_s20, %s354_s29  ;;  %p360_p7 = scmp.lt.s32.totalorder %s354_s29, %s354_s29 }
  0x2f   :  { %p361_p8 = por %p360_p7, %p359_p6 }
  0x31   :  { %p362_p9 = pnand %p361_p8, %p355_p5 }
  0x33   :  { %365 = shalt.err (!%p362_p9)
}
  0x34   :  { %s445_s3 = smov 128   ;;  %s446_s21 = smov 8  }
  0x35   :  { %25 = dma.hbm_to_vmem [thread:$0]  %s570_s0, 256, %s20_s20, [#allocation4], %s445_s3, %s445_s3, %s446_s21  }
  0x36   :  { %s447_s7 = smov [#allocation8]   ;;  %s448_s9 = smov [#allocation11]  }
  0x37   :  { %s42_s8 = sshll.u32 %s447_s7, 4  ;;  %s64_s10 = sshll.u32 %s448_s9, 4  ;;  %s43_s8 = int_to_ptr.vmem [resolvable:$true] %s42_s8  ;;  %s65_s10 = int_to_ptr.vmem [resolvable:$true] %s64_s10 }
  0x38   :  { %s366_s13 = scalar_lea.hbm %s572_s2, 16 }
  0x39   :  { %p367_p10 = scmp.ne.s32.totalorder %s572_s2, %s366_s13  ;;  %p370_p11 = scmp.lt.u32.totalorder %s366_s13, %s572_s2 }
  0x3b   :  { %p372_p12 = pnand %p370_p11, %p367_p10 }
  0x3d   :  { %375 = shalt.err (!%p372_p12)
}
  0x3e   :  { %s376_s0 = scalar_lea.vmem %s43_s8, 16  ;;  %s380_s19 = scalar_lea.vmem %s43_s8, 32 }
  0x3f   :  { %p377_p13 = scmp.ne.s32.totalorder %s43_s8, %s376_s0  ;;  %p381_p0 = scmp.lt.s32.totalorder %s43_s8, %s43_s8 }
  0x40   :  { %p382_p1 = scmp.lt.s32.totalorder %s380_s19, %s376_s0 }
  0x42   :  { %p383_p2 = por %p382_p1, %p381_p0 }
  0x44   :  { %p384_p3 = pnand %p383_p2, %p377_p13 }
  0x46   :  { %387 = shalt.err (!%p384_p3)
}
  0x47   :  { %45 = dma.hbm_to_vmem [thread:$0]  %s572_s2, 16, %s43_s8, [#allocation7]  }
  0x48   :  { %s388_s25 = scalar_lea.hbm %s574_s4, 16 }
  0x49   :  { %p389_p4 = scmp.ne.s32.totalorder %s574_s4, %s388_s25  ;;  %p392_p5 = scmp.lt.u32.totalorder %s388_s25, %s574_s4 }
  0x4b   :  { %p394_p6 = pnand %p392_p5, %p389_p4 }
  0x4d   :  { %397 = shalt.err (!%p394_p6)
}
  0x4e   :  { %s398_s3 = scalar_lea.vmem %s65_s10, 16  ;;  %s402_s21 = scalar_lea.vmem %s65_s10, 32 }
  0x4f   :  { %p399_p7 = scmp.ne.s32.totalorder %s65_s10, %s398_s3  ;;  %p403_p8 = scmp.lt.s32.totalorder %s65_s10, %s65_s10 }
  0x50   :  { %p404_p9 = scmp.lt.s32.totalorder %s402_s21, %s398_s3 }
  0x52   :  { %p405_p10 = por %p404_p9, %p403_p8 }
  0x54   :  { %p406_p11 = pnand %p405_p10, %p399_p7 }
  0x56   :  { %409 = shalt.err (!%p406_p11)
}
  0x57   :  { %67 = dma.hbm_to_vmem [thread:$0]  %s574_s4, 16, %s65_s10, [#allocation10]  }
  0x58   :  { %432 = dma.done.wait [#allocation4], 256  }
  0x59   :  { %433 = vsyncadd [#allocation4], 4294967040 }
  0x5a   :  { %434 = dma.done.wait [#allocation7], 32  }
  0x5b   :  { %435 = vsyncadd [#allocation7], 4294967264 }
  0x5c   :  { %436 = dma.done.wait [#allocation10], 272  }
  0x5d   :  { %437 = vsyncadd [#allocation10], 4294967024  ;;  %vm90_vm0 = vcmask 261120   ;;  %v88_v0 = vld [vmem:[#allocation3] sm:$0xff]  ;;  %v89_v1 = vld [vmem:[#allocation3 + $0x8] sm:$0x3] }
  0x5e   :  { %vm94_vm1 = vcmask 254976   ;;  %v91_v2 = vsel %vm90_vm0, %v88_v0, 0.0  ;;  %v293_v14 = vld [vmem:[#allocation9] sm:$0xff]   ;;  %v449_v15 = vmov 0.0   ;;  %vm450_vm2 = vmmov 0   ;;  %v294_v16 = vld [vmem:[#allocation9 + $0x8] sm:$0xff]  }
  0x5f   :  { %92 = vadd.xlane.f32.xlu0 %v91_v2  ;;  %v95_v3 = vsel %vm94_vm1, %v89_v1, 0.0  ;;  %273 = vmatprep.subr.bf16.mxu0 %v449_v15  ;;  %v255_v24 = vld [vmem:[#allocation6] ss:$0 sm:$0xff]  ;;  %v256_v26 = vld [vmem:[#allocation8] ss:$0 sm:$0xff]  ;;  %vm145_vm3 = vcmask 257024  }
  0x60   :  { %277 = vmatprep.mubr.msk.bf16.mxu0 %vm450_vm2, %v449_v15  ;;  %274 = vmatpush3.bf16.msra.mxu0 %v293_v14  ;;  %vm147_vm4 = vcmask 253952   ;;  %v259_v36 = vld [vmem:[#allocation11] ss:$0 sm:$0xff]  ;;  %vm232_vm5 = vcmask 781312   ;;  %s451_s4 = smov [#allocation12]   ;;  %vm234_vm6 = vcmask 778240  }
  0x61   :  { %275 = vmatprep.subr.bf16.mxu0 %v449_v15  ;;  %s241_s6 = sshll.u32 %s451_s4, 4  ;;  %s242_s6 = int_to_ptr.vmem [resolvable:$true] %s241_s6 }
  0x62   :  { %s410_s7 = scalar_lea.vmem %s242_s6, 128  ;;  %p415_p13 = scmp.lt.s32.totalorder %s242_s6, %s242_s6 }
  0x63   :  { %96 = vadd.xlane.f32.xlu0 %v95_v3  ;;  %p411_p12 = scmp.ne.s32.totalorder %s242_s6, %s410_s7  ;;  %p416_p0 = scmp.lt.s32.totalorder %s410_s7, %s410_s7 }
  0x64   :  { %276 = vmatpush3.bf16.msra.mxu0 %v294_v16 }
  0x65   :  { %p417_p1 = por %p416_p0, %p415_p13 }
  0x67   :  { %p418_p2 = pnand %p417_p1, %p411_p12 }
  0xec   :  { %v93_v4 = vpop.xlane.xlu0 %92 }
  0xed   :  { %v99_v5 = vmul.f32 0.03125, %v93_v4 }
  0xef   :  { %v101_v6 = vsub.f32 %v88_v0, %v99_v5 }
  0xf0   :  { %v97_v7 = vpop.xlane.xlu0 %96 }
  0xf1   :  { %v100_v8 = vmul.f32 0.03125, %v97_v7  ;;  %v103_v9 = vmul.f32 %v101_v6, %v101_v6 }
  0xf3   :  { %v102_v10 = vsub.f32 %v89_v1, %v100_v8  ;;  %v105_v11 = vsel %vm90_vm0, %v103_v9, 0.0 }
  0xf4   :  { %106 = vadd.xlane.f32.xlu1 %v105_v11 }
  0xf5   :  { %v104_v12 = vmul.f32 %v102_v10, %v102_v10 }
  0xf7   :  { %v108_v13 = vsel %vm94_vm1, %v104_v12, 0.0 }
  0xf8   :  { %109 = vadd.xlane.f32.xlu1 %v108_v13 }
 0x181   :  { %v107_v17 = vpop.xlane.xlu1 %106 }
 0x182   :  { %v111_v18 = vmul.f32 0.03125, %v107_v17 }
 0x184   :  { %v113_v19 = vadd.f32 1e-05, %v111_v18 }
 0x185   :  { %v110_v20 = vpop.xlane.xlu1 %109 }
 0x186   :  { %296 = vrsqrt.f32 %v113_v19  ;;  %v112_v21 = vmul.f32 0.03125, %v110_v20 }
 0x188   :  { %v114_v22 = vadd.f32 1e-05, %v112_v21 }
 0x18a   :  { %298 = vrsqrt.f32 %v114_v22 }
 0x190   :  { %v297_v23 = vpop.eup %296 }
 0x191   :  { %v117_v25 = vmul.f32 %v297_v23, %v101_v6 }
 0x193   :  { %v126_v27 = vmul.f32 %v255_v24, %v117_v25 }
 0x194   :  { %v299_v28 = vpop.eup %298 }
 0x195   :  { %v135_v29 = vadd.f32 %v256_v26, %v126_v27  ;;  %v118_v30 = vmul.f32 %v299_v28, %v102_v10 }
 0x197   :  { %v266_v31 = vpack.c.bf16 %v135_v29, %v135_v29  ;;  %v127_v32 = vmul.f32 %v255_v24, %v118_v30 }
 0x199   :  { %146 = vst.msk [vmem:[#allocation2] sm:$0xf] %vm145_vm3, %v266_v31  ;;  %v136_v33 = vadd.f32 %v256_v26, %v127_v32 }
 0x19b   :  { %v267_v34 = vpack.c.bf16 %v136_v33, %v136_v33 }
 0x19d   :  { %148 = vst.msk [vmem:[#allocation2 + $0x4] sm:$0x1] %vm147_vm4, %v267_v34 }
 0x1a4   :  { %v295_v35 = vld [vmem:[#allocation2] sm:$0x1f]  }
 0x1a5   :  { %278 = vmatmul.mubr.msk.bf16.vlgmr.msra.gmra.mrb[0].mxu0 %vm90_vm0, %v295_v35 }
 0x278   :  { %v217_v37 = vpop.f32.mrb[0].mxu0 }
 0x279   :  { %v218_v38 = vadd.f32 %v259_v36, %v217_v37  ;;  %v279_v39 = vpop.f32.mrb[1].mxu0 }
 0x27a   :  { %v220_v40 = vpop.f32.mrb[2].mxu0 }
 0x27b   :  { %v268_v41 = vpack.c.bf16 %v218_v38, %v218_v38  ;;  %v221_v42 = vadd.f32 %v259_v36, %v220_v40  ;;  %v280_v43 = vpop.f32.mrb[3].mxu0 }
 0x27d   :  { %v269_v44 = vpack.c.bf16 %v221_v42, %v221_v42  ;;  %233 = vst.msk [vmem:[#allocation12] sm:$0xf] %vm232_vm5, %v268_v41 }
 0x27f   :  { %235 = vst.msk [vmem:[#allocation12 + $0x4] sm:$0x1] %vm234_vm6, %v269_v44 }
 0x280   :  { %421 = shalt.err (!%p418_p2)
}
 0x281   :  { %s422_s10 = scalar_lea.hbm %s575_s5, 128 }
 0x282   :  { %p423_p3 = scmp.ne.s32.totalorder %s575_s5, %s422_s10  ;;  %p426_p4 = scmp.lt.u32.totalorder %s422_s10, %s575_s5 }
 0x284   :  { %p428_p5 = pnand %p426_p4, %p423_p3 }
 0x286   :  { %431 = shalt.err (!%p428_p5)
}
 0x287   :  { %247 = dma.vmem_to_hbm [thread:$0]  %s242_s6, 128, %s575_s5, [#allocation5], %s442_s1, %s442_s1, %s443_s16  }
 0x288   :  { %438 = dma.done.wait [#allocation5], 128  }
 0x289   :  { %439 = vsyncadd [#allocation5], 4294967168 }
 0x28a   :  { %251 = vsyncpa [#allocation4], 1 }
 0x28b   :  { %252 = vsyncpa [#allocation7], 1 }
 0x28c   :  { %253 = vsyncpa [#allocation10], 1 }
 0x28d   :  { %254 = vsyncpa [#allocation5], 1 }

// kernel: vit_forward.11
= control target key start
LH: loop header
LB: loop body
LE: loop exit
PB: predicated region body
PF: predicated region fallthrough
CT: control target
= control target key end

     0   :  { %8 = vsyncpa [#allocation4], 0  ;;  %s443_s0 = inlined_call_operand.hbm [shape: f32[8,192], index: 0, kind: input, shape index: {}]   ;;  %s444_s1 = inlined_call_operand.hbm [shape: bf16[192,32], index: 1, kind: input, shape index: {}]   ;;  %s445_s2 = inlined_call_operand.hbm [shape: f32[1,32], index: 2, kind: input, shape index: {}]   ;;  %s446_s3 = inlined_call_operand.hbm [shape: f32[8,32], index: 3, kind: output, shape index: {}]  }
   0x1   :  { %9 = vsyncpa [#allocation7], 0 }
   0x2   :  { %10 = vsyncpa [#allocation5], 0  ;;  %s364_s12 = smov [#allocation6]   ;;  %s270_s16 = scalar_lea.hbm %s444_s1, 1536 }
   0x3   :  { %s26_s13 = sshll.u32 %s364_s12, 4  ;;  %p271_p0 = scmp.ne.s32.totalorder %s444_s1, %s270_s16  ;;  %s27_s13 = int_to_ptr.vmem [resolvable:$true] %s26_s13 }
   0x4   :  { %p274_p1 = scmp.lt.u32.totalorder %s270_s16, %s444_s1 }
   0x6   :  { %p276_p2 = pnand %p274_p1, %p271_p0 }
   0x8   :  { %279 = shalt.err (!%p276_p2)
}
   0x9   :  { %s280_s21 = scalar_lea.vmem %s27_s13, 1536  ;;  %p285_p4 = scmp.lt.s32.totalorder %s27_s13, %s27_s13 }
   0xa   :  { %p281_p3 = scmp.ne.s32.totalorder %s27_s13, %s280_s21  ;;  %p286_p5 = scmp.lt.s32.totalorder %s280_s21, %s280_s21 }
   0xc   :  { %p287_p6 = por %p286_p5, %p285_p4 }
   0xe   :  { %p288_p7 = pnand %p287_p6, %p281_p3 }
  0x10   :  { %291 = shalt.err (!%p288_p7)
}
  0x11   :  { %s365_s22 = smov 64   ;;  %s366_s23 = smov 4  }
  0x12   :  { %32 = dma.hbm_to_vmem [thread:$0]  %s444_s1, 1536, %s27_s13, [#allocation7], %s365_s22, %s365_s22, %s366_s23  }
  0x13   :  { %s367_s26 = smov [#allocation3]   ;;  %s368_s28 = smov [#allocation8]  }
  0x14   :  { %s17_s27 = sshll.u32 %s367_s26, 4  ;;  %s39_s29 = sshll.u32 %s368_s28, 4  ;;  %s18_s27 = int_to_ptr.vmem [resolvable:$true] %s17_s27  ;;  %s40_s29 = int_to_ptr.vmem [resolvable:$true] %s39_s29 }
  0x15   :  { %s292_s5 = scalar_lea.hbm %s443_s0, 256 }
  0x16   :  { %p293_p8 = scmp.ne.s32.totalorder %s443_s0, %s292_s5  ;;  %p296_p9 = scmp.lt.u32.totalorder %s292_s5, %s443_s0 }
  0x18   :  { %p298_p10 = pnand %p296_p9, %p293_p8 }
  0x1a   :  { %301 = shalt.err (!%p298_p10)
}
  0x1b   :  { %s302_s1 = scalar_lea.vmem %s18_s27, 256  ;;  %p307_p12 = scmp.lt.s32.totalorder %s18_s27, %s18_s27 }
  0x1c   :  { %p303_p11 = scmp.ne.s32.totalorder %s18_s27, %s302_s1  ;;  %p308_p13 = scmp.lt.s32.totalorder %s302_s1, %s302_s1 }
  0x1e   :  { %p309_p0 = por %p308_p13, %p307_p12 }
  0x20   :  { %p310_p1 = pnand %p309_p0, %p303_p11 }
  0x22   :  { %313 = shalt.err (!%p310_p1)
}
  0x23   :  { %20 = dma.hbm_to_vmem [thread:$0]  %s443_s0, 256, %s18_s27, [#allocation4]  }
  0x24   :  { %s314_s14 = scalar_lea.hbm %s445_s2, 16 }
  0x25   :  { %p315_p2 = scmp.ne.s32.totalorder %s445_s2, %s314_s14  ;;  %p318_p3 = scmp.lt.u32.totalorder %s314_s14, %s445_s2 }
  0x27   :  { %p320_p4 = pnand %p318_p3, %p315_p2 }
  0x29   :  { %323 = shalt.err (!%p320_p4)
}
  0x2a   :  { %s324_s19 = scalar_lea.vmem %s40_s29, 16  ;;  %s328_s20 = scalar_lea.vmem %s40_s29, 32 }
  0x2b   :  { %p325_p5 = scmp.ne.s32.totalorder %s40_s29, %s324_s19  ;;  %p329_p6 = scmp.lt.s32.totalorder %s40_s29, %s40_s29 }
  0x2c   :  { %p330_p7 = scmp.lt.s32.totalorder %s328_s20, %s324_s19 }
  0x2e   :  { %p331_p8 = por %p330_p7, %p329_p6 }
  0x30   :  { %p332_p9 = pnand %p331_p8, %p325_p5 }
  0x32   :  { %335 = shalt.err (!%p332_p9)
}
  0x33   :  { %42 = dma.hbm_to_vmem [thread:$0]  %s445_s2, 16, %s40_s29, [#allocation7]  }
  0x34   :  { %358 = dma.done.wait [#allocation4], 256  }
  0x35   :  { %359 = vsyncadd [#allocation4], 4294967040 }
  0x36   :  { %360 = dma.done.wait [#allocation7], 1552  }
  0x37   :  { %361 = vsyncadd [#allocation7], 4294965744  ;;  %vm57_vm0 = vcmask 261120   ;;  %v369_v0 = vmov 0   ;;  %v370_v1 = vmov 0.0   ;;  %v258_v2 = vld [vmem:[#allocation6] sm:$0xff]  }
  0x38   :  { %164 = vmatprep.subr.bf16.mxu0 %v369_v0  ;;  %58 = vst.msk [vmem:[#allocation2] sm:$0xff] %vm57_vm0, %v370_v1  ;;  %v259_v3 = vld [vmem:[#allocation6 + $0x8] sm:$0xff]   ;;  %v260_v4 = vld [vmem:[#allocation6 + $0x10] sm:$0xff]   ;;  %v261_v5 = vld [vmem:[#allocation6 + $0x18] sm:$0xff]   ;;  %vm160_vm1 = vcmask 523264   ;;  %s371_s2 = smov [#allocation9]  }
  0x39   :  { %165 = vmatpush1.bf16.msra.mxu0 %v258_v2  ;;  %v61_v6 = vld [vmem:[#allocation3 + $0x8] sm:$0xff]  ;;  %v262_v8 = vld [vmem:[#allocation6 + $0x20] sm:$0xff]   ;;  %v263_v9 = vld [vmem:[#allocation6 + $0x28] sm:$0xff]   ;;  %s226_s22 = sshll.u32 %s371_s2, 4  ;;  %s227_s22 = int_to_ptr.vmem [resolvable:$true] %s226_s22 }
  0x3a   :  { %166 = vmatprep.subr.bf16.mxu0 %v369_v0  ;;  %v63_v7 = vpack.c.bf16 %v61_v6, %v61_v6  ;;  %v264_v10 = vld [vmem:[#allocation6 + $0x30] sm:$0xff]   ;;  %v265_v11 = vld [vmem:[#allocation6 + $0x38] sm:$0xff]   ;;  %v266_v12 = vld [vmem:[#allocation6 + $0x40] sm:$0xff]   ;;  %s336_s23 = scalar_lea.vmem %s227_s22, 128  ;;  %p341_p11 = scmp.lt.s32.totalorder %s227_s22, %s227_s22 }
  0x3b   :  { %v267_v13 = vld [vmem:[#allocation6 + $0x48] sm:$0xff]   ;;  %v268_v14 = vld [vmem:[#allocation6 + $0x50] sm:$0xff]   ;;  %v269_v15 = vld [vmem:[#allocation6 + $0x58] sm:$0xff]   ;;  %p337_p10 = scmp.ne.s32.totalorder %s227_s22, %s336_s23  ;;  %p342_p12 = scmp.lt.s32.totalorder %s336_s23, %s336_s23 }
  0x3c   :  { %248 = vmatprep.mubr.msk.bf16.mxu0 %vm160_vm1, %v63_v7  ;;  %v60_v16 = vld [vmem:[#allocation3] sm:$0xff]  ;;  %v249_v24 = vld [vmem:[#allocation8] ss:$0 sm:$0xff] }
  0x3d   :  { %167 = vmatpush1.bf16.msra.mxu0 %v259_v3  ;;  %v62_v17 = vpack.c.bf16 %v60_v16, %v60_v16  ;;  %p343_p13 = por %p342_p12, %p341_p11 }
  0x3e   :  { %168 = vmatprep.subr.bf16.mxu0 %v369_v0 }
  0x3f   :  { %v59_v18 = vld [vmem:[#allocation2] sm:$0xff]  ;;  %p344_p0 = pnand %p343_p13, %p337_p10 }
  0x41   :  { %169 = vmatpush1.bf16.msra.mxu0 %v260_v4 }
  0x42   :  { %170 = vmatprep.subr.bf16.mxu0 %v369_v0 }
  0x45   :  { %171 = vmatpush1.bf16.msra.mxu0 %v261_v5 }
  0x46   :  { %172 = vmatprep.subr.bf16.mxu0 %v369_v0 }
  0x49   :  { %173 = vmatpush1.bf16.msra.mxu0 %v262_v8 }
  0x4a   :  { %174 = vmatprep.subr.bf16.mxu0 %v369_v0 }
  0x4d   :  { %175 = vmatpush1.bf16.msra.mxu0 %v263_v9 }
  0x4e   :  { %176 = vmatprep.subr.bf16.mxu0 %v369_v0 }
  0x51   :  { %177 = vmatpush1.bf16.msra.mxu0 %v264_v10 }
  0x52   :  { %178 = vmatprep.subr.bf16.mxu0 %v369_v0 }
  0x55   :  { %179 = vmatpush1.bf16.msra.mxu0 %v265_v11 }
  0x56   :  { %180 = vmatprep.subr.bf16.mxu0 %v369_v0 }
  0x59   :  { %181 = vmatpush1.bf16.msra.mxu0 %v266_v12 }
  0x5a   :  { %182 = vmatprep.subr.bf16.mxu0 %v369_v0 }
  0x5d   :  { %183 = vmatpush1.bf16.msra.mxu0 %v267_v13 }
  0x5e   :  { %184 = vmatprep.subr.bf16.mxu0 %v369_v0 }
  0x61   :  { %185 = vmatpush1.bf16.msra.mxu0 %v268_v14 }
  0x62   :  { %186 = vmatprep.subr.bf16.mxu0 %v369_v0 }
  0x65   :  { %187 = vmatpush1.bf16.msra.mxu0 %v269_v15 }
  0x68   :  { %197 = vmatmul.mubr.bf16.vlgmr.msra.gmra.mrb[0].mxu0 %v62_v17 }
 0x13b   :  { %v198_v19 = vpop.f32.mrb[0].mxu0 }
 0x13c   :  { %v204_v20 = vadd.f32 %v198_v19, %v59_v18  ;;  %v200_v21 = vpop.f32.mrb[1].mxu0 }
 0x13d   :  { %v201_v22 = vpop.f32.mrb[2].mxu0 }
 0x13e   :  { %206 = vst.msk [vmem:[#allocation2] sm:$0xff] %vm57_vm0, %v204_v20  ;;  %v202_v23 = vpop.f32.mrb[3].mxu0 }
 0x145   :  { %v210_v25 = vld [vmem:[#allocation2] sm:$0xff] }
 0x146   :  { %v218_v26 = vadd.f32 %v249_v24, %v210_v25 }
 0x148   :  { %219 = vst.msk [vmem:[#allocation9] sm:$0xff] %vm57_vm0, %v218_v26 }
 0x149   :  { %347 = shalt.err (!%p344_p0)
}
 0x14a   :  { %s348_s26 = scalar_lea.hbm %s446_s3, 128 }
 0x14b   :  { %p349_p1 = scmp.ne.s32.totalorder %s446_s3, %s348_s26  ;;  %p352_p2 = scmp.lt.u32.totalorder %s348_s26, %s446_s3 }
 0x14d   :  { %p354_p3 = pnand %p352_p2, %p349_p1 }
 0x14f   :  { %357 = shalt.err (!%p354_p3)
}
 0x150   :  { %229 = dma.vmem_to_hbm [thread:$0]  %s227_s22, 128, %s446_s3, [#allocation5]  }
 0x151   :  { %362 = dma.done.wait [#allocation5], 128  }
 0x152   :  { %363 = vsyncadd [#allocation5], 4294967168 }
 0x153   :  { %233 = vsyncpa [#allocation4], 1 }
 0x154   :  { %234 = vsyncpa [#allocation7], 1 }
 0x155   :  { %235 = vsyncpa [#allocation5], 1 }

// kernel: vit_forward.14
= control target key start
LH: loop header
LB: loop body
LE: loop exit
PB: predicated region body
PF: predicated region fallthrough
CT: control target
= control target key end

     0   :  { %9 = vsyncpa [#allocation3], 0  ;;  %s1909_s0 = inlined_call_operand.hbm [shape: bf16[2,5,96], index: 0, kind: input, shape index: {}]   ;;  %s1910_s1 = inlined_call_operand.hbm [shape: bf16[32,32], index: 1, kind: input, shape index: {}]   ;;  %s1911_s2 = inlined_call_operand.hbm [shape: f32[1,32], index: 2, kind: input, shape index: {}]   ;;  %s1912_s3 = inlined_call_operand.hbm [shape: f32[2,5,32], index: 3, kind: input, shape index: {}]   ;;  %s1913_s4 = inlined_call_operand.hbm [shape: f32[2,5,32], index: 4, kind: output, shape index: {}]  }
   0x1   :  { %11 = vsyncpa [#allocation3 + $0x1], 0 }
   0x2   :  { %12 = vsyncpa [#allocation6], 0 }
   0x3   :  { %13 = vsyncpa [#allocation9], 0 }
   0x4   :  { %15 = vsyncpa [#allocation9 + $0x1], 0 }
   0x5   :  { %16 = vsyncpa [#allocation4], 0 }
   0x6   :  { %18 = vsyncpa [#allocation4 + $0x1], 0  ;;  %s1550_s15 = smov 0   ;;  %s1552_s16 = smov 0  }
   0x7   :  { %s1554_s17 = smov 0   ;;  %s1556_s18 = smov 0  }
   0x8 LB: > { %s1571_s19 = sadd.s32 4294967295, %s1502_s18   ;;  %s1065_s20 = sadd.s32 4294967294, %s1502_s18   ;;  %s1502_s18 = sphi %s1556_s18, %s1935_s18   ;;  %s1498_s17 = sphi %s1554_s17, %s1934_s17   ;;  %s1494_s16 = sphi %s1552_s16, %s1933_s16   ;;  %s1490_s15 = sphi %s1550_s15, %s1932_s15  }
   0x9   : > { %p44_p0 = scmp.ne.s32.totalorder %s1494_s16, %s1490_s15  ;;  %p1914_p1 = scmp.eq.s32.totalorder %s1571_s19, 0 }
   0xa   : > { %p142_p3 = scmp.eq.s32.totalorder %s1065_s20, 1  ;;  %p1066_p5 = scmp.ge.s32.totalorder %s1502_s18, 1 }
   0xb   : > { %p1580_p4 = por %p1914_p1, %p44_p0  ;;  %p149_p7 = scmp.lt.s32.totalorder %s1502_s18, 3 }
   0xc   : > { %p1585_p6 = por %p142_p3, %p44_p0  ;;  %s1504_s24 = smov [#allocation5]  }
   0xd   : > { %s1918_s21 = scalar_select %p1580_p4, 1, 0 }
   0xe   : > { %s1919_s22 = scalar_select %p1585_p6, 1, 0 }
   0xf   : > { %p1590_p8 = pnand %p1066_p5, %p149_p7  ;;  %s161_s25 = sshll.u32 %s1504_s24, 4  ;;  %s1594_s25 = int_to_ptr.vmem [resolvable:$true] %s161_s25 }
  0x10   : > { %s1505_s27 = smov [#allocation7]   ;;  %s1312_s5 = scalar_lea.hbm %s1910_s1, 256 }
  0x11   : > { %s1920_s23 = scalar_select %p1590_p8, 1, 0 }
  0x12   : > { %p1221_p9 = pneg %p1590_p8  ;;  %s175_s28 = sshll.u32 %s1505_s27, 4  ;;  %s1605_s28 = int_to_ptr.vmem [resolvable:$true] %s175_s28 }
  0x13   : > { %p1313_p12 = scmp.ne.s32.totalorder %s1910_s1, %s1312_s5  ;;  %p1319_p5 = scmp.lt.u32.totalorder %s1312_s5, %s1910_s1 }
  0x14   : > { %p1601_p11 = pnand %p1221_p9, %p1914_p1 }
  0x16   : > { %p1314_p13 = pneg %p1601_p11 }
  0x18   : > { %p1315_p0 = pnand %p1314_p13, %p1313_p12 }
  0x1a   : > { %p1316_p3 = pneg %p1315_p0 }
  0x1c   : > { %p1321_p7 = pnand %p1319_p5, %p1316_p3 }
  0x1e   : > { %1324 = shalt.err (!%p1321_p7)
}
  0x1f   : > { %s1325_s10 = scalar_lea.vmem %s1594_s25, 256  ;;  %p1333_p2 = scmp.lt.s32.totalorder %s1594_s25, %s1594_s25 }
  0x20   : > { %p1326_p9 = scmp.ne.s32.totalorder %s1594_s25, %s1325_s10  ;;  %p1334_p12 = scmp.lt.s32.totalorder %s1325_s10, %s1325_s10 }
  0x22   : > { %p1328_p10 = pnand %p1326_p9, %p1314_p13  ;;  %p1335_p0 = por %p1334_p12, %p1333_p2 }
  0x24   : > { %p1329_p1 = pneg %p1328_p10 }
  0x26   : > { %p1336_p6 = pnand %p1335_p0, %p1329_p1 }
  0x28   : > { %1339 = shalt.err (!%p1336_p6)
}
  0x29   : > { %s1506_s11 = smov 64   ;;  %s1507_s12 = smov 4  }
  0x2a   : > { %1224 = dma.hbm_to_vmem [thread:$0]  (!%p1601_p11), %s1910_s1, 256, %s1594_s25, [#allocation6], %s1506_s11, %s1506_s11, %s1507_s12  }
  0x2b   : > { %s1340_s27 = scalar_lea.hbm %s1911_s2, 16 }
  0x2c   : > { %p1341_p2 = scmp.ne.s32.totalorder %s1911_s2, %s1340_s27  ;;  %p1347_p10 = scmp.lt.u32.totalorder %s1340_s27, %s1911_s2 }
  0x2e   : > { %p1343_p1 = pnand %p1341_p2, %p1314_p13 }
  0x30   : > { %p1344_p6 = pneg %p1343_p1 }
  0x32   : > { %p1349_p3 = pnand %p1347_p10, %p1344_p6 }
  0x34   : > { %1352 = shalt.err (!%p1349_p3)
}
  0x35   : > { %s1353_s25 = scalar_lea.vmem %s1605_s28, 16  ;;  %s1360_s7 = scalar_lea.vmem %s1605_s28, 32 }
  0x36   : > { %p1354_p5 = scmp.ne.s32.totalorder %s1605_s28, %s1353_s25  ;;  %p1361_p12 = scmp.lt.s32.totalorder %s1605_s28, %s1605_s28 }
  0x37   : > { %p1362_p0 = scmp.lt.s32.totalorder %s1360_s7, %s1353_s25 }
  0x38   : > { %p1356_p7 = pnand %p1354_p5, %p1314_p13 }
  0x39   : > { %p1363_p2 = por %p1362_p0, %p1361_p12 }
  0x3a   : > { %p1357_p9 = pneg %p1356_p7 }
  0x3c   : > { %p1364_p1 = pnand %p1363_p2, %p1357_p9 }
  0x3e   : > { %1367 = shalt.err (!%p1364_p1)
}
  0x3f   : > { %1227 = dma.hbm_to_vmem [thread:$0]  (!%p1601_p11), %s1911_s2, 16, %s1605_s28, [#allocation6]  }
  0x40   : > { %s1661_s10 = sadd.s32 1, %s1502_s18   ;;  %s31_s26 = sadd.s32 1, %s1498_s17 }
  0x41   : > { %s28_s11 = ssub.s32 %s1502_s18, %s1661_s10  ;;  %p38_p13 = scmp.ne.s32.totalorder %s1498_s17, %s1494_s16 }
  0x42   : > { %p29_p6 = scmp.eq.s32.totalorder %s28_s11, 0  ;;  %p39_p10 = scmp.eq.s32.totalorder %s1502_s18, 0 }
  0x43   : > { %p1922_p3 = scmp.eq.s32.totalorder %s1571_s19, 1  ;;  %p1241_p7 = scmp.lt.s32.totalorder %s1502_s18, 2 }
  0x44   : > { %s1677_s13 = scalar_select %p29_p6, %s1498_s17, %s31_s26  }
  0x45   : > { %p1671_p5 = por %p1922_p3, %p38_p13  ;;  %p40_p9 = por %p39_p10, %p38_p13 }
  0x46   : > { %s1680_s14 = sand.u32 1, %s1498_s17   ;;  %s1071_s20 = sshll.u32 %s1502_s18, 6 }
  0x47   : > { %s1923_s12 = scalar_select %p1671_p5, 1, 0 }
  0x48   : > { %s1070_s28 = sshll.u32 %s1680_s14, 2  ;;  %s1687_s29 = scalar_lea.hbm %s1909_s0, %s1071_s20 }
  0x49   : > { %s190_s30 = scalar_lea.vmem [#allocation2], %s1070_s28  ;;  %p1691_p11 = pnand %p1241_p7, %p40_p9 }
  0x4a   : > { %s197_s5 = sshll.u32 %s190_s30, 4  ;;  %s1072_s25 = sshll.u32 %s1680_s14, 3  ;;  %s1689_s5 = int_to_ptr.vmem [resolvable:$true] %s197_s5 }
  0x4b   : > { %s187_s7 = scalar_lea.sflag [#allocation3], %s1680_s14  ;;  %s1368_s8 = scalar_lea.hbm %s1687_s29, 64 }
  0x4c   : > { %p1369_p12 = scmp.ne.s32.totalorder %s1687_s29, %s1368_s8  ;;  %p1370_p0 = pneg %p1691_p11 }
  0x4d   : > { %s1373_s11 = scalar_lea.hbm %s1909_s0, 128  ;;  %p1374_p13 = scmp.lt.u32.totalorder %s1687_s29, %s1909_s0 }
  0x4e   : > { %p1371_p2 = pnand %p1370_p0, %p1369_p12  ;;  %p1375_p6 = scmp.lt.u32.totalorder %s1373_s11, %s1368_s8 }
  0x4f   : > { %p1377_p3 = scmp.lt.u32.totalorder %s1368_s8, %s1687_s29 }
  0x50   : > { %p1372_p1 = pneg %p1371_p2  ;;  %p1376_p10 = por %p1375_p6, %p1374_p13 }
  0x52   : > { %p1378_p7 = por %p1377_p3, %p1376_p10 }
  0x54   : > { %p1379_p9 = pnand %p1378_p7, %p1372_p1 }
  0x56   : > { %1382 = shalt.err (!%p1379_p9)
}
  0x57   : > { %s1383_s24 = scalar_lea.vmem %s1689_s5, 64  ;;  %s1508_s27 = smov [#allocation2]  }
  0x58   : > { %p1384_p12 = scmp.ne.s32.totalorder %s1689_s5, %s1383_s24  ;;  %s1388_s30 = sshll.u32 %s1508_s27, 4  ;;  %s1389_s30 = int_to_ptr.vmem [resolvable:$false] %s1388_s30 }
  0x59   : > { %s1390_s9 = scalar_lea.vmem %s1389_s30, 128  ;;  %p1391_p4 = scmp.lt.s32.totalorder %s1689_s5, %s1389_s30 }
  0x5a   : > { %p1386_p2 = pnand %p1384_p12, %p1370_p0  ;;  %p1392_p13 = scmp.lt.s32.totalorder %s1390_s9, %s1383_s24 }
  0x5c   : > { %p1387_p5 = pneg %p1386_p2  ;;  %p1393_p6 = por %p1392_p13, %p1391_p4 }
  0x5e   : > { %p1394_p10 = pnand %p1393_p6, %p1387_p5 }
  0x60   : > { %1397 = shalt.err (!%p1394_p10)
}
  0x61   : > { %1231 = dma.hbm_to_vmem [thread:$0]  (!%p1691_p11), %s1687_s29, 64, %s1689_s5, %s187_s7  }
  0x62   : > { %s1073_s8 = sshll.u32 %s1502_s18, 7  ;;  %s208_s26 = scalar_lea.vmem [#allocation8], %s1072_s25 }
  0x63   : > { %s215_s11 = sshll.u32 %s208_s26, 4  ;;  %s1728_s24 = scalar_lea.hbm %s1912_s3, %s1073_s8  ;;  %s216_s11 = int_to_ptr.vmem [resolvable:$true] %s215_s11 }
  0x64   : > { %s205_s27 = scalar_lea.sflag [#allocation9], %s1680_s14  ;;  %s1398_s30 = scalar_lea.hbm %s1728_s24, 128 }
  0x65   : > { %p1399_p4 = scmp.ne.s32.totalorder %s1728_s24, %s1398_s30  ;;  %s1403_s25 = scalar_lea.hbm %s1912_s3, 256 }
  0x66   : > { %p1404_p3 = scmp.lt.u32.totalorder %s1728_s24, %s1912_s3  ;;  %p1405_p7 = scmp.lt.u32.totalorder %s1403_s25, %s1398_s30 }
  0x67   : > { %p1401_p5 = pnand %p1399_p4, %p1370_p0  ;;  %p1407_p12 = scmp.lt.u32.totalorder %s1398_s30, %s1728_s24 }
  0x68   : > { %p1406_p9 = por %p1405_p7, %p1404_p3 }
  0x69   : > { %p1402_p1 = pneg %p1401_p5 }
  0x6a   : > { %p1408_p2 = por %p1407_p12, %p1406_p9 }
  0x6c   : > { %p1409_p13 = pnand %p1408_p2, %p1402_p1 }
  0x6e   : > { %1412 = shalt.err (!%p1409_p13)
}
  0x6f   : > { %s1413_s14 = scalar_lea.vmem %s216_s11, 128  ;;  %s1509_s8 = smov [#allocation8]  }
  0x70   : > { %p1414_p6 = scmp.ne.s32.totalorder %s216_s11, %s1413_s14  ;;  %s1418_s26 = sshll.u32 %s1509_s8, 4  ;;  %s1419_s26 = int_to_ptr.vmem [resolvable:$false] %s1418_s26 }
  0x71   : > { %s1420_s28 = scalar_lea.vmem %s1419_s26, 256  ;;  %p1421_p5 = scmp.lt.s32.totalorder %s216_s11, %s1419_s26 }
  0x72   : > { %p1416_p10 = pnand %p1414_p6, %p1370_p0  ;;  %p1422_p8 = scmp.lt.s32.totalorder %s1420_s28, %s1413_s14 }
  0x74   : > { %p1417_p4 = pneg %p1416_p10  ;;  %p1423_p3 = por %p1422_p8, %p1421_p5 }
  0x76   : > { %p1424_p7 = pnand %p1423_p3, %p1417_p4 }
  0x78   : > { %1427 = shalt.err (!%p1424_p7)
}
  0x79   : > { %1234 = dma.hbm_to_vmem [thread:$0]  (!%p1691_p11), %s1728_s24, 128, %s216_s11, %s205_s27  }
  0x7a   : > { %p1925_p1 = scmp.ne.s32.totalorder %s1920_s23, 0 }
  0x7b   : > { %s1753_s20 = sand.u32 (!%p1925_p1), 1, %s1494_s16   ;;  %p1926_p0 = scmp.ne.s32.totalorder (!%p1925_p1), %s1918_s21, 0 }
  0x7c   : > { %224 = sbr.rel (%p1925_p1) target bundleno = 2320 (0x910), region = 36  ;;  %s1075_s30 = sshll.u32 (!%p1925_p1), %s1753_s20, 2 }
  0x7d   : > { %s227_s29 = scalar_lea.sflag (!%p1925_p1), [#allocation3], %s1753_s20  ;;  %s230_s5 = scalar_lea.vmem (!%p1925_p1), [#allocation2], %s1075_s30 }
  0x83   : > { %1473 = dma.done.wait (%p1926_p0), %s227_s29, 64  }
  0x84   : > { %1475 = vsyncadd (%p1926_p0), %s227_s29, 4294967232  ;;  %p1927_p8 = scmp.eq.s32.totalorder %s1571_s19, 0 }
  0x86   : > { %1477 = dma.done.wait (%p1927_p8), [#allocation6], 272   ;;  %p1928_p11 = pmov %p1927_p8 }
  0x87   : > { %s1078_s23 = sshll.u32 %s1753_s20, 3  ;;  %s244_s6 = scalar_lea.sflag [#allocation9], %s1753_s20 }
  0x88   : > { %1479 = vsyncadd (%p1928_p11), [#allocation6], 4294967024  ;;  %s1769_s11 = scalar_lea.vmem [#allocation8], %s1078_s23 }
  0x89   : > { %1481 = dma.done.wait (%p1926_p0), %s244_s6, 128  }
  0x8a   : > { %1483 = vsyncadd (%p1926_p0), %s244_s6, 4294967168  ;;  %v1510_v0 = vmov 0.0   ;;  %vm1511_vm0 = vmmov 0   ;;  %v278_v1 = vld [vmem:[%s230_s5] sm:$0x7]  ;;  %s1512_s24 = smov 96  }
  0x8b   : > { %1122 = vmatprep.subr.bf16.mxu0 %v1510_v0  ;;  %1124 = vmatprep.mubr.msk.bf16.mxu0 %vm1511_vm0, %v1510_v0  ;;  %v1781_v2 = vcombine.low %v278_v1, %v278_v1  ;;  %vm293_vm1 = vcmask 64512   ;;  %s1513_s21 = smov 64   ;;  %s1514_s27 = smov 88   ;;  %vm341_vm2 = vcmask 36864   ;;  %vm360_vm3 = vcmask 1041408  }
  0x8c   : > { %1134 = vmatprep.subr.bf16.mxu1 %v1510_v0  ;;  %1136 = vmatprep.mubr.msk.bf16.mxu1 %vm1511_vm0, %v1510_v0  ;;  %vm361_vm4 = vcmask 1042432   ;;  %v1515_v12 = vmov 65535   ;;  %s1516_s25 = smov 120   ;;  %s1517_s7 = smov 80   ;;  %vm356_vm5 = vcmask 39936   ;;  %vm412_vm6 = vcmask 1043456  }
  0x8d   : > { %291 = vrot.lane.b32.xlu0 %v1781_v2, %s1512_s24  ;;  %354 = vrot.lane.b32.xlu1 %v1781_v2, %s1513_s21  ;;  %v362_v13 = vsel %vm360_vm3, 4294967295, %v1515_v12  ;;  %s1518_s9 = smov 112   ;;  %v408_v31 = vld [vmem:[#allocation5] sm:$0xf]  ;;  %s1519_s14 = smov 48   ;;  %vm937_vm7 = vcmask 258048  }
  0x8e   : > { %v1792_v14 = vsel %vm361_vm4, %v362_v13, 0  ;;  %v414_v32 = vsel %vm412_vm6, %v408_v31, 0  ;;  %s1520_s8 = smov 72   ;;  %s1521_s26 = smov 104   ;;  %v569_v13 = vld [vmem:[#allocation5 + $0x4] sm:$0xf] }
  0x8f   : > { %1135 = vmatpush3.bf16.msra.mxu1 %v414_v32  ;;  %s1522_s28 = smov 56   ;;  %s1523_s30 = smov 40  }
  0x90   : > { %1146 = vmatprep.subr.bf16.mxu1 %v1510_v0  ;;  %s1095_s29 = sshll.u32 %s1571_s19, 7  ;;  %s276_s5 = scalar_lea.vmem [#allocation10], %s1078_s23 }
  0x91   : > { %459 = vrot.lane.b32.xlu1 %v1781_v2, %s1514_s27  ;;  %s953_s6 = sshll.u32 %s276_s5, 4  ;;  %s1865_s27 = scalar_lea.hbm %s1913_s4, %s1095_s29  ;;  %s1867_s6 = int_to_ptr.vmem [resolvable:$true] %s953_s6 }
  0x92   : > { %s940_s19 = scalar_lea.sflag [#allocation4], %s1753_s20  ;;  %s1428_s23 = scalar_lea.vmem %s1867_s6, 128 }
  0x93   : > { %p1429_p9 = scmp.ne.s32.totalorder %s1867_s6, %s1428_s23  ;;  %p1929_p12 = scmp.ne.s32.totalorder %s1923_s12, 0 }
  0x95   : > { %p1430_p2 = pnand %p1429_p9, %p1929_p12 }
  0x97   : > { %p1431_p13 = pneg %p1430_p2 }
  0xff   : > { %v292_v3 = vpop.permute.xlu0 %291  ;;  %v355_v11 = vpop.permute.xlu1 %354 }
 0x100   : > { %v298_v4 = vsel %vm293_vm1, %v292_v3, 0  ;;  %v365_v15 = vand.u32 %v1792_v14, %v355_v11 }
 0x101   : > { %1123 = vmatpush3.bf16.xpose.msra.mxu0 %v298_v4 }
 0x102   : > { %1128 = vmatprep.subr.bf16.mxu0 %v1510_v0 }
 0x103   : > { %v460_v21 = vpop.permute.xlu1 %459 }
 0x104   : > { %v465_v27 = vsel %vm293_vm1, %v460_v21, 0 }
 0x108   : > { %1125 = vmatmul.mubr.msk.bf16.vlgmr.msra.gmra.mrb[0].mxu0 %vm293_vm1, %v278_v1 }
 0x109   : > { %1130 = vmatprep.mubr.msk.bf16.mxu0 %vm1511_vm0, %v1510_v0  ;;  %1129 = vmatpush3.bf16.msra.mxu0 %v365_v15  ;;  %v574_v15 = vsel %vm412_vm6, %v569_v13, 0 }
 0x10a   : > { %1140 = vmatprep.subr.bf16.mxu0 %v1510_v0 }
 0x1db   : > { %v334_v5 = vpop.f32.mrb[0].mxu0 }
 0x1dc   : > { %v340_v6 = vmul.f32 0.35355338, %v334_v5  ;;  %v1126_v7 = vpop.f32.mrb[1].mxu0 }
 0x1dd   : > { %v337_v8 = vpop.f32.mrb[2].mxu0 }
 0x1de   : > { %v1127_v9 = vpop.f32.mrb[3].mxu0  ;;  %v342_v10 = vsel %vm341_vm2, %v340_v6, -inf }
 0x1df   : > { %343 = vmax.xlane.f32.xlu0 %v342_v10 }
 0x26c   : > { %v344_v16 = vpop.xlane.xlu0 %343 }
 0x26d   : > { %v345_v17 = vsub.f32 %v340_v6, %v344_v16 }
 0x26f   : > { %v346_v18 = vmul.f32 1.442695, %v345_v17 }
 0x271   : > { %1296 = vpow2.f32 %v346_v18 }
 0x27b   : > { %v1297_v19 = vpop.eup %1296 }
 0x27c   : > { %v348_v20 = vsel %vm341_vm2, %v1297_v19, 0.0 }
 0x27d   : > { %349 = vadd.xlane.f32.xlu1 %v348_v20 }
 0x28e   : > { %457 = vrot.lane.b32.xlu1 %v1781_v2, %s1516_s25 }
 0x292   : > { %619 = vrot.lane.b32.xlu1 %v1781_v2, %s1517_s7 }
 0x296   : > { %617 = vrot.lane.b32.xlu1 %v1781_v2, %s1518_s9 }
 0x30a   : > { %v350_v22 = vpop.xlane.xlu1 %349 }
 0x30b   : > { %1298 = vrcp.f32 %v350_v22 }
 0x30e   : > { %v458_v25 = vpop.permute.xlu1 %457 }
 0x312   : > { %v620_v28 = vpop.permute.xlu1 %619 }
 0x313   : > { %v625_v29 = vsel %vm293_vm1, %v620_v28, 0 }
 0x315   : > { %v1299_v23 = vpop.eup %1298 }
 0x316   : > { %v352_v24 = vmul.f32 %v1299_v23, %v1297_v19  ;;  %v618_v30 = vpop.permute.xlu1 %617 }
 0x318   : > { %v353_v26 = vpack.c.bf16 %v352_v24, %v352_v24 }
 0x31a   : > { %1131 = vmatmul.mubr.msk.bf16.vlgmr.msra.gmra.mrb[4].mxu0 %vm356_vm5, %v353_v26  ;;  %v729_v26 = vld [vmem:[#allocation5 + $0x8] sm:$0xf] }
 0x31b   : > { %1141 = vmatpush3.bf16.xpose.msra.mxu0 %v465_v27  ;;  %1142 = vmatprep.mubr.msk.bf16.mxu0 %vm1511_vm0, %v1510_v0 }
 0x31c   : > { %1158 = vmatprep.subr.bf16.mxu0 %v1510_v0 }
 0x322   : > { %1143 = vmatmul.mubr.msk.bf16.vlgmr.msra.gmra.mrb[8].mxu0 %vm293_vm1, %v458_v25 }
 0x323   : > { %1159 = vmatpush3.bf16.xpose.msra.mxu0 %v625_v29  ;;  %1160 = vmatprep.mubr.msk.bf16.mxu0 %vm1511_vm0, %v1510_v0 }
 0x324   : > { %1164 = vmatprep.subr.bf16.mxu0 %v1510_v0 }
 0x32a   : > { %1161 = vmatmul.mubr.msk.bf16.vlgmr.msra.gmra.mrb[12].mxu0 %vm293_vm1, %v618_v30  ;;  %v734_v30 = vsel %vm412_vm6, %v729_v26, 0 }
 0x32b   : > { %1166 = vmatprep.mubr.msk.bf16.mxu0 %vm1511_vm0, %v1510_v0 }
 0x3ed   : > { %v401_v33 = vpop.f32.mrb[4].mxu0 }
 0x3ee   : > { %v407_v34 = vpack.c.bf16 %v401_v33, %v401_v33  ;;  %v1132_v35 = vpop.f32.mrb[5].mxu0 }
 0x3ef   : > { %v404_v36 = vpop.f32.mrb[6].mxu0 }
 0x3f0   : > { %v1133_v37 = vpop.f32.mrb[7].mxu0  ;;  %1137 = vmatmul.mubr.msk.bf16.vlgmr.msra.gmra.mrb[0].mxu1 %vm293_vm1, %v407_v34 }
 0x3f1   : > { %1148 = vmatprep.mubr.msk.bf16.mxu1 %vm1511_vm0, %v1510_v0 }
 0x3f5   : > { %v501_v38 = vpop.f32.mrb[8].mxu0 }
 0x3f6   : > { %v1144_v39 = vpop.f32.mrb[9].mxu0  ;;  %v507_v48 = vmul.f32 0.35355338, %v501_v38 }
 0x3f7   : > { %v504_v40 = vpop.f32.mrb[10].mxu0 }
 0x3f8   : > { %v1145_v41 = vpop.f32.mrb[11].mxu0  ;;  %v508_v49 = vsel %vm341_vm2, %v507_v48, -inf }
 0x3fd   : > { %v661_v42 = vpop.f32.mrb[12].mxu0 }
 0x3fe   : > { %v667_v43 = vmul.f32 0.35355338, %v661_v42  ;;  %v1162_v44 = vpop.f32.mrb[13].mxu0 }
 0x3ff   : > { %v664_v45 = vpop.f32.mrb[14].mxu0 }
 0x400   : > { %v1163_v46 = vpop.f32.mrb[15].mxu0  ;;  %v668_v47 = vsel %vm341_vm2, %v667_v43, -inf }
 0x401   : > { %669 = vmax.xlane.f32.xlu0 %v668_v47 }
 0x417   : > { %680 = vrot.lane.b32.xlu0 %v1781_v2, %s1519_s14 }
 0x41b   : > { %779 = vrot.lane.b32.xlu0 %v1781_v2, %s1520_s8 }
 0x41f   : > { %777 = vrot.lane.b32.xlu0 %v1781_v2, %s1521_s26 }
 0x43e   : > { %509 = vmax.xlane.f32.xlu0 %v508_v49 }
 0x48e   : > { %v670_v50 = vpop.xlane.xlu0 %669 }
 0x48f   : > { %v671_v51 = vsub.f32 %v667_v43, %v670_v50  ;;  %v889_v43 = vld [vmem:[#allocation5 + $0xc] sm:$0xf]  ;;  %v279_v50 = vld [vmem:[%s1769_s11] sm:$0x1f]  ;;  %s1524_s11 = smov [#allocation10]  }
 0x490   : > { %v894_v46 = vsel %vm412_vm6, %v889_v43, 0  ;;  %s1432_s25 = sshll.u32 %s1524_s11, 4  ;;  %s1433_s25 = int_to_ptr.vmem [resolvable:$false] %s1432_s25 }
 0x491   : > { %v672_v52 = vmul.f32 1.442695, %v671_v51  ;;  %v1080_v51 = vld [vmem:[#allocation7] ss:$0 sm:$0xff]  ;;  %s1434_s7 = scalar_lea.vmem %s1433_s25, 256  ;;  %p1435_p6 = scmp.lt.s32.totalorder %s1867_s6, %s1433_s25 }
 0x492   : > { %v681_v53 = vpop.permute.xlu0 %680  ;;  %p1436_p10 = scmp.lt.s32.totalorder %s1434_s7, %s1428_s23 }
 0x493   : > { %1300 = vpow2.f32 %v672_v52  ;;  %v686_v54 = vand.u32 %v681_v53, %v1792_v14  ;;  %v287_v52 = vadd.f32 %v1080_v51, %v279_v50 }
 0x494   : > { %p1437_p4 = por %p1436_p10, %p1435_p6 }
 0x495   : > { %1165 = vmatpush3.bf16.msra.mxu0 %v686_v54 }
 0x496   : > { %1176 = vmatprep.subr.bf16.mxu0 %v1510_v0  ;;  %v780_v57 = vpop.permute.xlu0 %779  ;;  %p1438_p5 = pnand %p1437_p4, %p1431_p13 }
 0x497   : > { %v785_v5 = vsel %vm293_vm1, %v780_v57, 0 }
 0x49a   : > { %v778_v58 = vpop.permute.xlu0 %777 }
 0x49d   : > { %v1301_v55 = vpop.eup %1300 }
 0x49e   : > { %v674_v56 = vsel %vm341_vm2, %v1301_v55, 0.0 }
 0x49f   : > { %675 = vadd.xlane.f32.xlu1 %v674_v56 }
 0x4cb   : > { %v510_v59 = vpop.xlane.xlu0 %509 }
 0x4cc   : > { %v511_v60 = vsub.f32 %v507_v48, %v510_v59 }
 0x4ce   : > { %v512_v61 = vmul.f32 1.442695, %v511_v60 }
 0x4d0   : > { %1302 = vpow2.f32 %v512_v61 }
 0x4da   : > { %v1303_v62 = vpop.eup %1302 }
 0x4db   : > { %v514_v63 = vsel %vm341_vm2, %v1303_v62, 0.0 }
 0x4dc   : > { %515 = vadd.xlane.f32.xlu1 %v514_v63 }
 0x4ed   : > { %520 = vrot.lane.b32.xlu1 %v1781_v2, %s1522_s28 }
 0x52c   : > { %v676_v1 = vpop.xlane.xlu1 %675 }
 0x52d   : > { %1304 = vrcp.f32 %v676_v1 }
 0x537   : > { %v1305_v3 = vpop.eup %1304 }
 0x538   : > { %v678_v4 = vmul.f32 %v1305_v3, %v1301_v55 }
 0x53a   : > { %v679_v6 = vpack.c.bf16 %v678_v4, %v678_v4 }
 0x53c   : > { %1167 = vmatmul.mubr.msk.bf16.vlgmr.msra.gmra.mrb[16].mxu0 %vm356_vm5, %v679_v6 }
 0x53d   : > { %1177 = vmatpush3.bf16.xpose.msra.mxu0 %v785_v5  ;;  %1178 = vmatprep.mubr.msk.bf16.mxu0 %vm1511_vm0, %v1510_v0 }
 0x544   : > { %1179 = vmatmul.mubr.msk.bf16.vlgmr.msra.gmra.mrb[20].mxu0 %vm293_vm1, %v778_v58 }
 0x569   : > { %v516_v7 = vpop.xlane.xlu1 %515 }
 0x56a   : > { %1306 = vrcp.f32 %v516_v7 }
 0x56d   : > { %v521_v8 = vpop.permute.xlu1 %520 }
 0x56e   : > { %v526_v9 = vand.u32 %v521_v8, %v1792_v14 }
 0x570   : > { %1147 = vmatpush3.bf16.msra.mxu1 %v526_v9 }
 0x571   : > { %1152 = vmatprep.subr.bf16.mxu1 %v1510_v0 }
 0x574   : > { %v1307_v10 = vpop.eup %1306 }
 0x575   : > { %v518_v11 = vmul.f32 %v1307_v10, %v1303_v62 }
 0x577   : > { %v519_v12 = vpack.c.bf16 %v518_v11, %v518_v11 }
 0x579   : > { %1149 = vmatmul.mubr.msk.bf16.vlgmr.msra.gmra.mrb[4].mxu1 %vm356_vm5, %v519_v12 }
 0x57a   : > { %1154 = vmatprep.mubr.msk.bf16.mxu1 %vm1511_vm0, %v1510_v0  ;;  %1153 = vmatpush3.bf16.msra.mxu1 %v574_v15 }
 0x57b   : > { %1170 = vmatprep.subr.bf16.mxu1 %v1510_v0 }
 0x60f   : > { %v722_v16 = vpop.f32.mrb[16].mxu0 }
 0x610   : > { %v1168_v17 = vpop.f32.mrb[17].mxu0  ;;  %v728_v33 = vpack.c.bf16 %v722_v16, %v722_v16 }
 0x611   : > { %v725_v18 = vpop.f32.mrb[18].mxu0 }
 0x612   : > { %v1169_v19 = vpop.f32.mrb[19].mxu0 }
 0x617   : > { %v821_v20 = vpop.f32.mrb[20].mxu0 }
 0x618   : > { %v827_v21 = vmul.f32 0.35355338, %v821_v20  ;;  %v1180_v22 = vpop.f32.mrb[21].mxu0 }
 0x619   : > { %v824_v23 = vpop.f32.mrb[22].mxu0 }
 0x61a   : > { %v1181_v24 = vpop.f32.mrb[23].mxu0  ;;  %v828_v25 = vsel %vm341_vm2, %v827_v21, -inf }
 0x61b   : > { %829 = vmax.xlane.f32.xlu1 %v828_v25 }
 0x64c   : > { %v562_v27 = vpop.f32.mrb[4].mxu1 }
 0x64d   : > { %v568_v28 = vpack.c.bf16 %v562_v27, %v562_v27  ;;  %v1150_v29 = vpop.f32.mrb[5].mxu1 }
 0x64e   : > { %v565_v31 = vpop.f32.mrb[6].mxu1 }
 0x64f   : > { %v1151_v32 = vpop.f32.mrb[7].mxu1  ;;  %1155 = vmatmul.mubr.msk.bf16.vlgmr.msra.gmra.mrb[0].mxu1 %vm293_vm1, %v568_v28 }
 0x650   : > { %1171 = vmatpush3.bf16.msra.mxu1 %v734_v30  ;;  %1172 = vmatprep.mubr.msk.bf16.mxu1 %vm1511_vm0, %v1510_v0 }
 0x651   : > { %1182 = vmatprep.subr.bf16.mxu1 %v1510_v0 }
 0x65b   : > { %1173 = vmatmul.mubr.msk.bf16.vlgmr.msra.gmra.mrb[0].mxu1 %vm293_vm1, %v728_v33 }
 0x65c   : > { %1184 = vmatprep.mubr.msk.bf16.mxu1 %vm1511_vm0, %v1510_v0 }
 0x6a8   : > { %v830_v34 = vpop.xlane.xlu1 %829 }
 0x6a9   : > { %v831_v35 = vsub.f32 %v827_v21, %v830_v34 }
 0x6ab   : > { %v832_v36 = vmul.f32 1.442695, %v831_v35 }
 0x6ad   : > { %1308 = vpow2.f32 %v832_v36 }
 0x6b7   : > { %v1309_v37 = vpop.eup %1308 }
 0x6b8   : > { %v834_v38 = vsel %vm341_vm2, %v1309_v37, 0.0 }
 0x6b9   : > { %835 = vadd.xlane.f32.xlu0 %v834_v38 }
 0x6cf   : > { %840 = vrot.lane.b32.xlu0 %v1781_v2, %s1523_s30 }
 0x746   : > { %v836_v39 = vpop.xlane.xlu0 %835 }
 0x747   : > { %1310 = vrcp.f32 %v836_v39 }
 0x74a   : > { %v841_v40 = vpop.permute.xlu0 %840 }
 0x74b   : > { %v846_v41 = vand.u32 %v841_v40, %v1792_v14 }
 0x74d   : > { %1183 = vmatpush3.bf16.msra.mxu1 %v846_v41 }
 0x74e   : > { %1188 = vmatprep.subr.bf16.mxu1 %v1510_v0 }
 0x751   : > { %v1311_v42 = vpop.eup %1310 }
 0x752   : > { %v838_v44 = vmul.f32 %v1311_v42, %v1309_v37 }
 0x754   : > { %v839_v45 = vpack.c.bf16 %v838_v44, %v838_v44 }
 0x756   : > { %1185 = vmatmul.mubr.msk.bf16.vlgmr.msra.gmra.mrb[8].mxu1 %vm356_vm5, %v839_v45 }
 0x757   : > { %1189 = vmatpush3.bf16.msra.mxu1 %v894_v46  ;;  %1190 = vmatprep.mubr.msk.bf16.mxu1 %vm1511_vm0, %v1510_v0 }
 0x829   : > { %v882_v2 = vpop.f32.mrb[8].mxu1 }
 0x82a   : > { %v888_v14 = vpack.c.bf16 %v882_v2, %v882_v2  ;;  %v1186_v47 = vpop.f32.mrb[9].mxu1 }
 0x82b   : > { %v885_v48 = vpop.f32.mrb[10].mxu1 }
 0x82c   : > { %v1187_v49 = vpop.f32.mrb[11].mxu1  ;;  %1191 = vmatmul.mubr.msk.bf16.vlgmr.msra.gmra.mrb[0].mxu1 %vm293_vm1, %v888_v14 }
 0x8ff   : > { %v930_v53 = vpop.f32.mrb[0].mxu1 }
 0x900   : > { %v1194_v54 = vadd.f32 %v930_v53, %v287_v52  ;;  %v1192_v0 = vpop.f32.mrb[1].mxu1 }
 0x901   : > { %v933_v55 = vpop.f32.mrb[2].mxu1 }
 0x902   : > { %v1193_v56 = vpop.f32.mrb[3].mxu1  ;;  %938 = vst.msk [vmem:[%s276_s5] sm:$0x1f] %vm937_vm7, %v1194_v54 }
 0x903   : > { %1441 = shalt.err (!%p1438_p5)
}
 0x904   : > { %s1442_s20 = scalar_lea.hbm %s1865_s27, 128  ;;  %s1446_s8 = scalar_lea.hbm %s1913_s4, 256 }
 0x905   : > { %p1443_p3 = scmp.ne.s32.totalorder %s1865_s27, %s1442_s20  ;;  %p1447_p0 = scmp.lt.u32.totalorder %s1865_s27, %s1913_s4 }
 0x906   : > { %p1448_p8 = scmp.lt.u32.totalorder %s1446_s8, %s1442_s20  ;;  %p1450_p9 = scmp.lt.u32.totalorder %s1442_s20, %s1865_s27 }
 0x907   : > { %p1444_p7 = pnand %p1443_p3, %p1929_p12 }
 0x908   : > { %p1449_p11 = por %p1448_p8, %p1447_p0 }
 0x909   : > { %p1445_p1 = pneg %p1444_p7 }
 0x90a   : > { %p1451_p2 = por %p1450_p9, %p1449_p11 }
 0x90c   : > { %p1452_p13 = pnand %p1451_p2, %p1445_p1 }
 0x90e   : > { %1455 = shalt.err (!%p1452_p13)
}
 0x90f   : > { %1219 = dma.vmem_to_hbm [thread:$0]  (%p1929_p12), %s1867_s6, 128, %s1865_s27, %s940_s19  }
 0x910 PF: > { %s965_s30 = sand.u32 1, %s1490_s15   ;;  %p1930_p6 = scmp.ne.s32.totalorder %s1919_s22, 0 }
 0x911   : > { %p1931_p10 = scmp.ge.s32.totalorder %s1502_s18, 2  ;;  %s966_s29 = scalar_lea.sflag [#allocation4], %s965_s30 }
 0x913   : > { %p1236_p4 = pnand %p1931_p10, %p1930_p6 }
 0x915   : > { %1485 = dma.done.wait (!%p1236_p4), %s966_s29, 128  }
 0x916   : > { %1487 = vsyncadd (!%p1236_p4), %s966_s29, 4294967168  ;;  %p21_p5 = scmp.ge.s32.totalorder %s1661_s10, 4   ;;  %s1932_s15 = smov %s1494_s16 }
 0x917   : > { %s1933_s16 = smov %s1498_s17  ;;  %s1934_s17 = smov %s1677_s13 }
 0x918   : > { %s1935_s18 = smov %s1661_s10  ;;  %23 = sbr.rel (!%p21_p5) target bundleno = 8 (0x8), region = 102 }
 0x91f   :  { %971 = vsyncpa [#allocation3], 1 }
 0x920   :  { %973 = vsyncpa [#allocation3 + $0x1], 1 }
 0x921   :  { %974 = vsyncpa [#allocation6], 1 }
 0x922   :  { %975 = vsyncpa [#allocation9], 1 }
 0x923   :  { %977 = vsyncpa [#allocation9 + $0x1], 1 }
 0x924   :  { %978 = vsyncpa [#allocation4], 1 }
 0x925   :  { %980 = vsyncpa [#allocation4 + $0x1], 1 }

// kernel: vit_forward.15
= control target key start
LH: loop header
LB: loop body
LE: loop exit
PB: predicated region body
PF: predicated region fallthrough
CT: control target
= control target key end

     0   :  { %10 = vsyncpa [#allocation4], 0  ;;  %s594_s0 = inlined_call_operand.hbm [shape: f32[10,32], index: 0, kind: input, shape index: {}]   ;;  %s595_s1 = inlined_call_operand.hbm [shape: f32[1,32], index: 1, kind: input, shape index: {}]   ;;  %s596_s2 = inlined_call_operand.hbm [shape: f32[1,32], index: 2, kind: input, shape index: {}]   ;;  %s597_s3 = inlined_call_operand.hbm [shape: bf16[32,128], index: 3, kind: input, shape index: {}]   ;;  %s598_s4 = inlined_call_operand.hbm [shape: f32[1,128], index: 4, kind: input, shape index: {}]   ;;  %s599_s5 = inlined_call_operand.hbm [shape: bf16[10,128], index: 5, kind: output, shape index: {}]  }
   0x1   :  { %11 = vsyncpa [#allocation7], 0 }
   0x2   :  { %12 = vsyncpa [#allocation10], 0 }
   0x3   :  { %13 = vsyncpa [#allocation5], 0  ;;  %s464_s18 = smov [#allocation6]   ;;  %s465_s20 = smov [#allocation9]  }
   0x4   :  { %s32_s19 = sshll.u32 %s464_s18, 4  ;;  %s51_s21 = sshll.u32 %s465_s20, 4  ;;  %s33_s19 = int_to_ptr.vmem [resolvable:$true] %s32_s19  ;;  %s506_s21 = int_to_ptr.vmem [resolvable:$true] %s51_s21 }
   0x5   :  { %s324_s24 = scalar_lea.hbm %s595_s1, 16 }
   0x6   :  { %p325_p0 = scmp.ne.s32.totalorder %s595_s1, %s324_s24  ;;  %p328_p1 = scmp.lt.u32.totalorder %s324_s24, %s595_s1 }
   0x8   :  { %p330_p2 = pnand %p328_p1, %p325_p0 }
   0xa   :  { %333 = shalt.err (!%p330_p2)
}
   0xb   :  { %s334_s29 = scalar_lea.vmem %s33_s19, 16  ;;  %s338_s30 = scalar_lea.vmem %s33_s19, 32 }
   0xc   :  { %p335_p3 = scmp.ne.s32.totalorder %s33_s19, %s334_s29  ;;  %p339_p4 = scmp.lt.s32.totalorder %s33_s19, %s33_s19 }
   0xd   :  { %p340_p5 = scmp.lt.s32.totalorder %s338_s30, %s334_s29 }
   0xf   :  { %p341_p6 = por %p340_p5, %p339_p4 }
  0x11   :  { %p342_p7 = pnand %p341_p6, %p335_p3 }
  0x13   :  { %345 = shalt.err (!%p342_p7)
}
  0x14   :  { %35 = dma.hbm_to_vmem [thread:$0]  %s595_s1, 16, %s33_s19, [#allocation7]  }
  0x15   :  { %s346_s10 = scalar_lea.hbm %s597_s3, 256 }
  0x16   :  { %p347_p8 = scmp.ne.s32.totalorder %s597_s3, %s346_s10  ;;  %p350_p9 = scmp.lt.u32.totalorder %s346_s10, %s597_s3 }
  0x18   :  { %p352_p10 = pnand %p350_p9, %p347_p8 }
  0x1a   :  { %355 = shalt.err (!%p352_p10)
}
  0x1b   :  { %s356_s15 = scalar_lea.vmem %s506_s21, 256  ;;  %p361_p12 = scmp.lt.s32.totalorder %s506_s21, %s506_s21 }
  0x1c   :  { %p357_p11 = scmp.ne.s32.totalorder %s506_s21, %s356_s15  ;;  %p362_p13 = scmp.lt.s32.totalorder %s356_s15, %s356_s15 }
  0x1e   :  { %p363_p0 = por %p362_p13, %p361_p12 }
  0x20   :  { %p364_p1 = pnand %p363_p0, %p357_p11 }
  0x22   :  { %367 = shalt.err (!%p364_p1)
}
  0x23   :  { %s466_s1 = smov 64   ;;  %s467_s16 = smov 4  }
  0x24   :  { %57 = dma.hbm_to_vmem [thread:$0]  %s597_s3, 256, %s506_s21, [#allocation10], %s466_s1, %s466_s1, %s467_s16  }
  0x25   :  { %s468_s19 = smov [#allocation3]   ;;  %s368_s24 = scalar_lea.hbm %s594_s0, 256 }
  0x26   :  { %s19_s20 = sshll.u32 %s468_s19, 4  ;;  %p369_p2 = scmp.ne.s32.totalorder %s594_s0, %s368_s24  ;;  %s20_s20 = int_to_ptr.vmem [resolvable:$true] %s19_s20 }
  0x27   :  { %p372_p3 = scmp.lt.u32.totalorder %s368_s24, %s594_s0 }
  0x29   :  { %p374_p4 = pnand %p372_p3, %p369_p2 }
  0x2b   :  { %377 = shalt.err (!%p374_p4)
}
  0x2c   :  { %s378_s29 = scalar_lea.vmem %s20_s20, 256  ;;  %p383_p6 = scmp.lt.s32.totalorder %s20_s20, %s20_s20 }
  0x2d   :  { %p379_p5 = scmp.ne.s32.totalorder %s20_s20, %s378_s29  ;;  %p384_p7 = scmp.lt.s32.totalorder %s378_s29, %s378_s29 }
  0x2f   :  { %p385_p8 = por %p384_p7, %p383_p6 }
  0x31   :  { %p386_p9 = pnand %p385_p8, %p379_p5 }
  0x33   :  { %389 = shalt.err (!%p386_p9)
}
  0x34   :  { %s469_s3 = smov 128   ;;  %s470_s21 = smov 8  }
  0x35   :  { %25 = dma.hbm_to_vmem [thread:$0]  %s594_s0, 256, %s20_s20, [#allocation4], %s469_s3, %s469_s3, %s470_s21  }
  0x36   :  { %s471_s7 = smov [#allocation8]   ;;  %s472_s9 = smov [#allocation11]  }
  0x37   :  { %s42_s8 = sshll.u32 %s471_s7, 4  ;;  %s64_s10 = sshll.u32 %s472_s9, 4  ;;  %s43_s8 = int_to_ptr.vmem [resolvable:$true] %s42_s8  ;;  %s65_s10 = int_to_ptr.vmem [resolvable:$true] %s64_s10 }
  0x38   :  { %s390_s13 = scalar_lea.hbm %s596_s2, 16 }
  0x39   :  { %p391_p10 = scmp.ne.s32.totalorder %s596_s2, %s390_s13  ;;  %p394_p11 = scmp.lt.u32.totalorder %s390_s13, %s596_s2 }
  0x3b   :  { %p396_p12 = pnand %p394_p11, %p391_p10 }
  0x3d   :  { %399 = shalt.err (!%p396_p12)
}
  0x3e   :  { %s400_s0 = scalar_lea.vmem %s43_s8, 16  ;;  %s404_s19 = scalar_lea.vmem %s43_s8, 32 }
  0x3f   :  { %p401_p13 = scmp.ne.s32.totalorder %s43_s8, %s400_s0  ;;  %p405_p0 = scmp.lt.s32.totalorder %s43_s8, %s43_s8 }
  0x40   :  { %p406_p1 = scmp.lt.s32.totalorder %s404_s19, %s400_s0 }
  0x42   :  { %p407_p2 = por %p406_p1, %p405_p0 }
  0x44   :  { %p408_p3 = pnand %p407_p2, %p401_p13 }
  0x46   :  { %411 = shalt.err (!%p408_p3)
}
  0x47   :  { %45 = dma.hbm_to_vmem [thread:$0]  %s596_s2, 16, %s43_s8, [#allocation7]  }
  0x48   :  { %s412_s25 = scalar_lea.hbm %s598_s4, 16 }
  0x49   :  { %p413_p4 = scmp.ne.s32.totalorder %s598_s4, %s412_s25  ;;  %p416_p5 = scmp.lt.u32.totalorder %s412_s25, %s598_s4 }
  0x4b   :  { %p418_p6 = pnand %p416_p5, %p413_p4 }
  0x4d   :  { %421 = shalt.err (!%p418_p6)
}
  0x4e   :  { %s422_s3 = scalar_lea.vmem %s65_s10, 16  ;;  %s426_s21 = scalar_lea.vmem %s65_s10, 32 }
  0x4f   :  { %p423_p7 = scmp.ne.s32.totalorder %s65_s10, %s422_s3  ;;  %p427_p8 = scmp.lt.s32.totalorder %s65_s10, %s65_s10 }
  0x50   :  { %p428_p9 = scmp.lt.s32.totalorder %s426_s21, %s422_s3 }
  0x52   :  { %p429_p10 = por %p428_p9, %p427_p8 }
  0x54   :  { %p430_p11 = pnand %p429_p10, %p423_p7 }
  0x56   :  { %433 = shalt.err (!%p430_p11)
}
  0x57   :  { %67 = dma.hbm_to_vmem [thread:$0]  %s598_s4, 16, %s65_s10, [#allocation10]  }
  0x58   :  { %456 = dma.done.wait [#allocation4], 256  }
  0x59   :  { %457 = vsyncadd [#allocation4], 4294967040 }
  0x5a   :  { %458 = dma.done.wait [#allocation7], 32  }
  0x5b   :  { %459 = vsyncadd [#allocation7], 4294967264 }
  0x5c   :  { %460 = dma.done.wait [#allocation10], 272  }
  0x5d   :  { %461 = vsyncadd [#allocation10], 4294967024  ;;  %vm90_vm0 = vcmask 261120   ;;  %v88_v0 = vld [vmem:[#allocation3] sm:$0xff]  ;;  %v89_v1 = vld [vmem:[#allocation3 + $0x8] sm:$0x3] }
  0x5e   :  { %vm94_vm1 = vcmask 254976   ;;  %v91_v2 = vsel %vm90_vm0, %v88_v0, 0.0  ;;  %v309_v14 = vld [vmem:[#allocation9] sm:$0xff]   ;;  %v473_v15 = vmov 0.0   ;;  %vm474_vm2 = vmmov 0   ;;  %v310_v16 = vld [vmem:[#allocation9 + $0x8] sm:$0xff]  }
  0x5f   :  { %92 = vadd.xlane.f32.xlu0 %v91_v2  ;;  %v95_v3 = vsel %vm94_vm1, %v89_v1, 0.0  ;;  %289 = vmatprep.subr.bf16.mxu0 %v473_v15  ;;  %v269_v24 = vld [vmem:[#allocation6] ss:$0 sm:$0xff]  ;;  %v270_v26 = vld [vmem:[#allocation8] ss:$0 sm:$0xff]  ;;  %vm145_vm3 = vcmask 257024  }
  0x60   :  { %293 = vmatprep.mubr.msk.bf16.mxu0 %vm474_vm2, %v473_v15  ;;  %290 = vmatpush3.bf16.msra.mxu0 %v309_v14  ;;  %vm147_vm4 = vcmask 253952   ;;  %v273_v36 = vld [vmem:[#allocation11] ss:$0 sm:$0xff]  ;;  %s475_s4 = smov [#allocation12]  }
  0x61   :  { %291 = vmatprep.subr.bf16.mxu0 %v473_v15  ;;  %s255_s6 = sshll.u32 %s475_s4, 4  ;;  %s256_s6 = int_to_ptr.vmem [resolvable:$true] %s255_s6 }
  0x62   :  { %s434_s7 = scalar_lea.vmem %s256_s6, 128  ;;  %p439_p13 = scmp.lt.s32.totalorder %s256_s6, %s256_s6 }
  0x63   :  { %96 = vadd.xlane.f32.xlu0 %v95_v3  ;;  %p435_p12 = scmp.ne.s32.totalorder %s256_s6, %s434_s7  ;;  %p440_p0 = scmp.lt.s32.totalorder %s434_s7, %s434_s7 }
  0x64   :  { %292 = vmatpush3.bf16.msra.mxu0 %v310_v16 }
  0x65   :  { %p441_p1 = por %p440_p0, %p439_p13 }
  0x67   :  { %p442_p2 = pnand %p441_p1, %p435_p12 }
  0xec   :  { %v93_v4 = vpop.xlane.xlu0 %92 }
  0xed   :  { %v99_v5 = vmul.f32 0.03125, %v93_v4 }
  0xef   :  { %v101_v6 = vsub.f32 %v88_v0, %v99_v5 }
  0xf0   :  { %v97_v7 = vpop.xlane.xlu0 %96 }
  0xf1   :  { %v100_v8 = vmul.f32 0.03125, %v97_v7  ;;  %v103_v9 = vmul.f32 %v101_v6, %v101_v6 }
  0xf3   :  { %v102_v10 = vsub.f32 %v89_v1, %v100_v8  ;;  %v105_v11 = vsel %vm90_vm0, %v103_v9, 0.0 }
  0xf4   :  { %106 = vadd.xlane.f32.xlu1 %v105_v11 }
  0xf5   :  { %v104_v12 = vmul.f32 %v102_v10, %v102_v10 }
  0xf7   :  { %v108_v13 = vsel %vm94_vm1, %v104_v12, 0.0 }
  0xf8   :  { %109 = vadd.xlane.f32.xlu1 %v108_v13 }
 0x181   :  { %v107_v17 = vpop.xlane.xlu1 %106 }
 0x182   :  { %v111_v18 = vmul.f32 0.03125, %v107_v17 }
 0x184   :  { %v113_v19 = vadd.f32 1e-05, %v111_v18 }
 0x185   :  { %v110_v20 = vpop.xlane.xlu1 %109 }
 0x186   :  { %312 = vrsqrt.f32 %v113_v19  ;;  %v112_v21 = vmul.f32 0.03125, %v110_v20 }
 0x188   :  { %v114_v22 = vadd.f32 1e-05, %v112_v21 }
 0x18a   :  { %314 = vrsqrt.f32 %v114_v22 }
 0x190   :  { %v313_v23 = vpop.eup %312 }
 0x191   :  { %v117_v25 = vmul.f32 %v313_v23, %v101_v6 }
 0x193   :  { %v126_v27 = vmul.f32 %v269_v24, %v117_v25 }
 0x194   :  { %v315_v28 = vpop.eup %314 }
 0x195   :  { %v135_v29 = vadd.f32 %v270_v26, %v126_v27  ;;  %v118_v30 = vmul.f32 %v315_v28, %v102_v10 }
 0x197   :  { %v282_v31 = vpack.c.bf16 %v135_v29, %v135_v29  ;;  %v127_v32 = vmul.f32 %v269_v24, %v118_v30 }
 0x199   :  { %146 = vst.msk [vmem:[#allocation2] sm:$0xf] %vm145_vm3, %v282_v31  ;;  %v136_v33 = vadd.f32 %v270_v26, %v127_v32 }
 0x19b   :  { %v283_v34 = vpack.c.bf16 %v136_v33, %v136_v33 }
 0x19d   :  { %148 = vst.msk [vmem:[#allocation2 + $0x4] sm:$0x1] %vm147_vm4, %v283_v34 }
 0x1a4   :  { %v311_v35 = vld [vmem:[#allocation2] sm:$0x1f]  }
 0x1a5   :  { %294 = vmatmul.mubr.msk.bf16.vlgmr.msra.gmra.mrb[0].mxu0 %vm90_vm0, %v311_v35 }
 0x278   :  { %v217_v37 = vpop.f32.mrb[0].mxu0 }
 0x279   :  { %v218_v38 = vadd.f32 %v273_v36, %v217_v37  ;;  %v295_v39 = vpop.f32.mrb[1].mxu0 }
 0x27a   :  { %v220_v40 = vpop.f32.mrb[2].mxu0 }
 0x27b   :  { %v278_v41 = vmul.f32 -1.702, %v218_v38  ;;  %v221_v42 = vadd.f32 %v273_v36, %v220_v40  ;;  %v296_v43 = vpop.f32.mrb[3].mxu0 }
 0x27d   :  { %v228_v44 = vmul.f32 1.442695, %v278_v41  ;;  %v279_v45 = vmul.f32 -1.702, %v221_v42 }
 0x27f   :  { %316 = vpow2.f32 %v228_v44  ;;  %v230_v46 = vmul.f32 1.442695, %v279_v45 }
 0x281   :  { %318 = vpow2.f32 %v230_v46 }
 0x289   :  { %v317_v47 = vpop.eup %316 }
 0x28a   :  { %v232_v48 = vadd.f32 1.0, %v317_v47 }
 0x28b   :  { %v319_v49 = vpop.eup %318 }
 0x28c   :  { %320 = vrcp.f32 %v232_v48  ;;  %v233_v50 = vadd.f32 1.0, %v319_v49 }
 0x28e   :  { %322 = vrcp.f32 %v233_v50 }
 0x296   :  { %v321_v51 = vpop.eup %320 }
 0x297   :  { %v238_v52 = vmul.f32 %v321_v51, %v218_v38 }
 0x298   :  { %v323_v53 = vpop.eup %322 }
 0x299   :  { %v284_v54 = vpack.c.bf16 %v238_v52, %v238_v52  ;;  %v239_v55 = vmul.f32 %v323_v53, %v221_v42 }
 0x29b   :  { %248 = vst [vmem:[#allocation12] sm:$0xf] %v284_v54  ;;  %v285_v56 = vpack.c.bf16 %v239_v55, %v239_v55 }
 0x29d   :  { %249 = vst [vmem:[#allocation12 + $0x4] sm:$0x1] %v285_v56 }
 0x29e   :  { %445 = shalt.err (!%p442_p2)
}
 0x29f   :  { %s446_s10 = scalar_lea.hbm %s599_s5, 128 }
 0x2a0   :  { %p447_p3 = scmp.ne.s32.totalorder %s599_s5, %s446_s10  ;;  %p450_p4 = scmp.lt.u32.totalorder %s446_s10, %s599_s5 }
 0x2a2   :  { %p452_p5 = pnand %p450_p4, %p447_p3 }
 0x2a4   :  { %455 = shalt.err (!%p452_p5)
}
 0x2a5   :  { %261 = dma.vmem_to_hbm [thread:$0]  %s256_s6, 128, %s599_s5, [#allocation5], %s466_s1, %s466_s1, %s467_s16  }
 0x2a6   :  { %462 = dma.done.wait [#allocation5], 128  }
 0x2a7   :  { %463 = vsyncadd [#allocation5], 4294967168 }
 0x2a8   :  { %265 = vsyncpa [#allocation4], 1 }
 0x2a9   :  { %266 = vsyncpa [#allocation7], 1 }
 0x2aa   :  { %267 = vsyncpa [#allocation10], 1 }
 0x2ab   :  { %268 = vsyncpa [#allocation5], 1 }

// kernel: vit_forward.16
= control target key start
LH: loop header
LB: loop body
LE: loop exit
PB: predicated region body
PF: predicated region fallthrough
CT: control target
= control target key end

     0   :  { %9 = vsyncpa [#allocation4], 0  ;;  %s539_s0 = inlined_call_operand.hbm [shape: bf16[10,128], index: 0, kind: input, shape index: {}]   ;;  %s540_s1 = inlined_call_operand.hbm [shape: bf16[128,32], index: 1, kind: input, shape index: {}]   ;;  %s541_s2 = inlined_call_operand.hbm [shape: f32[1,32], index: 2, kind: input, shape index: {}]   ;;  %s542_s3 = inlined_call_operand.hbm [shape: f32[10,32], index: 3, kind: input, shape index: {}]   ;;  %s543_s4 = inlined_call_operand.hbm [shape: f32[10,32], index: 4, kind: output, shape index: {}]  }
   0x1   :  { %10 = vsyncpa [#allocation7], 0 }
   0x2   :  { %11 = vsyncpa [#allocation10], 0 }
   0x3   :  { %12 = vsyncpa [#allocation5], 0  ;;  %s417_s15 = smov [#allocation6]   ;;  %s418_s17 = smov [#allocation3]  }
   0x4   :  { %s30_s16 = sshll.u32 %s417_s15, 4  ;;  %s18_s18 = sshll.u32 %s418_s17, 4  ;;  %s31_s16 = int_to_ptr.vmem [resolvable:$true] %s30_s16  ;;  %s453_s18 = int_to_ptr.vmem [resolvable:$true] %s18_s18 }
   0x5   :  { %s299_s21 = scalar_lea.hbm %s540_s1, 1024 }
   0x6   :  { %p300_p0 = scmp.ne.s32.totalorder %s540_s1, %s299_s21  ;;  %p303_p1 = scmp.lt.u32.totalorder %s299_s21, %s540_s1 }
   0x8   :  { %p305_p2 = pnand %p303_p1, %p300_p0 }
   0xa   :  { %308 = shalt.err (!%p305_p2)
}
   0xb   :  { %s309_s26 = scalar_lea.vmem %s31_s16, 1024  ;;  %p314_p4 = scmp.lt.s32.totalorder %s31_s16, %s31_s16 }
   0xc   :  { %p310_p3 = scmp.ne.s32.totalorder %s31_s16, %s309_s26  ;;  %p315_p5 = scmp.lt.s32.totalorder %s309_s26, %s309_s26 }
   0xe   :  { %p316_p6 = por %p315_p5, %p314_p4 }
  0x10   :  { %p317_p7 = pnand %p316_p6, %p310_p3 }
  0x12   :  { %320 = shalt.err (!%p317_p7)
}
  0x13   :  { %s419_s27 = smov 64   ;;  %s420_s28 = smov 4  }
  0x14   :  { %36 = dma.hbm_to_vmem [thread:$0]  %s540_s1, 1024, %s31_s16, [#allocation7], %s419_s27, %s419_s27, %s420_s28  }
  0x15   :  { %s321_s7 = scalar_lea.hbm %s539_s0, 128 }
  0x16   :  { %p322_p8 = scmp.ne.s32.totalorder %s539_s0, %s321_s7  ;;  %p325_p9 = scmp.lt.u32.totalorder %s321_s7, %s539_s0 }
  0x18   :  { %p327_p10 = pnand %p325_p9, %p322_p8 }
  0x1a   :  { %330 = shalt.err (!%p327_p10)
}
  0x1b   :  { %s331_s12 = scalar_lea.vmem %s453_s18, 128  ;;  %p336_p12 = scmp.lt.s32.totalorder %s453_s18, %s453_s18 }
  0x1c   :  { %p332_p11 = scmp.ne.s32.totalorder %s453_s18, %s331_s12  ;;  %p337_p13 = scmp.lt.s32.totalorder %s331_s12, %s331_s12 }
  0x1e   :  { %p338_p0 = por %p337_p13, %p336_p12 }
  0x20   :  { %p339_p1 = pnand %p338_p0, %p332_p11 }
  0x22   :  { %342 = shalt.err (!%p339_p1)
}
  0x23   :  { %24 = dma.hbm_to_vmem [thread:$0]  %s539_s0, 128, %s453_s18, [#allocation4], %s419_s27, %s419_s27, %s420_s28  }
  0x24   :  { %s421_s14 = smov [#allocation8]   ;;  %s422_s16 = smov [#allocation9]  }
  0x25   :  { %s43_s15 = sshll.u32 %s421_s14, 4  ;;  %s52_s17 = sshll.u32 %s422_s16, 4  ;;  %s44_s15 = int_to_ptr.vmem [resolvable:$true] %s43_s15  ;;  %s484_s17 = int_to_ptr.vmem [resolvable:$true] %s52_s17 }
  0x26   :  { %s343_s21 = scalar_lea.hbm %s541_s2, 16 }
  0x27   :  { %p344_p2 = scmp.ne.s32.totalorder %s541_s2, %s343_s21  ;;  %p347_p3 = scmp.lt.u32.totalorder %s343_s21, %s541_s2 }
  0x29   :  { %p349_p4 = pnand %p347_p3, %p344_p2 }
  0x2b   :  { %352 = shalt.err (!%p349_p4)
}
  0x2c   :  { %s353_s0 = scalar_lea.vmem %s44_s15, 16  ;;  %s357_s18 = scalar_lea.vmem %s44_s15, 32 }
  0x2d   :  { %p354_p5 = scmp.ne.s32.totalorder %s44_s15, %s353_s0  ;;  %p358_p6 = scmp.lt.s32.totalorder %s44_s15, %s44_s15 }
  0x2e   :  { %p359_p7 = scmp.lt.s32.totalorder %s357_s18, %s353_s0 }
  0x30   :  { %p360_p8 = por %p359_p7, %p358_p6 }
  0x32   :  { %p361_p9 = pnand %p360_p8, %p354_p5 }
  0x34   :  { %364 = shalt.err (!%p361_p9)
}
  0x35   :  { %46 = dma.hbm_to_vmem [thread:$0]  %s541_s2, 16, %s44_s15, [#allocation7]  }
  0x36   :  { %s365_s30 = scalar_lea.hbm %s542_s3, 256 }
  0x37   :  { %p366_p10 = scmp.ne.s32.totalorder %s542_s3, %s365_s30  ;;  %p369_p11 = scmp.lt.u32.totalorder %s365_s30, %s542_s3 }
  0x39   :  { %p371_p12 = pnand %p369_p11, %p366_p10 }
  0x3b   :  { %374 = shalt.err (!%p371_p12)
}
  0x3c   :  { %s375_s9 = scalar_lea.vmem %s484_s17, 256  ;;  %p380_p0 = scmp.lt.s32.totalorder %s484_s17, %s484_s17 }
  0x3d   :  { %p376_p13 = scmp.ne.s32.totalorder %s484_s17, %s375_s9  ;;  %p381_p1 = scmp.lt.s32.totalorder %s375_s9, %s375_s9 }
  0x3f   :  { %p382_p2 = por %p381_p1, %p380_p0 }
  0x41   :  { %p383_p3 = pnand %p382_p2, %p376_p13 }
  0x43   :  { %386 = shalt.err (!%p383_p3)
}
  0x44   :  { %s423_s2 = smov 128   ;;  %s424_s10 = smov 8  }
  0x45   :  { %58 = dma.hbm_to_vmem [thread:$0]  %s542_s3, 256, %s484_s17, [#allocation10], %s423_s2, %s423_s2, %s424_s10  }
  0x46   :  { %409 = dma.done.wait [#allocation4], 128  }
  0x47   :  { %410 = vsyncadd [#allocation4], 4294967168 }
  0x48   :  { %411 = dma.done.wait [#allocation7], 1040  }
  0x49   :  { %412 = vsyncadd [#allocation7], 4294966256 }
  0x4a   :  { %413 = dma.done.wait [#allocation10], 256  }
  0x4b   :  { %414 = vsyncadd [#allocation10], 4294967040  ;;  %vm76_vm0 = vcmask 261120   ;;  %v425_v0 = vmov 0.0   ;;  %vm426_vm1 = vmmov 0   ;;  %v290_v1 = vld [vmem:[#allocation6] sm:$0xff]  }
  0x4c   :  { %259 = vmatprep.subr.bf16.mxu0 %v425_v0  ;;  %275 = vmatprep.mubr.msk.bf16.mxu0 %vm426_vm1, %v425_v0  ;;  %77 = vst.msk [vmem:[#allocation2] sm:$0xff] %vm76_vm0, %v425_v0  ;;  %v291_v2 = vld [vmem:[#allocation6 + $0x8] sm:$0xff]   ;;  %v292_v3 = vld [vmem:[#allocation6 + $0x10] sm:$0xff]   ;;  %v293_v4 = vld [vmem:[#allocation6 + $0x18] sm:$0xff]   ;;  %vm78_vm2 = vcmask 254976   ;;  %s427_s3 = smov [#allocation11]  }
  0x4d   :  { %260 = vmatpush3.bf16.msra.mxu0 %v290_v1  ;;  %v294_v5 = vld [vmem:[#allocation6 + $0x20] sm:$0xff]   ;;  %v295_v6 = vld [vmem:[#allocation6 + $0x28] sm:$0xff]   ;;  %v296_v7 = vld [vmem:[#allocation6 + $0x30] sm:$0xff]   ;;  %79 = vst.msk [vmem:[#allocation2 + $0x8] sm:$0x3] %vm78_vm2, %v425_v0  ;;  %s226_s1 = sshll.u32 %s427_s3, 4  ;;  %s227_s1 = int_to_ptr.vmem [resolvable:$true] %s226_s1 }
  0x4e   :  { %261 = vmatprep.subr.bf16.mxu0 %v425_v0  ;;  %v297_v8 = vld [vmem:[#allocation6 + $0x38] sm:$0xff]   ;;  %v249_v18 = vld [vmem:[#allocation8] ss:$0 sm:$0xff]  ;;  %v215_v20 = vld [vmem:[#allocation9] sm:$0xff]  ;;  %s387_s13 = scalar_lea.vmem %s227_s1, 256  ;;  %p392_p5 = scmp.lt.s32.totalorder %s227_s1, %s227_s1 }
  0x4f   :  { %v298_v9 = vld [vmem:[#allocation3] sm:$0x1f]   ;;  %v216_v23 = vld [vmem:[#allocation9 + $0x8] sm:$0x3]  ;;  %p388_p4 = scmp.ne.s32.totalorder %s227_s1, %s387_s13  ;;  %p393_p6 = scmp.lt.s32.totalorder %s387_s13, %s387_s13 }
  0x51   :  { %262 = vmatpush3.bf16.msra.mxu0 %v291_v2  ;;  %p394_p7 = por %p393_p6, %p392_p5 }
  0x52   :  { %263 = vmatprep.subr.bf16.mxu0 %v425_v0 }
  0x53   :  { %v80_v10 = vld [vmem:[#allocation2] sm:$0xff]  ;;  %p395_p8 = pnand %p394_p7, %p388_p4 }
  0x54   :  { %v81_v12 = vld [vmem:[#allocation2 + $0x8] sm:$0x3] }
  0x55   :  { %264 = vmatpush3.bf16.msra.mxu0 %v292_v3 }
  0x56   :  { %265 = vmatprep.subr.bf16.mxu0 %v425_v0 }
  0x59   :  { %266 = vmatpush3.bf16.msra.mxu0 %v293_v4 }
  0x5a   :  { %267 = vmatprep.subr.bf16.mxu0 %v425_v0 }
  0x5d   :  { %268 = vmatpush3.bf16.msra.mxu0 %v294_v5 }
  0x5e   :  { %269 = vmatprep.subr.bf16.mxu0 %v425_v0 }
  0x61   :  { %270 = vmatpush3.bf16.msra.mxu0 %v295_v6 }
  0x62   :  { %271 = vmatprep.subr.bf16.mxu0 %v425_v0 }
  0x65   :  { %272 = vmatpush3.bf16.msra.mxu0 %v296_v7 }
  0x66   :  { %273 = vmatprep.subr.bf16.mxu0 %v425_v0 }
  0x69   :  { %274 = vmatpush3.bf16.msra.mxu0 %v297_v8 }
  0x6c   :  { %276 = vmatmul.mubr.bf16.vlgmr.msra.gmra.mrb[0].mxu0 %v298_v9 }
 0x13f   :  { %v188_v11 = vpop.f32.mrb[0].mxu0 }
 0x140   :  { %v195_v13 = vadd.f32 %v188_v11, %v80_v10  ;;  %v277_v14 = vpop.f32.mrb[1].mxu0 }
 0x141   :  { %v191_v15 = vpop.f32.mrb[2].mxu0 }
 0x142   :  { %198 = vst.msk [vmem:[#allocation2] sm:$0xff] %vm76_vm0, %v195_v13  ;;  %v196_v16 = vadd.f32 %v191_v15, %v81_v12  ;;  %v278_v17 = vpop.f32.mrb[3].mxu0 }
 0x144   :  { %200 = vst.msk [vmem:[#allocation2 + $0x8] sm:$0x3] %vm78_vm2, %v196_v16 }
 0x149   :  { %v204_v19 = vld [vmem:[#allocation2] sm:$0xff] }
 0x14a   :  { %v213_v21 = vadd.f32 %v249_v18, %v204_v19 }
 0x14b   :  { %v205_v22 = vld [vmem:[#allocation2 + $0x8] sm:$0x3] }
 0x14c   :  { %v214_v24 = vadd.f32 %v249_v18, %v205_v22  ;;  %v217_v25 = vadd.f32 %v215_v20, %v213_v21 }
 0x14e   :  { %v218_v26 = vadd.f32 %v216_v23, %v214_v24  ;;  %219 = vst.msk [vmem:[#allocation11] sm:$0xff] %vm76_vm0, %v217_v25 }
 0x150   :  { %220 = vst.msk [vmem:[#allocation11 + $0x8] sm:$0x3] %vm78_vm2, %v218_v26 }
 0x151   :  { %398 = shalt.err (!%p395_p8)
}
 0x152   :  { %s399_s16 = scalar_lea.hbm %s543_s4, 256 }
 0x153   :  { %p400_p9 = scmp.ne.s32.totalorder %s543_s4, %s399_s16  ;;  %p403_p10 = scmp.lt.u32.totalorder %s399_s16, %s543_s4 }
 0x155   :  { %p405_p11 = pnand %p403_p10, %p400_p9 }
 0x157   :  { %408 = shalt.err (!%p405_p11)
}
 0x158   :  { %232 = dma.vmem_to_hbm [thread:$0]  %s227_s1, 256, %s543_s4, [#allocation5], %s423_s2, %s423_s2, %s424_s10  }
 0x159   :  { %415 = dma.done.wait [#allocation5], 256  }
 0x15a   :  { %416 = vsyncadd [#allocation5], 4294967040 }
 0x15b   :  { %236 = vsyncpa [#allocation4], 1 }
 0x15c   :  { %237 = vsyncpa [#allocation7], 1 }
 0x15d   :  { %238 = vsyncpa [#allocation10], 1 }
 0x15e   :  { %239 = vsyncpa [#allocation5], 1 }

// kernel: vit_forward.21
= control target key start
LH: loop header
LB: loop body
LE: loop exit
PB: predicated region body
PF: predicated region fallthrough
CT: control target
= control target key end

     0   :  { %10 = vsyncpa [#allocation4], 0  ;;  %s498_s0 = inlined_call_operand.hbm [shape: f32[2,32], index: 0, kind: input, shape index: {}]   ;;  %s499_s1 = inlined_call_operand.hbm [shape: f32[1,32], index: 1, kind: input, shape index: {}]   ;;  %s500_s2 = inlined_call_operand.hbm [shape: f32[1,32], index: 2, kind: input, shape index: {}]   ;;  %s501_s3 = inlined_call_operand.hbm [shape: bf16[32,16], index: 3, kind: input, shape index: {}]   ;;  %s502_s4 = inlined_call_operand.hbm [shape: f32[1,16], index: 4, kind: input, shape index: {}]   ;;  %s503_s5 = inlined_call_operand.hbm [shape: f32[2,16], index: 5, kind: output, shape index: {}]  }
   0x1   :  { %11 = vsyncpa [#allocation7], 0 }
   0x2   :  { %12 = vsyncpa [#allocation10], 0 }
   0x3   :  { %13 = vsyncpa [#allocation5], 0  ;;  %s379_s18 = smov [#allocation6]   ;;  %s380_s20 = smov [#allocation9]  }
   0x4   :  { %s30_s19 = sshll.u32 %s379_s18, 4  ;;  %s49_s21 = sshll.u32 %s380_s20, 4  ;;  %s31_s19 = int_to_ptr.vmem [resolvable:$true] %s30_s19  ;;  %s419_s21 = int_to_ptr.vmem [resolvable:$true] %s49_s21 }
   0x5   :  { %s239_s24 = scalar_lea.hbm %s499_s1, 16 }
   0x6   :  { %p240_p0 = scmp.ne.s32.totalorder %s499_s1, %s239_s24  ;;  %p243_p1 = scmp.lt.u32.totalorder %s239_s24, %s499_s1 }
   0x8   :  { %p245_p2 = pnand %p243_p1, %p240_p0 }
   0xa   :  { %248 = shalt.err (!%p245_p2)
}
   0xb   :  { %s249_s29 = scalar_lea.vmem %s31_s19, 16  ;;  %s253_s30 = scalar_lea.vmem %s31_s19, 32 }
   0xc   :  { %p250_p3 = scmp.ne.s32.totalorder %s31_s19, %s249_s29  ;;  %p254_p4 = scmp.lt.s32.totalorder %s31_s19, %s31_s19 }
   0xd   :  { %p255_p5 = scmp.lt.s32.totalorder %s253_s30, %s249_s29 }
   0xf   :  { %p256_p6 = por %p255_p5, %p254_p4 }
  0x11   :  { %p257_p7 = pnand %p256_p6, %p250_p3 }
  0x13   :  { %260 = shalt.err (!%p257_p7)
}
  0x14   :  { %33 = dma.hbm_to_vmem [thread:$0]  %s499_s1, 16, %s31_s19, [#allocation7]  }
  0x15   :  { %s261_s10 = scalar_lea.hbm %s501_s3, 256 }
  0x16   :  { %p262_p8 = scmp.ne.s32.totalorder %s501_s3, %s261_s10  ;;  %p265_p9 = scmp.lt.u32.totalorder %s261_s10, %s501_s3 }
  0x18   :  { %p267_p10 = pnand %p265_p9, %p262_p8 }
  0x1a   :  { %270 = shalt.err (!%p267_p10)
}
  0x1b   :  { %s271_s15 = scalar_lea.vmem %s419_s21, 256  ;;  %p276_p12 = scmp.lt.s32.totalorder %s419_s21, %s419_s21 }
  0x1c   :  { %p272_p11 = scmp.ne.s32.totalorder %s419_s21, %s271_s15  ;;  %p277_p13 = scmp.lt.s32.totalorder %s271_s15, %s271_s15 }
  0x1e   :  { %p278_p0 = por %p277_p13, %p276_p12 }
  0x20   :  { %p279_p1 = pnand %p278_p0, %p272_p11 }
  0x22   :  { %282 = shalt.err (!%p279_p1)
}
  0x23   :  { %s381_s1 = smov 64   ;;  %s382_s16 = smov 4  }
  0x24   :  { %55 = dma.hbm_to_vmem [thread:$0]  %s501_s3, 256, %s419_s21, [#allocation10], %s381_s1, %s381_s1, %s382_s16  }
  0x25   :  { %s383_s19 = smov [#allocation3]   ;;  %s384_s22 = smov [#allocation8]  }
  0x26   :  { %s20_s20 = sshll.u32 %s383_s19, 4  ;;  %s40_s23 = sshll.u32 %s384_s22, 4  ;;  %s21_s20 = int_to_ptr.vmem [resolvable:$true] %s20_s20  ;;  %s41_s23 = int_to_ptr.vmem [resolvable:$true] %s40_s23 }
  0x27   :  { %s283_s26 = scalar_lea.hbm %s498_s0, 32 }
  0x28   :  { %p284_p2 = scmp.ne.s32.totalorder %s498_s0, %s283_s26  ;;  %p287_p3 = scmp.lt.u32.totalorder %s283_s26, %s498_s0 }
  0x2a   :  { %p289_p4 = pnand %p287_p3, %p284_p2 }
  0x2c   :  { %292 = shalt.err (!%p289_p4)
}
  0x2d   :  { %s293_s3 = scalar_lea.vmem %s21_s20, 32  ;;  %p298_p6 = scmp.lt.s32.totalorder %s21_s20, %s21_s20 }
  0x2e   :  { %p294_p5 = scmp.ne.s32.totalorder %s21_s20, %s293_s3  ;;  %p299_p7 = scmp.lt.s32.totalorder %s293_s3, %s293_s3 }
  0x30   :  { %p300_p8 = por %p299_p7, %p298_p6 }
  0x32   :  { %p301_p9 = pnand %p300_p8, %p294_p5 }
  0x34   :  { %304 = shalt.err (!%p301_p9)
}
  0x35   :  { %23 = dma.hbm_to_vmem [thread:$0]  %s498_s0, 32, %s21_s20, [#allocation4]  }
  0x36   :  { %s305_s9 = scalar_lea.hbm %s500_s2, 16 }
  0x37   :  { %p306_p10 = scmp.ne.s32.totalorder %s500_s2, %s305_s9  ;;  %p309_p11 = scmp.lt.u32.totalorder %s305_s9, %s500_s2 }
  0x39   :  { %p311_p12 = pnand %p309_p11, %p306_p10 }
  0x3b   :  { %314 = shalt.err (!%p311_p12)
}
  0x3c   :  { %s315_s14 = scalar_lea.vmem %s41_s23, 16  ;;  %s319_s15 = scalar_lea.vmem %s41_s23, 32 }
  0x3d   :  { %p316_p13 = scmp.ne.s32.totalorder %s41_s23, %s315_s14  ;;  %p320_p0 = scmp.lt.s32.totalorder %s41_s23, %s41_s23 }
  0x3e   :  { %p321_p1 = scmp.lt.s32.totalorder %s319_s15, %s315_s14 }
  0x40   :  { %p322_p2 = por %p321_p1, %p320_p0 }
  0x42   :  { %p323_p3 = pnand %p322_p2, %p316_p13 }
  0x44   :  { %326 = shalt.err (!%p323_p3)
}
  0x45   :  { %43 = dma.hbm_to_vmem [thread:$0]  %s500_s2, 16, %s41_s23, [#allocation7]  }
  0x46   :  { %s385_s16 = smov [#allocation11]   ;;  %s327_s20 = scalar_lea.hbm %s502_s4, 16 }
  0x47   :  { %s62_s17 = sshll.u32 %s385_s16, 4  ;;  %p328_p4 = scmp.ne.s32.totalorder %s502_s4, %s327_s20  ;;  %s63_s17 = int_to_ptr.vmem [resolvable:$true] %s62_s17 }
  0x48   :  { %p331_p5 = scmp.lt.u32.totalorder %s327_s20, %s502_s4 }
  0x4a   :  { %p333_p6 = pnand %p331_p5, %p328_p4 }
  0x4c   :  { %336 = shalt.err (!%p333_p6)
}
  0x4d   :  { %s337_s27 = scalar_lea.vmem %s63_s17, 16  ;;  %s341_s2 = scalar_lea.vmem %s63_s17, 32 }
  0x4e   :  { %p338_p7 = scmp.ne.s32.totalorder %s63_s17, %s337_s27  ;;  %p342_p8 = scmp.lt.s32.totalorder %s63_s17, %s63_s17 }
  0x4f   :  { %p343_p9 = scmp.lt.s32.totalorder %s341_s2, %s337_s27 }
  0x51   :  { %p344_p10 = por %p343_p9, %p342_p8 }
  0x53   :  { %p345_p11 = pnand %p344_p10, %p338_p7 }
  0x55   :  { %348 = shalt.err (!%p345_p11)
}
  0x56   :  { %65 = dma.hbm_to_vmem [thread:$0]  %s502_s4, 16, %s63_s17, [#allocation10]  }
  0x57   :  { %371 = dma.done.wait [#allocation4], 32  }
  0x58   :  { %372 = vsyncadd [#allocation4], 4294967264 }
  0x59   :  { %373 = dma.done.wait [#allocation7], 32  }
  0x5a   :  { %374 = vsyncadd [#allocation7], 4294967264 }
  0x5b   :  { %375 = dma.done.wait [#allocation10], 272  }
  0x5c   :  { %376 = vsyncadd [#allocation10], 4294967024  ;;  %vm87_vm0 = vcmask 254976   ;;  %v86_v0 = vld [vmem:[#allocation3] sm:$0x3]  ;;  %v235_v7 = vld [vmem:[#allocation9] sm:$0xff]  }
  0x5d   :  { %v88_v1 = vsel %vm87_vm0, %v86_v0, 0.0  ;;  %v386_v8 = vmov 0.0   ;;  %v236_v9 = vld [vmem:[#allocation9 + $0x8] sm:$0xff]   ;;  %vm387_vm1 = vmmov 0   ;;  %v208_v14 = vld [vmem:[#allocation6] ss:$0 sm:$0xff] }
  0x5e   :  { %89 = vadd.xlane.f32.xlu0 %v88_v1  ;;  %217 = vmatprep.subr.bf16.mxu0 %v386_v8  ;;  %v209_v16 = vld [vmem:[#allocation8] ss:$0 sm:$0xff]  ;;  %vm119_vm2 = vcmask 253952   ;;  %vm145_vm3 = vcmask 261120   ;;  %v210_v21 = vld [vmem:[#allocation11] ss:$0 sm:$0xff] }
  0x5f   :  { %218 = vmatpush3.bf16.msra.mxu0 %v235_v7  ;;  %221 = vmatprep.mubr.msk.bf16.mxu0 %vm387_vm1, %v386_v8  ;;  %s388_s4 = smov [#allocation12]   ;;  %vm189_vm4 = vcmask 123904  }
  0x60   :  { %219 = vmatprep.subr.bf16.mxu0 %v386_v8  ;;  %s197_s29 = sshll.u32 %s388_s4, 4  ;;  %s198_s29 = int_to_ptr.vmem [resolvable:$true] %s197_s29 }
  0x61   :  { %s349_s30 = scalar_lea.vmem %s198_s29, 32  ;;  %p354_p13 = scmp.lt.s32.totalorder %s198_s29, %s198_s29 }
  0x62   :  { %p350_p12 = scmp.ne.s32.totalorder %s198_s29, %s349_s30  ;;  %p355_p0 = scmp.lt.s32.totalorder %s349_s30, %s349_s30 }
  0x63   :  { %220 = vmatpush3.bf16.msra.mxu0 %v236_v9 }
  0x64   :  { %p356_p1 = por %p355_p0, %p354_p13 }
  0x66   :  { %p357_p2 = pnand %p356_p1, %p350_p12 }
  0xeb   :  { %v90_v2 = vpop.xlane.xlu0 %89 }
  0xec   :  { %v92_v3 = vmul.f32 0.03125, %v90_v2 }
  0xee   :  { %v93_v4 = vsub.f32 %v86_v0, %v92_v3 }
  0xf0   :  { %v94_v5 = vmul.f32 %v93_v4, %v93_v4 }
  0xf2   :  { %v95_v6 = vsel %vm87_vm0, %v94_v5, 0.0 }
  0xf3   :  { %96 = vadd.xlane.f32.xlu0 %v95_v6 }
 0x180   :  { %v97_v10 = vpop.xlane.xlu0 %96 }
 0x181   :  { %v98_v11 = vmul.f32 0.03125, %v97_v10 }
 0x183   :  { %v99_v12 = vadd.f32 1e-05, %v98_v11 }
 0x185   :  { %237 = vrsqrt.f32 %v99_v12 }
 0x18f   :  { %v238_v13 = vpop.eup %237 }
 0x190   :  { %v101_v15 = vmul.f32 %v238_v13, %v93_v4 }
 0x192   :  { %v109_v17 = vmul.f32 %v208_v14, %v101_v15 }
 0x194   :  { %v117_v18 = vadd.f32 %v209_v16, %v109_v17 }
 0x196   :  { %v118_v19 = vpack.c.bf16 %v117_v18, %v117_v18 }
 0x198   :  { %120 = vst.msk [vmem:[#allocation2] sm:$0x1] %vm119_vm2, %v118_v19 }
 0x19f   :  { %v121_v20 = vld [vmem:[#allocation2] sm:$0x1] }
 0x1a0   :  { %222 = vmatmul.mubr.msk.bf16.vlgmr.msra.gmra.mrb[0].mxu0 %vm145_vm3, %v121_v20 }
 0x273   :  { %v183_v22 = vpop.f32.mrb[0].mxu0 }
 0x274   :  { %v184_v23 = vadd.f32 %v210_v21, %v183_v22  ;;  %v223_v24 = vpop.f32.mrb[1].mxu0 }
 0x275   :  { %v186_v25 = vpop.f32.mrb[2].mxu0 }
 0x276   :  { %v224_v26 = vpop.f32.mrb[3].mxu0  ;;  %190 = vst.msk [vmem:[#allocation12] sm:$0x3] %vm189_vm4, %v184_v23 }
 0x277   :  { %360 = shalt.err (!%p357_p2)
}
 0x278   :  { %s361_s6 = scalar_lea.hbm %s503_s5, 32 }
 0x279   :  { %p362_p3 = scmp.ne.s32.totalorder %s503_s5, %s361_s6  ;;  %p365_p4 = scmp.lt.u32.totalorder %s361_s6, %s503_s5 }
 0x27b   :  { %p367_p5 = pnand %p365_p4, %p362_p3 }
 0x27d   :  { %370 = shalt.err (!%p367_p5)
}
 0x27e   :  { %200 = dma.vmem_to_hbm [thread:$0]  %s198_s29, 32, %s503_s5, [#allocation5]  }
 0x27f   :  { %377 = dma.done.wait [#allocation5], 32  }
 0x280   :  { %378 = vsyncadd [#allocation5], 4294967264 }
 0x281   :  { %204 = vsyncpa [#allocation4], 1 }
 0x282   :  { %205 = vsyncpa [#allocation7], 1 }
 0x283   :  { %206 = vsyncpa [#allocation10], 1 }
 0x284   :  { %207 = vsyncpa [#allocation5], 1 }

</bundles_post_ra>
